<compile_context>
chip_gen: v7x
topology: tpu7x:2x2x1
jax: 0.10.0
libtpu: 0.0.40
codegen_flags: <defaults>
</compile_context>

<pallas_src>
import jax
import jax.numpy as jnp
from jax.experimental import pallas as pl
from jax.experimental.pallas import tpu as pltpu


def _geimgnet_kernel(alpha_ref, x_ref, w1_ref, b1_ref, w2_ref, b2_ref,
                     hid_ref, code_ref):
    # First linear, recomputed per lane tile (tiny: B x code_len @ code_len x 512).
    h1 = jnp.dot(x_ref[...], w1_ref[...],
                 preferred_element_type=jnp.float32) + b1_ref[...]
    # Second linear on the MXU; match the streamed weight dtype (bf16 path),
    # accumulate in f32.
    h1 = h1.astype(w2_ref.dtype)
    h2 = jnp.dot(h1, w2_ref[...],
                 preferred_element_type=jnp.float32) + b2_ref[...]
    hid_ref[...] = h2.astype(hid_ref.dtype)
    alpha = alpha_ref[0]                               # runtime scalar (SMEM)
    code_ref[...] = jnp.maximum(alpha * h2, 0.0).astype(code_ref.dtype)


def _default_tile_n(n):
    """Per-generation lane-tile choice: >=2 grid steps per TensorCore on the
    dual-TC v7x, fewest steps on single-TC v5e/v6e."""
    try:
        kind = jax.devices()[0].device_kind.lower()
    except Exception:  # pragma: no cover - non-TPU fallback
        kind = ""
    if "v7" in kind:
        return min(n, 1024)      # grid=(4,) -> 2 steps per TC
    return min(n, 2048)          # grid=(2,) on v5e/v6e


def geimgnet_forward(x, w1, b1, w2, b2, *, alpha=1.0, tile_n=None,
                     out_dtype=jnp.bfloat16,
                     vmem_limit_bytes=32 * 1024 * 1024):
    """GeImgNet forward.

    x:  (B, code_len) f32        w1: (code_len, 512)   b1: (512,) or (1, 512)
    w2: (512, 4096) -- persist in bf16 for the fast path (or f32 for parity)
    b2: (4096,) or (1, 4096) f32

    Returns (x, hid, code); hid/code are stored in `out_dtype`
    (f32 accumulation on the MXU either way).
    """
    B, code_len = x.shape
    H1 = w1.shape[1]              # 512
    N = w2.shape[1]               # 4096
    if tile_n is None:
        tile_n = _default_tile_n(N)
    assert N % tile_n == 0

    b1_2d = b1.reshape(1, H1)                    # no-op if already (1, H1)
    b2_2d = b2.reshape(1, N).astype(jnp.float32)
    alpha_arr = jnp.asarray([alpha], dtype=jnp.float32)   # SMEM scalar operand

    grid = (N // tile_n,)
    hid, code = pl.pallas_call(
        _geimgnet_kernel,
        out_shape=(
            jax.ShapeDtypeStruct((B, N), out_dtype),
            jax.ShapeDtypeStruct((B, N), out_dtype),
        ),
        grid_spec=pltpu.PrefetchScalarGridSpec(
            num_scalar_prefetch=0,
            grid=grid,
            in_specs=[
                pl.BlockSpec(memory_space=pltpu.MemorySpace.SMEM),  # alpha
                pl.BlockSpec((B, code_len), lambda j: (0, 0)),      # x (full)
                pl.BlockSpec((code_len, H1), lambda j: (0, 0)),     # w1 (full)
                pl.BlockSpec((1, H1), lambda j: (0, 0)),            # b1 (full)
                pl.BlockSpec((H1, tile_n), lambda j: (0, j)),       # w2 tile
                pl.BlockSpec((1, tile_n), lambda j: (0, j)),        # b2 tile
            ],
            out_specs=[
                pl.BlockSpec((B, tile_n), lambda j: (0, j)),        # hid tile
                pl.BlockSpec((B, tile_n), lambda j: (0, j)),        # code tile
            ],
        ),
        compiler_params=pltpu.CompilerParams(
            dimension_semantics=("parallel",),
            vmem_limit_bytes=vmem_limit_bytes),
    )(alpha_arr, x, w1, b1_2d, w2, b2_2d)

    return x, hid, code


def _init_params(key, code_len):
    """Deterministic synthetic parameters matching nn.Linear shapes, stored
    pre-transposed as (in, out).  The w2 bf16 cast and bias reshapes are done
    ONCE here (hoisted out of the per-call hot path)."""
    k1, k2, k3, k4 = jax.random.split(key, 4)
    scale1 = 1.0 / jnp.sqrt(code_len)
    scale2 = 1.0 / jnp.sqrt(512.0)
    w1 = jax.random.uniform(k1, (code_len, 512), jnp.float32, -scale1, scale1)
    b1 = jax.random.uniform(k2, (1, 512), jnp.float32, -scale1, scale1)
    w2 = jax.random.uniform(k3, (512, 4096), jnp.float32, -scale2, scale2)
    b2 = jax.random.uniform(k4, (1, 4096), jnp.float32, -scale2, scale2)
    # Persist the dominant weight stream in bf16 (the canonical precision for
    # this kernel).  TODO(synk): optional int8 (v5e/v6e) / fp8-e4m3 (v7x)
    # weight quantization with per-column scales would halve the stream again.
    return w1, b1, w2.astype(jnp.bfloat16), b2


if __name__ == "__main__":
    code_len = 32
    batch = 128   # multiple of 16 (bf16 sublane packing) and of the MXU M dim;
                  # amortizes the 4 MiB bf16 weight stream over the batch.

    key = jax.random.PRNGKey(0)
    kx, kp = jax.random.split(key)
    x = jax.random.normal(kx, (batch, code_len), jnp.float32)
    w1, b1, w2, b2 = _init_params(kp, code_len)

    alpha = 2.0 ** 0.5   # set_alpha(1); runtime SMEM scalar -> no recompile

    x_out, hid, code = geimgnet_forward(x, w1, b1, w2, b2, alpha=alpha)
    jax.block_until_ready((x_out, hid, code))

    # Reference in plain JAX using the same persisted bf16 weights
    # (f32 accumulation), to validate the kernel path.
    h1_ref = jnp.dot(x, w1, preferred_element_type=jnp.float32) + b1
    hid_ref = jnp.dot(h1_ref.astype(jnp.bfloat16), w2,
                      preferred_element_type=jnp.float32) + b2
    code_ref = jnp.maximum(alpha * hid_ref, 0.0)

    assert jnp.allclose(hid.astype(jnp.float32), hid_ref, atol=3e-2, rtol=3e-2)
    assert jnp.allclose(code.astype(jnp.float32), code_ref, atol=3e-2, rtol=3e-2)
    assert jnp.array_equal(x_out, x)

    print("KERNEL_OK")
</pallas_src>

<mosaic_0001>
module attributes {stable_mosaic.version = 11 : i64} {
  func.func @_geimgnet_kernel(%arg0: i32, %arg1: memref<1xf32, #tpu.memory_space<smem>>, %arg2: memref<128x32xf32, #tpu.memory_space<vmem>>, %arg3: memref<32x512xf32, #tpu.memory_space<vmem>>, %arg4: memref<1x512xf32, #tpu.memory_space<vmem>>, %arg5: memref<512x2048xbf16, #tpu.memory_space<vmem>>, %arg6: memref<1x2048xf32, #tpu.memory_space<vmem>>, %arg7: memref<128x2048xbf16, #tpu.memory_space<vmem>>, %arg8: memref<128x2048xbf16, #tpu.memory_space<vmem>>) attributes {dimension_semantics = [#tpu.dimension_semantics<parallel>], iteration_bounds = array<i64: 2>, scalar_prefetch = 0 : i64, scratch_operands = 0 : i64, tpu.core_type = #tpu.core_type<tc>, window_params = [{transform_indices = @transform_0, window_bounds = array<i64: 1>}, {pipeline_mode = #tpu.pipeline_mode<synchronous>, transform_indices = @transform_1, window_bounds = array<i64: 128, 32>}, {pipeline_mode = #tpu.pipeline_mode<synchronous>, transform_indices = @transform_2, window_bounds = array<i64: 32, 512>}, {pipeline_mode = #tpu.pipeline_mode<synchronous>, transform_indices = @transform_3, window_bounds = array<i64: 1, 512>}, {transform_indices = @transform_4, window_bounds = array<i64: 512, 2048>}, {transform_indices = @transform_5, window_bounds = array<i64: 1, 2048>}, {transform_indices = @transform_6, window_bounds = array<i64: 128, 2048>}, {transform_indices = @transform_7, window_bounds = array<i64: 128, 2048>}]} {
    %c0 = arith.constant 0 : index
    %c0_0 = arith.constant 0 : index
    %0 = vector.load %arg2[%c0, %c0_0] : memref<128x32xf32, #tpu.memory_space<vmem>>, vector<128x32xf32>
    %c0_1 = arith.constant 0 : index
    %c0_2 = arith.constant 0 : index
    %1 = vector.load %arg3[%c0_1, %c0_2] : memref<32x512xf32, #tpu.memory_space<vmem>>, vector<32x512xf32>
    %cst = arith.constant dense<0.000000e+00> : vector<128x512xf32>
    %2 = tpu.matmul %0, %1, %cst {dimension_numbers = #tpu.dot_dimension_numbers<[1], [0], [0], [1], [0, 0, 1, 1], [], []>} : vector<128x32xf32>, vector<32x512xf32>, vector<128x512xf32> -> vector<128x512xf32>
    %c0_3 = arith.constant 0 : index
    %c0_4 = arith.constant 0 : index
    %3 = vector.load %arg4[%c0_3, %c0_4] : memref<1x512xf32, #tpu.memory_space<vmem>>, vector<1x512xf32>
    %4 = vector.broadcast %3 : vector<1x512xf32> to vector<128x512xf32>
    %5 = arith.addf %2, %4 : vector<128x512xf32>
    %6 = arith.truncf %5 : vector<128x512xf32> to vector<128x512xbf16>
    %c0_5 = arith.constant 0 : index
    %c0_6 = arith.constant 0 : index
    %7 = vector.load %arg5[%c0_5, %c0_6] : memref<512x2048xbf16, #tpu.memory_space<vmem>>, vector<512x2048xbf16>
    %cst_7 = arith.constant dense<0.000000e+00> : vector<128x2048xf32>
    %8 = tpu.matmul %6, %7, %cst_7 {dimension_numbers = #tpu.dot_dimension_numbers<[1], [0], [0], [1], [0, 0, 1, 1], [], []>} : vector<128x512xbf16>, vector<512x2048xbf16>, vector<128x2048xf32> -> vector<128x2048xf32>
    %c0_8 = arith.constant 0 : index
    %c0_9 = arith.constant 0 : index
    %9 = vector.load %arg6[%c0_8, %c0_9] : memref<1x2048xf32, #tpu.memory_space<vmem>>, vector<1x2048xf32>
    %10 = vector.broadcast %9 : vector<1x2048xf32> to vector<128x2048xf32>
    %11 = arith.addf %8, %10 : vector<128x2048xf32>
    %12 = arith.truncf %11 : vector<128x2048xf32> to vector<128x2048xbf16>
    %c0_10 = arith.constant 0 : index
    %c0_11 = arith.constant 0 : index
    %13 = vector.load %arg7[%c0_10, %c0_11] : memref<128x2048xbf16, #tpu.memory_space<vmem>>, vector<128x2048xbf16>
    tpu.vector_store %arg7[%c0_10, %c0_11], %12 {strides = array<i32>} : memref<128x2048xbf16, #tpu.memory_space<vmem>>, vector<128x2048xbf16>,
    %c0_12 = arith.constant 0 : index
    %14 = memref.load %arg1[%c0_12] : memref<1xf32, #tpu.memory_space<smem>>
    %15 = vector.broadcast %14 : f32 to vector<128x2048xf32>
    %16 = arith.mulf %15, %11 : vector<128x2048xf32>
    %cst_13 = arith.constant 0.000000e+00 : f32
    %17 = vector.broadcast %cst_13 : f32 to vector<128x2048xf32>
    %18 = arith.maximumf %16, %17 : vector<128x2048xf32>
    %19 = arith.truncf %18 : vector<128x2048xf32> to vector<128x2048xbf16>
    %c0_14 = arith.constant 0 : index
    %c0_15 = arith.constant 0 : index
    %20 = vector.load %arg8[%c0_14, %c0_15] : memref<128x2048xbf16, #tpu.memory_space<vmem>>, vector<128x2048xbf16>
    tpu.vector_store %arg8[%c0_14, %c0_15], %19 {strides = array<i32>} : memref<128x2048xbf16, #tpu.memory_space<vmem>>, vector<128x2048xbf16>,
    return
  }
  func.func @transform_0(%arg0: i32) -> i32 {
    %c0_i32 = arith.constant 0 : i32
    %c0_i32_0 = arith.constant 0 : i32
    return %c0_i32 : i32
  }
  func.func @transform_1(%arg0: i32) -> (i32, i32) {
    %c0_i32 = arith.constant 0 : i32
    %c0_i32_0 = arith.constant 0 : i32
    %c0_i32_1 = arith.constant 0 : i32
    return %c0_i32, %c0_i32_0 : i32, i32
  }
  func.func @transform_2(%arg0: i32) -> (i32, i32) {
    %c0_i32 = arith.constant 0 : i32
    %c0_i32_0 = arith.constant 0 : i32
    %c0_i32_1 = arith.constant 0 : i32
    return %c0_i32, %c0_i32_0 : i32, i32
  }
  func.func @transform_3(%arg0: i32) -> (i32, i32) {
    %c0_i32 = arith.constant 0 : i32
    %c0_i32_0 = arith.constant 0 : i32
    %c0_i32_1 = arith.constant 0 : i32
    return %c0_i32, %c0_i32_0 : i32, i32
  }
  func.func @transform_4(%arg0: i32) -> (i32, i32) {
    %c0_i32 = arith.constant 0 : i32
    %c0_i32_0 = arith.constant 0 : i32
    return %c0_i32, %arg0 : i32, i32
  }
  func.func @transform_5(%arg0: i32) -> (i32, i32) {
    %c0_i32 = arith.constant 0 : i32
    %c0_i32_0 = arith.constant 0 : i32
    return %c0_i32, %arg0 : i32, i32
  }
  func.func @transform_6(%arg0: i32) -> (i32, i32) {
    %c0_i32 = arith.constant 0 : i32
    %c0_i32_0 = arith.constant 0 : i32
    return %c0_i32, %arg0 : i32, i32
  }
  func.func @transform_7(%arg0: i32) -> (i32, i32) {
    %c0_i32 = arith.constant 0 : i32
    %c0_i32_0 = arith.constant 0 : i32
    return %c0_i32, %arg0 : i32, i32
  }
}

</mosaic_0001>

<bundles_post_ra>
// kernel: tpu_custom_call.1
= control target key start
LH: loop header
LB: loop body
LE: loop exit
PB: predicated region body
PF: predicated region fallthrough
CT: control target
= control target key end

     0   :  { %s13453_s0 = inlined_call_operand.<no memory space> [shape: f32[1], index: 0, kind: input, shape index: {}]   ;;  %s13454_s1 = inlined_call_operand.vmem [shape: f32[128,32], index: 1, kind: input, shape index: {}]   ;;  %s13455_s2 = inlined_call_operand.hbm [shape: f32[32,512], index: 2, kind: input, shape index: {}]   ;;  %s13456_s3 = inlined_call_operand.hbm [shape: f32[1,512], index: 3, kind: input, shape index: {}]   ;;  %s13457_s4 = inlined_call_operand.hbm [shape: bf16[512,4096], index: 4, kind: input, shape index: {}]   ;;  %s13458_s5 = inlined_call_operand.hbm [shape: f32[1,4096], index: 5, kind: input, shape index: {}]   ;;  %s13459_s6 = inlined_call_operand.hbm [shape: bf16[128,4096], index: 6, kind: output, shape index: {0}]   ;;  %s13460_s7 = inlined_call_operand.hbm [shape: bf16[128,4096], index: 7, kind: output, shape index: {1}]  }
   0x1   :  { %13605 = sst [smem:[#allocation76_spill]] %s13455_s2 }
   0x2   :  { %13606 = sst [smem:[#allocation77_spill]] %s13457_s4 }
   0x3   :  { %13 = sst [smem:[#allocation2]] %s13453_s0 }
   0x4   :  { %14 = vsyncpa [#allocation4], 0 }
   0x5   :  { %15 = vsyncpa [#allocation7], 0 }
   0x6   :  { %16 = vsyncpa [#allocation5], 0 }
   0x7   :  { %18 = vsyncpa [#allocation5 + $0x1], 0 }
   0x8   :  { %19 = vsyncpa [#allocation12], 0 }
   0x9   :  { %21 = vsyncpa [#allocation12 + $0x1], 0  ;;  %s10262_s26 = smov 0   ;;  %s10264_s27 = smov 0  }
   0xa   :  { %s10266_s28 = smov 0   ;;  %s10268_s29 = smov 0  }
   0xb LB: > { %13607 = sst [smem:[#allocation18_spill]] %s10190_s26  ;;  %s10283_s0 = sadd.s32 4294967295, %s10202_s29   ;;  %s10202_s29 = sphi %s10268_s29, %s13888_s29   ;;  %s10198_s28 = sphi %s10266_s28, %s13892_s28   ;;  %s10194_s27 = sphi %s10264_s27, %s13891_s27   ;;  %s10190_s26 = sphi %s10262_s26, %s13890_s26  }
   0xc   : > { %s8279_s30 = sadd.s32 4294967294, %s10202_s29   ;;  %s10287_s8 = sadd.s32 1, %s10202_s29  }
   0xd   : > { %13608 = sst [smem:[#allocation19_spill]] %s10287_s8  ;;  %s118_s9 = sadd.s32 1, %s10198_s28 }
   0xe   : > { %s115_s10 = ssub.s32 %s10202_s29, %s10287_s8  ;;  %p125_p0 = scmp.ne.s32.totalorder %s10198_s28, %s10194_s27 }
   0xf   : > { %p116_p1 = scmp.eq.s32.totalorder %s115_s10, 0  ;;  %p126_p2 = scmp.eq.s32.totalorder %s10202_s29, 0 }
  0x10   : > { %p131_p3 = scmp.ne.s32.totalorder %s10194_s27, %s10190_s26  ;;  %p13461_p4 = scmp.eq.s32.totalorder %s10283_s0, 0 }
  0x11   : > { %s10299_s11 = scalar_select %p116_p1, %s10198_s28, %s118_s9  }
  0x12   : > { %p10301_p5 = por %p126_p2, %p125_p0  ;;  %p10307_p6 = por %p13461_p4, %p131_p3 }
  0x13   : > { %13609 = sst [smem:[#allocation20_spill]] %s10299_s11  ;;  %p181_p7 = scmp.eq.s32.totalorder %s10283_s0, 1 }
  0x14   : > { %s13610_s12 = scalar_select %p10301_p5, 1, 0 }
  0x15   : > { %s13611_s13 = scalar_select %p10307_p6, 1, 0 }
  0x16   : > { %p187_p8 = scmp.eq.s32.totalorder %s8279_s30, 1  ;;  %p8280_p9 = scmp.ge.s32.totalorder %s10202_s29, 1 }
  0x17   : > { %p220_p10 = scmp.lt.s32.totalorder %s10202_s29, 3  ;;  %p10314_p11 = por %p181_p7, %p125_p0 }
  0x18   : > { %p10318_p12 = por %p187_p8, %p131_p3  ;;  %s10204_s17 = smov [#allocation3]  }
  0x19   : > { %s13612_s14 = scalar_select %p10314_p11, 1, 0 }
  0x1a   : > { %s13613_s15 = scalar_select %p10318_p12, 1, 0 }
  0x1b   : > { %p10322_p13 = pnand %p8280_p9, %p220_p10  ;;  %s238_s18 = sshll.u32 %s10204_s17, 4  ;;  %s239_s18 = int_to_ptr.vmem [resolvable:$true] %s238_s18 }
  0x1c   : > { %13614 = sst [smem:[#allocation21_spill]] %s13613_s15  ;;  %s263_s20 = sand.u32 1, %s10202_s29  }
  0x1d   : > { %s13615_s16 = scalar_select %p10322_p13, 1, 0 }
  0x1e   : > { %p9909_p1 = pneg %p10322_p13  ;;  %s13617_s2 = sld [smem:[#allocation76_spill]] }
  0x20   : > { %p10330_p2 = pnand %p9909_p1, %p13461_p4 }
  0x22   : > { %p13467_p8 = pneg %p10330_p2 }
  0x24   : > { %s9980_s23 = scalar_lea.hbm %s13617_s2, 2048 }
  0x25   : > { %p9981_p7 = scmp.ne.s32.totalorder %s13617_s2, %s9980_s23  ;;  %p9987_p1 = scmp.lt.u32.totalorder %s9980_s23, %s13617_s2 }
  0x27   : > { %p9983_p9 = pnand %p13467_p8, %p9981_p7 }
  0x29   : > { %p9984_p10 = pneg %p9983_p9 }
  0x2b   : > { %p9989_p0 = pnand %p9987_p1, %p9984_p10 }
  0x2d   : > { %9992 = shalt.err (!%p9989_p0)
}
  0x2e   : > { %s9993_s10 = scalar_lea.vmem %s239_s18, 2048  ;;  %p10001_p11 = scmp.lt.s32.totalorder %s239_s18, %s239_s18 }
  0x2f   : > { %p9994_p4 = scmp.ne.s32.totalorder %s239_s18, %s9993_s10  ;;  %p10002_p6 = scmp.lt.s32.totalorder %s9993_s10, %s9993_s10 }
  0x31   : > { %p9996_p3 = pnand %p9994_p4, %p13467_p8  ;;  %p10003_p13 = por %p10002_p6, %p10001_p11 }
  0x33   : > { %p9997_p12 = pneg %p9996_p3 }
  0x35   : > { %p10004_p5 = pnand %p10003_p13, %p9997_p12 }
  0x37   : > { %10007 = shalt.err (!%p10004_p5)
}
  0x38   : > { %s10205_s17 = smov 512   ;;  %s10206_s21 = smov 32  }
  0x39   : > { %9912 = dma.hbm_to_vmem [thread:$0]  (!%p10330_p2), %s13617_s2, 2048, %s239_s18, [#allocation4], %s10205_s17, %s10205_s17, %s10206_s21  }
  0x3a   : > { %p13618_p4 = scmp.ne.s32.totalorder %s13610_s12, 0  ;;  %p13619_p0 = scmp.lt.s32.totalorder %s10202_s29, 2 }
  0x3b   : > { %s265_s25 = sand.u32 1, %s10198_s28   ;;  %s9105_s9 = sshll.u32 %s10202_s29, 10 }
  0x3c   : > { %p10363_p3 = pnand %p13619_p0, %p13618_p4  ;;  %s8284_s30 = sshll.u32 %s265_s25, 12 }
  0x3d   : > { %s13621_s4 = sld [smem:[#allocation77_spill]]  ;;  %s267_s12 = scalar_lea.vmem [#allocation8], %s8284_s30 }
  0x3e   : > { %s13620_s24 = scalar_select %p10363_p3, 1, 0 }
  0x3f   : > { %s274_s18 = sshll.u32 %s267_s12, 4  ;;  %s10378_s17 = scalar_lea.sflag [#allocation4], %s263_s20  ;;  %s10376_s18 = int_to_ptr.vmem [resolvable:$true] %s274_s18 }
  0x40   : > { %p13470_p6 = pneg %p10363_p3 }
  0x43   : > { %s10374_s8 = scalar_lea.hbm %s13621_s4, %s9105_s9  ;;  %s10013_s23 = scalar_lea.hbm %s13621_s4, 131072 }
  0x44   : > { %s10008_s21 = scalar_lea.hbm %s10374_s8, 65536  ;;  %p10014_p13 = scmp.lt.u32.totalorder %s10374_s8, %s13621_s4 }
  0x45   : > { %p10009_p5 = scmp.ne.s32.totalorder %s10374_s8, %s10008_s21  ;;  %p10015_p7 = scmp.lt.u32.totalorder %s10013_s23, %s10008_s21 }
  0x46   : > { %p10017_p10 = scmp.lt.u32.totalorder %s10008_s21, %s10374_s8 }
  0x47   : > { %p10011_p11 = pnand %p13470_p6, %p10009_p5  ;;  %p10016_p9 = por %p10015_p7, %p10014_p13 }
  0x49   : > { %p10012_p12 = pneg %p10011_p11  ;;  %p10018_p1 = por %p10017_p10, %p10016_p9 }
  0x4b   : > { %p10019_p4 = pnand %p10018_p1, %p10012_p12 }
  0x4d   : > { %10022 = shalt.err (!%p10019_p4)
}
  0x4e   : > { %s10023_s20 = scalar_lea.vmem %s10376_s18, 65536  ;;  %s10207_s30 = smov [#allocation8]  }
  0x4f   : > { %p10024_p0 = scmp.ne.s32.totalorder %s10376_s18, %s10023_s20  ;;  %s10028_s12 = sshll.u32 %s10207_s30, 4  ;;  %s10029_s12 = int_to_ptr.vmem [resolvable:$false] %s10028_s12 }
  0x50   : > { %s10030_s11 = scalar_lea.vmem %s10029_s12, 131072  ;;  %p10031_p8 = scmp.lt.s32.totalorder %s10376_s18, %s10029_s12 }
  0x51   : > { %p10026_p5 = pnand %p10024_p0, %p13470_p6  ;;  %p10032_p13 = scmp.lt.s32.totalorder %s10030_s11, %s10023_s20 }
  0x53   : > { %p10027_p11 = pneg %p10026_p5  ;;  %p10033_p7 = por %p10032_p13, %p10031_p8 }
  0x55   : > { %p10034_p9 = pnand %p10033_p7, %p10027_p11 }
  0x57   : > { %10037 = shalt.err (!%p10034_p9)
}
  0x58   : > { %s10208_s21 = smov 2048   ;;  %s10209_s22 = smov 1024  }
  0x59   : > { %s10210_s23 = smov 64   ;;  %s8287_s9 = sshll.u32 %s265_s25, 4 }
  0x5a   : > { %9919 = dma.hbm_to_vmem [thread:$0]  (!%p10363_p3), %s10374_s8, 65536, %s10376_s18, %s10378_s17, %s10208_s21, %s10209_s22, %s10210_s23  }
  0x5b   : > { %s10211_s10 = smov [#allocation6]   ;;  %s9106_s20 = sshll.u32 %s10202_s29, 8 }
  0x5c   : > { %s252_s30 = sshll.u32 %s10211_s10, 4  ;;  %s10038_s2 = scalar_lea.hbm %s13456_s3, 64  ;;  %s253_s30 = int_to_ptr.vmem [resolvable:$true] %s252_s30 }
  0x5d   : > { %p10039_p8 = scmp.ne.s32.totalorder %s13456_s3, %s10038_s2  ;;  %p13622_p12 = pneg %p10330_p2 }
  0x5e   : > { %p10045_p4 = scmp.lt.u32.totalorder %s10038_s2, %s13456_s3 }
  0x5f   : > { %p10041_p10 = pnand %p10039_p8, %p13622_p12 }
  0x61   : > { %p10042_p1 = pneg %p10041_p10 }
  0x63   : > { %p10047_p0 = pnand %p10045_p4, %p10042_p1 }
  0x65   : > { %10050 = shalt.err (!%p10047_p0)
}
  0x66   : > { %s10051_s25 = scalar_lea.vmem %s253_s30, 64  ;;  %p13623_p11 = pmov %p13622_p12 }
  0x67   : > { %p10052_p5 = scmp.ne.s32.totalorder %s253_s30, %s10051_s25  ;;  %p10059_p9 = scmp.lt.s32.totalorder %s253_s30, %s253_s30 }
  0x68   : > { %p10060_p6 = scmp.lt.s32.totalorder %s10051_s25, %s10051_s25 }
  0x69   : > { %p10054_p13 = pnand %p10052_p5, %p13623_p11 }
  0x6a   : > { %p10061_p3 = por %p10060_p6, %p10059_p9 }
  0x6b   : > { %p10055_p7 = pneg %p10054_p13 }
  0x6d   : > { %p10062_p8 = pnand %p10061_p3, %p10055_p7 }
  0x6f   : > { %10065 = shalt.err (!%p10062_p8)
}
  0x70   : > { %9915 = dma.hbm_to_vmem [thread:$0]  (!%p10330_p2), %s13456_s3, 64, %s253_s30, [#allocation7]  }
  0x71   : > { %s10432_s18 = scalar_lea.hbm %s13458_s5, %s9106_s20  ;;  %s288_s21 = scalar_lea.vmem [#allocation9], %s8287_s9 }
  0x72   : > { %s296_s22 = sshll.u32 %s288_s21, 4  ;;  %s10066_s23 = scalar_lea.hbm %s10432_s18, 256  ;;  %s297_s22 = int_to_ptr.vmem [resolvable:$true] %s296_s22 }
  0x73   : > { %p10067_p3 = scmp.ne.s32.totalorder %s10432_s18, %s10066_s23  ;;  %p13624_p6 = scmp.ne.s32.totalorder %s13620_s24, 0 }
  0x74   : > { %s10071_s30 = scalar_lea.hbm %s13458_s5, 512  ;;  %p10072_p2 = scmp.lt.u32.totalorder %s10432_s18, %s13458_s5 }
  0x75   : > { %p13625_p12 = pneg %p13624_p6  ;;  %p10073_p4 = scmp.lt.u32.totalorder %s10071_s30, %s10066_s23 }
  0x76   : > { %p10075_p5 = scmp.lt.u32.totalorder %s10066_s23, %s10432_s18 }
  0x77   : > { %p10069_p10 = pnand %p10067_p3, %p13625_p12  ;;  %p10074_p0 = por %p10073_p4, %p10072_p2 }
  0x79   : > { %p10070_p1 = pneg %p10069_p10  ;;  %p10076_p11 = por %p10075_p5, %p10074_p0 }
  0x7b   : > { %p10077_p13 = pnand %p10076_p11, %p10070_p1 }
  0x7d   : > { %10080 = shalt.err (!%p10077_p13)
}
  0x7e   : > { %s10081_s9 = scalar_lea.vmem %s297_s22, 256  ;;  %p13626_p9 = pmov %p13625_p12 }
  0x7f   : > { %p10082_p7 = scmp.ne.s32.totalorder %s297_s22, %s10081_s9  ;;  %s10212_s11 = smov [#allocation9]  }
  0x80   : > { %s10086_s8 = sshll.u32 %s10212_s11, 4  ;;  %s10087_s8 = int_to_ptr.vmem [resolvable:$false] %s10086_s8 }
  0x81   : > { %p10084_p8 = pnand %p10082_p7, %p13626_p9  ;;  %s10088_s25 = scalar_lea.vmem %s10087_s8, 512 }
  0x82   : > { %p10089_p12 = scmp.lt.s32.totalorder %s297_s22, %s10087_s8  ;;  %p10090_p10 = scmp.lt.s32.totalorder %s10088_s25, %s10081_s9 }
  0x83   : > { %p10085_p3 = pneg %p10084_p8 }
  0x84   : > { %p10091_p2 = por %p10090_p10, %p10089_p12 }
  0x86   : > { %p10092_p4 = pnand %p10091_p2, %p10085_p3 }
  0x88   : > { %10095 = shalt.err (!%p10092_p4)
}
  0x89   : > { %9922 = dma.hbm_to_vmem [thread:$0]  (!%p13624_p6), %s10432_s18, 256, %s297_s22, %s10378_s17  }
  0x8a   : > { %p13627_p1 = scmp.ne.s32.totalorder %s13615_s16, 0 }
  0x8c   : > { %305 = sbr.rel (%p13627_p1) target bundleno = 1193 (0x4a9), region = 44 }
  0x93   : > { %p13628_p0 = scmp.eq.s32.totalorder %s10283_s0, 0 }
  0x95   : > { %10169 = dma.done.wait (%p13628_p0), [#allocation4], 2048   ;;  %p13629_p5 = pmov %p13628_p0 }
  0x96   : > { %p13630_p11 = pmov %p13628_p0 }
  0x97   : > { %10171 = vsyncadd (%p13629_p5), [#allocation4], 4294965248 }
  0x98   : > { %10173 = dma.done.wait (%p13630_p11), [#allocation7], 64   ;;  %p13631_p13 = pmov %p13628_p0 }
  0x99   : > { %s315_s24 = sand.u32 1, %s10283_s0   ;;  %s10466_s17 = sand.u32 1, %s10194_s27  }
  0x9a   : > { %10175 = vsyncadd (%p13631_p13), [#allocation7], 4294967232  ;;  %s8293_s16 = sshll.u32 %s10466_s17, 12  ;;  %s316_s4 = scalar_lea.sflag [#allocation4], %s315_s24 }
  0x9b   : > { %s10469_s15 = scalar_lea.vmem [#allocation8], %s8293_s16  ;;  %p13632_p6 = scmp.ne.s32.totalorder %s13611_s13, 0 }
  0x9d   : > { %10177 = dma.done.wait (%p13632_p6), %s316_s4, 65792  }
  0x9e   : > { %10179 = vsyncadd (%p13632_p6), %s316_s4, 4294901504  ;;  %v10213_v0 = vmov 0.0   ;;  %v390_v1 = vld [vmem:[#allocation3 + $0x8] sm:$0xff]  ;;  %v389_v3 = vld [vmem:[#allocation3] sm:$0xff]  ;;  %vm427_vm0 = vcmask 261120   ;;  %s8294_s11 = sshll.u32 %s10466_s17, 4 }
  0x9f   : > { %540 = vmatprep.mubr.f32.mxu0 %v10213_v0  ;;  %701 = vmatprep.mubr.f32.mxu1 %v10213_v0  ;;  %v394_v2 = vld [vmem:[#allocation3 + $0x28] sm:$0xff]  ;;  %v393_v5 = vld [vmem:[#allocation3 + $0x20] sm:$0xff]  ;;  %v392_v14 = vld [vmem:[#allocation3 + $0x18] sm:$0xff]  ;;  %s11304_s8 = scalar_lea.vmem [#allocation9], %s8294_s11  ;;  %s11526_s25 = sld [smem:[#allocation2]] }
  0xa0   : > { %v9365_v4 = vpack.c.bf16 %v394_v2, %v390_v1  ;;  %v398_v6 = vld [vmem:[#allocation3 + $0x48] sm:$0xff]  ;;  %v9367_v8 = vpack.c.bf16 %v393_v5, %v389_v3  ;;  %v397_v10 = vld [vmem:[#allocation3 + $0x40] sm:$0xff]  ;;  %v396_v15 = vld [vmem:[#allocation3 + $0x38] sm:$0xff]  ;;  %s8295_s24 = sshll.u32 %s10466_s17, 10  ;;  %s8101_s22 = scalar_lea.sflag [#allocation5], %s10466_s17 }
  0xa1   : > { %v402_v7 = vld [vmem:[#allocation3 + $0x68] sm:$0xff]  ;;  %v401_v11 = vld [vmem:[#allocation3 + $0x60] sm:$0xff]  ;;  %v9373_v16 = vpack.c.bf16 %v396_v15, %v392_v14  ;;  %v391_v17 = vld [vmem:[#allocation3 + $0x10] sm:$0xff]  ;;  %s11718_s16 = scalar_lea.vmem [#allocation10], %s8295_s24  ;;  %s11754_s4 = scalar_lea.vmem [#allocation11], %s8295_s24 }
  0xa2   : > { %v9369_v9 = vpack.c.bf16 %v402_v7, %v398_v6  ;;  %9366 = vmatprep.subr.bf16.mxu0 %v9365_v4  ;;  %v9371_v12 = vpack.c.bf16 %v401_v11, %v397_v10  ;;  %v373_v13 = vld [vmem:[%s13454_s1] sm:$0xff]  ;;  %v395_v18 = vld [vmem:[#allocation3 + $0x30] sm:$0xff]  ;;  %v400_v19 = vld [vmem:[#allocation3 + $0x58] sm:$0xff]  ;;  %s8119_s13 = sshll.u32 %s11718_s16, 4  ;;  %s8135_s21 = sshll.u32 %s11754_s4, 4  ;;  %s13360_s13 = int_to_ptr.vmem [resolvable:$true] %s8119_s13  ;;  %s13404_s21 = int_to_ptr.vmem [resolvable:$true] %s8135_s21 }
  0xa3   : > { %9368 = vmatpush1.bf16.msra.mxu0 %v9367_v8  ;;  %v9375_v20 = vpack.c.bf16 %v395_v18, %v391_v17  ;;  %v404_v21 = vld [vmem:[#allocation3 + $0x78] sm:$0xff]  ;;  %v399_v22 = vld [vmem:[#allocation3 + $0x50] sm:$0xff]  ;;  %9374 = vmatprep.subr.bf16.mxu1 %v9373_v16  ;;  %v830_v25 = vld [vmem:[%s10469_s15] sm:$0xff]  ;;  %s10096_s23 = scalar_lea.vmem %s13360_s13, 16384  ;;  %p13883_p9 = scmp.ne.s32.totalorder %s13612_s14, 0 }
  0xa4   : > { %9370 = vmatprep.subr.bf16.mxu0 %v9369_v9  ;;  %v9377_v23 = vpack.c.bf16 %v404_v21, %v400_v19  ;;  %v403_v24 = vld [vmem:[#allocation3 + $0x70] sm:$0xff]  ;;  %v838_v27 = vld [vmem:[%s10469_s15 + $0x40] sm:$0xff]  ;;  %v376_v50 = vld [vmem:[%s13454_s1 + $0x18] sm:$0xff]  ;;  %p10097_p7 = scmp.ne.s32.totalorder %s13360_s13, %s10096_s23  ;;  %s10214_s19 = smov [#allocation10]  }
  0xa5   : > { %9376 = vmatpush1.bf16.msra.mxu1 %v9375_v20  ;;  %v9379_v26 = vpack.c.bf16 %v403_v24, %v399_v22  ;;  %v831_v28 = vld [vmem:[%s10469_s15 + $0x8] sm:$0xff]  ;;  %v8330_v31 = vcombine.high %v830_v25, %v838_v27  ;;  %v846_v32 = vld [vmem:[%s10469_s15 + $0x80] sm:$0xff]  ;;  %v8329_v34 = vcombine.low %v830_v25, %v838_v27  ;;  %s10100_s10 = sshll.u32 %s10214_s19, 4  ;;  %s10101_s10 = int_to_ptr.vmem [resolvable:$false] %s10100_s10 }
  0xa6   : > { %v839_v29 = vld [vmem:[%s10469_s15 + $0x48] sm:$0xff]  ;;  %9378 = vmatprep.subr.bf16.mxu1 %v9377_v23  ;;  %v854_v33 = vld [vmem:[%s10469_s15 + $0xc0] sm:$0xff]  ;;  %v380_v23 = vld [vmem:[%s13454_s1 + $0x38] sm:$0xff]  ;;  %p10098_p8 = pnand %p10097_p7, %p13883_p9  ;;  %s10102_s30 = scalar_lea.vmem %s10101_s10, 32768 }
  0xa7   : > { %9372 = vmatpush1.bf16.msra.mxu0 %v9371_v12  ;;  %v374_v30 = vld [vmem:[%s13454_s1 + $0x8] sm:$0xff]  ;;  %v8332_v35 = vcombine.high %v831_v28, %v839_v29  ;;  %v8346_v36 = vcombine.high %v846_v32, %v854_v33  ;;  %v375_v41 = vld [vmem:[%s13454_s1 + $0x10] sm:$0xff]  ;;  %v8331_v42 = vcombine.low %v831_v28, %v839_v29  ;;  %v8345_v43 = vcombine.low %v846_v32, %v854_v33  ;;  %v377_v59 = vld [vmem:[%s13454_s1 + $0x20] sm:$0xff]  ;;  %p10103_p12 = scmp.lt.s32.totalorder %s13360_s13, %s10101_s10  ;;  %p10104_p10 = scmp.lt.s32.totalorder %s10102_s30, %s10096_s23 }
  0xa8   : > { %3986 = vmatprep.subr.bf16.mxu0 %v8330_v31  ;;  %v847_v37 = vld [vmem:[%s10469_s15 + $0x88] sm:$0xff]  ;;  %v862_v39 = vld [vmem:[%s10469_s15 + $0x100] sm:$0xff]  ;;  %p10099_p3 = pneg %p10098_p8 }
  0xa9   : > { %v855_v38 = vld [vmem:[%s10469_s15 + $0xc8] sm:$0xff]  ;;  %9380 = vmatpush1.bf16.msra.mxu1 %v9379_v26  ;;  %v870_v40 = vld [vmem:[%s10469_s15 + $0x140] sm:$0xff]  ;;  %p10105_p2 = por %p10104_p10, %p10103_p12 }
  0xaa   : > { %8297 = vmatmul.mubr.msk.f32.vlgmr.msra.gmra.mrb[0].mxu0 %vm427_vm0, %v373_v13  ;;  %4212 = vmatprep.subr.bf16.mxu1 %v8332_v35  ;;  %v8348_v44 = vcombine.high %v847_v37, %v855_v38  ;;  %v8362_v45 = vcombine.high %v862_v39, %v870_v40  ;;  %v863_v46 = vld [vmem:[%s10469_s15 + $0x108] sm:$0xff]  ;;  %v878_v48 = vld [vmem:[%s10469_s15 + $0x180] sm:$0xff]  ;;  %v8347_v51 = vcombine.low %v847_v37, %v855_v38 }
  0xab   : > { %546 = vmatprep.mubr.f32.mxu0 %v10213_v0  ;;  %3987 = vmatpush1.bf16.msra.mxu0 %v8329_v34  ;;  %v871_v47 = vld [vmem:[%s10469_s15 + $0x148] sm:$0xff]  ;;  %v886_v49 = vld [vmem:[%s10469_s15 + $0x1c0] sm:$0xff]  ;;  %v8361_v52 = vcombine.low %v862_v39, %v870_v40  ;;  %p10106_p4 = pnand %p10105_p2, %p10099_p3 }
  0xac   : > { %8313 = vmatmul.mubr.msk.f32.vlgmr.msra.gmra.mrb[0].mxu1 %vm427_vm0, %v373_v13  ;;  %3988 = vmatprep.subr.bf16.mxu0 %v8346_v36  ;;  %v8364_v53 = vcombine.high %v863_v46, %v871_v47  ;;  %v8378_v54 = vcombine.high %v878_v48, %v886_v49  ;;  %v879_v55 = vld [vmem:[%s10469_s15 + $0x188] sm:$0xff]  ;;  %v894_v57 = vld [vmem:[%s10469_s15 + $0x200] sm:$0xff]  ;;  %v8363_v60 = vcombine.low %v863_v46, %v871_v47 }
  0xad   : > { %707 = vmatprep.mubr.f32.mxu1 %v10213_v0  ;;  %4213 = vmatpush1.bf16.msra.mxu1 %v8331_v42  ;;  %v887_v56 = vld [vmem:[%s10469_s15 + $0x1c8] sm:$0xff]  ;;  %v902_v58 = vld [vmem:[%s10469_s15 + $0x240] sm:$0xff]  ;;  %v8377_v61 = vcombine.low %v878_v48, %v886_v49 }
  0xae   : > { %8298 = vmatmul.mubr.msk.f32.gmra.mrb[2].mxu0 %vm427_vm0, %v374_v30  ;;  %4214 = vmatprep.subr.bf16.mxu1 %v8348_v44  ;;  %v8380_v62 = vcombine.high %v879_v55, %v887_v56  ;;  %v8394_v63 = vcombine.high %v894_v57, %v902_v58  ;;  %v895_v1 = vld [vmem:[%s10469_s15 + $0x208] sm:$0xff]  ;;  %v910_v3 = vld [vmem:[%s10469_s15 + $0x280] sm:$0xff]  ;;  %v8379_v6 = vcombine.low %v879_v55, %v887_v56 }
  0xaf   : > { %552 = vmatprep.mubr.f32.mxu0 %v10213_v0  ;;  %3989 = vmatpush1.bf16.msra.mxu0 %v8345_v43  ;;  %v903_v2 = vld [vmem:[%s10469_s15 + $0x248] sm:$0xff]  ;;  %v918_v4 = vld [vmem:[%s10469_s15 + $0x2c0] sm:$0xff]  ;;  %v8393_v7 = vcombine.low %v894_v57, %v902_v58 }
  0xb0   : > { %8314 = vmatmul.mubr.msk.f32.gmra.mrb[2].mxu1 %vm427_vm0, %v374_v30  ;;  %3990 = vmatprep.subr.bf16.mxu0 %v8362_v45  ;;  %v378_v5 = vld [vmem:[%s13454_s1 + $0x28] sm:$0xff]  ;;  %v8396_v8 = vcombine.high %v895_v1, %v903_v2  ;;  %v8410_v9 = vcombine.high %v910_v3, %v918_v4  ;;  %v379_v14 = vld [vmem:[%s13454_s1 + $0x30] sm:$0xff]  ;;  %v8395_v15 = vcombine.low %v895_v1, %v903_v2  ;;  %v381_v32 = vld [vmem:[%s13454_s1 + $0x40] sm:$0xff] }
  0xb1   : > { %713 = vmatprep.mubr.f32.mxu1 %v10213_v0  ;;  %4215 = vmatpush1.bf16.msra.mxu1 %v8347_v51  ;;  %v911_v10 = vld [vmem:[%s10469_s15 + $0x288] sm:$0xff]  ;;  %v926_v12 = vld [vmem:[%s10469_s15 + $0x300] sm:$0xff]  ;;  %v8409_v16 = vcombine.low %v910_v3, %v918_v4 }
  0xb2   : > { %8299 = vmatmul.mubr.msk.f32.gmra.mrb[4].mxu0 %vm427_vm0, %v375_v41  ;;  %4216 = vmatprep.subr.bf16.mxu1 %v8364_v53  ;;  %v919_v11 = vld [vmem:[%s10469_s15 + $0x2c8] sm:$0xff]  ;;  %v934_v13 = vld [vmem:[%s10469_s15 + $0x340] sm:$0xff] }
  0xb3   : > { %558 = vmatprep.mubr.f32.mxu0 %v10213_v0  ;;  %3991 = vmatpush1.bf16.msra.mxu0 %v8361_v52  ;;  %v8412_v17 = vcombine.high %v911_v10, %v919_v11  ;;  %v8426_v18 = vcombine.high %v926_v12, %v934_v13  ;;  %v927_v19 = vld [vmem:[%s10469_s15 + $0x308] sm:$0xff]  ;;  %v942_v21 = vld [vmem:[%s10469_s15 + $0x380] sm:$0xff]  ;;  %v8411_v24 = vcombine.low %v911_v10, %v919_v11 }
  0xb4   : > { %8315 = vmatmul.mubr.msk.f32.gmra.mrb[4].mxu1 %vm427_vm0, %v375_v41  ;;  %3992 = vmatprep.subr.bf16.mxu0 %v8378_v54  ;;  %v935_v20 = vld [vmem:[%s10469_s15 + $0x348] sm:$0xff]  ;;  %v950_v22 = vld [vmem:[%s10469_s15 + $0x3c0] sm:$0xff]  ;;  %v8425_v25 = vcombine.low %v926_v12, %v934_v13 }
  0xb5   : > { %719 = vmatprep.mubr.f32.mxu1 %v10213_v0  ;;  %4217 = vmatpush1.bf16.msra.mxu1 %v8363_v60  ;;  %v8428_v26 = vcombine.high %v927_v19, %v935_v20  ;;  %v8442_v27 = vcombine.high %v942_v21, %v950_v22  ;;  %v943_v28 = vld [vmem:[%s10469_s15 + $0x388] sm:$0xff]  ;;  %v958_v30 = vld [vmem:[%s10469_s15 + $0x400] sm:$0xff]  ;;  %v8427_v33 = vcombine.low %v927_v19, %v935_v20 }
  0xb6   : > { %8300 = vmatmul.mubr.msk.f32.gmra.mrb[6].mxu0 %vm427_vm0, %v376_v50  ;;  %4218 = vmatprep.subr.bf16.mxu1 %v8380_v62  ;;  %v951_v29 = vld [vmem:[%s10469_s15 + $0x3c8] sm:$0xff]  ;;  %v966_v31 = vld [vmem:[%s10469_s15 + $0x440] sm:$0xff]  ;;  %v8441_v34 = vcombine.low %v942_v21, %v950_v22 }
  0xb7   : > { %564 = vmatprep.mubr.f32.mxu0 %v10213_v0  ;;  %3993 = vmatpush1.bf16.msra.mxu0 %v8377_v61  ;;  %v8444_v35 = vcombine.high %v943_v28, %v951_v29  ;;  %v8458_v36 = vcombine.high %v958_v30, %v966_v31  ;;  %v959_v37 = vld [vmem:[%s10469_s15 + $0x408] sm:$0xff]  ;;  %v974_v39 = vld [vmem:[%s10469_s15 + $0x480] sm:$0xff]  ;;  %v8443_v42 = vcombine.low %v943_v28, %v951_v29 }
  0xb8   : > { %8316 = vmatmul.mubr.msk.f32.gmra.mrb[6].mxu1 %vm427_vm0, %v376_v50  ;;  %3994 = vmatprep.subr.bf16.mxu0 %v8394_v63  ;;  %v967_v38 = vld [vmem:[%s10469_s15 + $0x448] sm:$0xff]  ;;  %v982_v40 = vld [vmem:[%s10469_s15 + $0x4c0] sm:$0xff]  ;;  %v8457_v43 = vcombine.low %v958_v30, %v966_v31 }
  0xb9   : > { %725 = vmatprep.mubr.f32.mxu1 %v10213_v0  ;;  %4219 = vmatpush1.bf16.msra.mxu1 %v8379_v6  ;;  %v382_v41 = vld [vmem:[%s13454_s1 + $0x48] sm:$0xff]  ;;  %v8460_v44 = vcombine.high %v959_v37, %v967_v38  ;;  %v8474_v45 = vcombine.high %v974_v39, %v982_v40  ;;  %v383_v50 = vld [vmem:[%s13454_s1 + $0x50] sm:$0xff]  ;;  %v8459_v51 = vcombine.low %v959_v37, %v967_v38 }
  0xba   : > { %8301 = vmatmul.mubr.msk.f32.gmra.mrb[8].mxu0 %vm427_vm0, %v377_v59  ;;  %4220 = vmatprep.subr.bf16.mxu1 %v8396_v8  ;;  %v975_v46 = vld [vmem:[%s10469_s15 + $0x488] sm:$0xff]  ;;  %v990_v48 = vld [vmem:[%s10469_s15 + $0x500] sm:$0xff]  ;;  %v8473_v52 = vcombine.low %v974_v39, %v982_v40 }
  0xbb   : > { %570 = vmatprep.mubr.f32.mxu0 %v10213_v0  ;;  %3995 = vmatpush1.bf16.msra.mxu0 %v8393_v7  ;;  %v983_v47 = vld [vmem:[%s10469_s15 + $0x4c8] sm:$0xff]  ;;  %v998_v49 = vld [vmem:[%s10469_s15 + $0x540] sm:$0xff] }
  0xbc   : > { %8317 = vmatmul.mubr.msk.f32.gmra.mrb[8].mxu1 %vm427_vm0, %v377_v59  ;;  %3996 = vmatprep.subr.bf16.mxu0 %v8410_v9  ;;  %v8476_v53 = vcombine.high %v975_v46, %v983_v47  ;;  %v8490_v54 = vcombine.high %v990_v48, %v998_v49  ;;  %v991_v55 = vld [vmem:[%s10469_s15 + $0x508] sm:$0xff]  ;;  %v1006_v57 = vld [vmem:[%s10469_s15 + $0x580] sm:$0xff]  ;;  %v384_v59 = vld [vmem:[%s13454_s1 + $0x58] sm:$0xff]  ;;  %v8475_v60 = vcombine.low %v975_v46, %v983_v47 }
  0xbd   : > { %731 = vmatprep.mubr.f32.mxu1 %v10213_v0  ;;  %4221 = vmatpush1.bf16.msra.mxu1 %v8395_v15  ;;  %v999_v56 = vld [vmem:[%s10469_s15 + $0x548] sm:$0xff]  ;;  %v1014_v58 = vld [vmem:[%s10469_s15 + $0x5c0] sm:$0xff]  ;;  %v8489_v61 = vcombine.low %v990_v48, %v998_v49 }
  0xbe   : > { %8302 = vmatmul.mubr.msk.f32.gmra.mrb[10].mxu0 %vm427_vm0, %v378_v5  ;;  %4222 = vmatprep.subr.bf16.mxu1 %v8412_v17  ;;  %v8492_v62 = vcombine.high %v991_v55, %v999_v56  ;;  %v8506_v63 = vcombine.high %v1006_v57, %v1014_v58  ;;  %v1007_v1 = vld [vmem:[%s10469_s15 + $0x588] sm:$0xff]  ;;  %v1022_v3 = vld [vmem:[%s10469_s15 + $0x600] sm:$0xff]  ;;  %v8491_v6 = vcombine.low %v991_v55, %v999_v56 }
  0xbf   : > { %576 = vmatprep.mubr.f32.mxu0 %v10213_v0  ;;  %3997 = vmatpush1.bf16.msra.mxu0 %v8409_v16  ;;  %v1015_v2 = vld [vmem:[%s10469_s15 + $0x5c8] sm:$0xff]  ;;  %v1030_v4 = vld [vmem:[%s10469_s15 + $0x640] sm:$0xff]  ;;  %v8505_v7 = vcombine.low %v1006_v57, %v1014_v58 }
  0xc0   : > { %8318 = vmatmul.mubr.msk.f32.gmra.mrb[10].mxu1 %vm427_vm0, %v378_v5  ;;  %3998 = vmatprep.subr.bf16.mxu0 %v8426_v18  ;;  %v385_v5 = vld [vmem:[%s13454_s1 + $0x60] sm:$0xff]  ;;  %v8508_v8 = vcombine.high %v1007_v1, %v1015_v2  ;;  %v8522_v9 = vcombine.high %v1022_v3, %v1030_v4  ;;  %v1023_v10 = vld [vmem:[%s10469_s15 + $0x608] sm:$0xff]  ;;  %v8507_v15 = vcombine.low %v1007_v1, %v1015_v2 }
  0xc1   : > { %737 = vmatprep.mubr.f32.mxu1 %v10213_v0  ;;  %4223 = vmatpush1.bf16.msra.mxu1 %v8411_v24  ;;  %v1031_v11 = vld [vmem:[%s10469_s15 + $0x648] sm:$0xff]  ;;  %v1038_v12 = vld [vmem:[%s10469_s15 + $0x680] sm:$0xff]  ;;  %v8521_v16 = vcombine.low %v1022_v3, %v1030_v4 }
  0xc2   : > { %8303 = vmatmul.mubr.msk.f32.gmra.mrb[12].mxu0 %vm427_vm0, %v379_v14  ;;  %4224 = vmatprep.subr.bf16.mxu1 %v8428_v26  ;;  %v1046_v13 = vld [vmem:[%s10469_s15 + $0x6c0] sm:$0xff]  ;;  %v8524_v17 = vcombine.high %v1023_v10, %v1031_v11  ;;  %v1039_v19 = vld [vmem:[%s10469_s15 + $0x688] sm:$0xff]  ;;  %v8523_v22 = vcombine.low %v1023_v10, %v1031_v11 }
  0xc3   : > { %582 = vmatprep.mubr.f32.mxu0 %v10213_v0  ;;  %3999 = vmatpush1.bf16.msra.mxu0 %v8425_v25  ;;  %v8538_v18 = vcombine.high %v1038_v12, %v1046_v13  ;;  %v1047_v20 = vld [vmem:[%s10469_s15 + $0x6c8] sm:$0xff]  ;;  %v388_v25 = vld [vmem:[%s13454_s1 + $0x78] sm:$0xff]  ;;  %v1062_v28 = vld [vmem:[%s10469_s15 + $0x740] sm:$0xff] }
  0xc4   : > { %8319 = vmatmul.mubr.msk.f32.gmra.mrb[12].mxu1 %vm427_vm0, %v379_v14  ;;  %4000 = vmatprep.subr.bf16.mxu0 %v8442_v27  ;;  %v386_v14 = vld [vmem:[%s13454_s1 + $0x68] sm:$0xff]  ;;  %v387_v21 = vld [vmem:[%s13454_s1 + $0x70] sm:$0xff]  ;;  %v8540_v24 = vcombine.high %v1039_v19, %v1047_v20  ;;  %v8539_v26 = vcombine.low %v1039_v19, %v1047_v20 }
  0xc5   : > { %743 = vmatprep.mubr.f32.mxu1 %v10213_v0  ;;  %4225 = vmatpush1.bf16.msra.mxu1 %v8427_v33  ;;  %v1054_v27 = vld [vmem:[%s10469_s15 + $0x700] sm:$0xff]  ;;  %v1055_v29 = vld [vmem:[%s10469_s15 + $0x708] sm:$0xff] }
  0xc6   : > { %8304 = vmatmul.mubr.msk.f32.gmra.mrb[14].mxu0 %vm427_vm0, %v380_v23  ;;  %4226 = vmatprep.subr.bf16.mxu1 %v8444_v35  ;;  %v8554_v30 = vcombine.high %v1054_v27, %v1062_v28  ;;  %v1063_v31 = vld [vmem:[%s10469_s15 + $0x748] sm:$0xff]  ;;  %v1070_v35 = vld [vmem:[%s10469_s15 + $0x780] sm:$0xff] }
  0xc7   : > { %588 = vmatprep.mubr.f32.mxu0 %v10213_v0  ;;  %4001 = vmatpush1.bf16.msra.mxu0 %v8441_v34  ;;  %v8555_v33 = vcombine.low %v1055_v29, %v1063_v31  ;;  %v8556_v34 = vcombine.high %v1055_v29, %v1063_v31  ;;  %v1079_v38 = vld [vmem:[%s10469_s15 + $0x7c8] sm:$0xff]  ;;  %v1102_v2 = vld [vmem:[%s10469_s15 + $0x880] sm:$0xff] }
  0xc8   : > { %8320 = vmatmul.mubr.msk.f32.gmra.mrb[14].mxu1 %vm427_vm0, %v380_v23  ;;  %4002 = vmatprep.subr.bf16.mxu0 %v8458_v36  ;;  %v8537_v23 = vcombine.low %v1038_v12, %v1046_v13  ;;  %v1078_v36 = vld [vmem:[%s10469_s15 + $0x7c0] sm:$0xff]  ;;  %v1095_v46 = vld [vmem:[%s10469_s15 + $0x848] sm:$0xff] }
  0xc9   : > { %749 = vmatprep.mubr.f32.mxu1 %v10213_v0  ;;  %4227 = vmatpush1.bf16.msra.mxu1 %v8443_v42  ;;  %v8570_v37 = vcombine.high %v1070_v35, %v1078_v36  ;;  %v8569_v39 = vcombine.low %v1070_v35, %v1078_v36  ;;  %v1086_v42 = vld [vmem:[%s10469_s15 + $0x800] sm:$0xff]  ;;  %v1119_v20 = vld [vmem:[%s10469_s15 + $0x908] sm:$0xff] }
  0xca   : > { %8305 = vmatmul.mubr.msk.f32.gmra.mrb[16].mxu0 %vm427_vm0, %v381_v32  ;;  %4228 = vmatprep.subr.bf16.mxu1 %v8460_v44  ;;  %v1087_v44 = vld [vmem:[%s10469_s15 + $0x808] sm:$0xff]  ;;  %v1126_v19 = vld [vmem:[%s10469_s15 + $0x940] sm:$0xff] }
  0xcb   : > { %594 = vmatprep.mubr.f32.mxu0 %v10213_v0  ;;  %4003 = vmatpush1.bf16.msra.mxu0 %v8457_v43  ;;  %v1094_v43 = vld [vmem:[%s10469_s15 + $0x840] sm:$0xff]  ;;  %v8587_v48 = vcombine.low %v1087_v44, %v1095_v46  ;;  %v8588_v49 = vcombine.high %v1087_v44, %v1095_v46 }
  0xcc   : > { %8321 = vmatmul.mubr.msk.f32.gmra.mrb[16].mxu1 %vm427_vm0, %v381_v32  ;;  %4004 = vmatprep.subr.bf16.mxu0 %v8474_v45  ;;  %v8553_v32 = vcombine.low %v1054_v27, %v1062_v28  ;;  %v8586_v45 = vcombine.high %v1086_v42, %v1094_v43  ;;  %v8585_v47 = vcombine.low %v1086_v42, %v1094_v43  ;;  %v1134_v35 = vld [vmem:[%s10469_s15 + $0x980] sm:$0xff] }
  0xcd   : > { %755 = vmatprep.mubr.f32.mxu1 %v10213_v0  ;;  %4229 = vmatpush1.bf16.msra.mxu1 %v8459_v51 }
  0xce   : > { %8306 = vmatmul.mubr.msk.f32.gmra.mrb[18].mxu0 %vm427_vm0, %v382_v41  ;;  %4230 = vmatprep.subr.bf16.mxu1 %v8476_v53  ;;  %v405_v53 = vld [vmem:[#allocation6] sm:$0xf] }
  0xcf   : > { %600 = vmatprep.mubr.f32.mxu0 %v10213_v0  ;;  %4005 = vmatpush1.bf16.msra.mxu0 %v8473_v52 }
  0xd0   : > { %8322 = vmatmul.mubr.msk.f32.gmra.mrb[18].mxu1 %vm427_vm0, %v382_v41  ;;  %4006 = vmatprep.subr.bf16.mxu0 %v8490_v54 }
  0xd1   : > { %761 = vmatprep.mubr.f32.mxu1 %v10213_v0  ;;  %4231 = vmatpush1.bf16.msra.mxu1 %v8475_v60 }
  0xd2   : > { %8307 = vmatmul.mubr.msk.f32.gmra.mrb[20].mxu0 %vm427_vm0, %v383_v50  ;;  %4232 = vmatprep.subr.bf16.mxu1 %v8492_v62 }
  0xd3   : > { %606 = vmatprep.mubr.f32.mxu0 %v10213_v0  ;;  %4007 = vmatpush1.bf16.msra.mxu0 %v8489_v61 }
  0xd4   : > { %8323 = vmatmul.mubr.msk.f32.gmra.mrb[20].mxu1 %vm427_vm0, %v383_v50  ;;  %4008 = vmatprep.subr.bf16.mxu0 %v8506_v63  ;;  %v407_v50 = vlaneseq }
  0xd5   : > { %767 = vmatprep.mubr.f32.mxu1 %v10213_v0  ;;  %4233 = vmatpush1.bf16.msra.mxu1 %v8491_v6  ;;  %v1103_v6 = vld [vmem:[%s10469_s15 + $0x888] sm:$0xff] }
  0xd6   : > { %8308 = vmatmul.mubr.msk.f32.gmra.mrb[22].mxu0 %vm427_vm0, %v384_v59  ;;  %4234 = vmatprep.subr.bf16.mxu1 %v8508_v8  ;;  %v10655_v51 = vshrl.u32 %v407_v50, 7 }
  0xd7   : > { %612 = vmatprep.mubr.f32.mxu0 %v10213_v0  ;;  %4009 = vmatpush1.bf16.msra.mxu0 %v8505_v7  ;;  %v1111_v7 = vld [vmem:[%s10469_s15 + $0x8c8] sm:$0xff] }
  0xd8   : > { %8324 = vmatmul.mubr.msk.f32.gmra.mrb[22].mxu1 %vm427_vm0, %v384_v59  ;;  %4010 = vmatprep.subr.bf16.mxu0 %v8522_v9  ;;  %13633 = vst [vmem:[#allocation22_spill] sm:$0xff] %v10655_v51  ;;  %v10658_v52 = vsub.s32 0, %v10655_v51  ;;  %v10661_v54 = vsub.s32 1, %v10655_v51  ;;  %v10670_v59 = vsub.s32 2, %v10655_v51  ;;  %v10673_v60 = vsub.s32 3, %v10655_v51  ;;  %v11322_v51 = vld [vmem:[%s10469_s15 + $0xaa8] sm:$0xff] }
  0xd9   : > { %773 = vmatprep.mubr.f32.mxu1 %v10213_v0  ;;  %4235 = vmatpush1.bf16.msra.mxu1 %v8507_v15 }
  0xda   : > { %8309 = vmatmul.mubr.msk.f32.gmra.mrb[24].mxu0 %vm427_vm0, %v385_v5  ;;  %4236 = vmatprep.subr.bf16.mxu1 %v8524_v17  ;;  %13634 = vst [vmem:[#allocation23_spill] sm:$0xff] %v10658_v52  ;;  %13635 = vst [vmem:[#allocation24_spill] sm:$0xff] %v10661_v54  ;;  %v10664_v56 = vrot.slane %v405_v53, %v10658_v52  ;;  %v10667_v58 = vrot.slane %v405_v53, %v10661_v54 }
  0xdb   : > { %618 = vmatprep.mubr.f32.mxu0 %v10213_v0  ;;  %4011 = vmatpush1.bf16.msra.mxu0 %v8521_v16  ;;  %13636 = vst [vmem:[#allocation25_spill] sm:$0xff] %v10670_v59  ;;  %13637 = vst [vmem:[#allocation26_spill] sm:$0xff] %v10673_v60  ;;  %v10684_v8 = vrot.slane %v405_v53, %v10670_v59  ;;  %v10689_v11 = vrot.slane %v405_v53, %v10673_v60 }
  0xdc   : > { %8325 = vmatmul.mubr.msk.f32.gmra.mrb[24].mxu1 %vm427_vm0, %v385_v5  ;;  %4012 = vmatprep.subr.bf16.mxu0 %v8538_v18  ;;  %v1110_v5 = vld [vmem:[%s10469_s15 + $0x8c0] sm:$0xff]  ;;  %v8604_v18 = vcombine.high %v1103_v6, %v1111_v7 }
  0xdd   : > { %779 = vmatprep.mubr.f32.mxu1 %v10213_v0  ;;  %4237 = vmatpush1.bf16.msra.mxu1 %v8523_v22  ;;  %v8602_v17 = vcombine.high %v1102_v2, %v1110_v5 }
  0xde   : > { %8310 = vmatmul.mubr.msk.f32.gmra.mrb[26].mxu0 %vm427_vm0, %v386_v14  ;;  %4238 = vmatprep.subr.bf16.mxu1 %v8540_v24  ;;  %v8603_v24 = vcombine.low %v1103_v6, %v1111_v7 }
  0xdf   : > { %624 = vmatprep.mubr.f32.mxu0 %v10213_v0  ;;  %4013 = vmatpush1.bf16.msra.mxu0 %v8537_v23  ;;  %v8601_v23 = vcombine.low %v1102_v2, %v1110_v5 }
  0xe0   : > { %8326 = vmatmul.mubr.msk.f32.gmra.mrb[26].mxu1 %vm427_vm0, %v386_v14  ;;  %4014 = vmatprep.subr.bf16.mxu0 %v8554_v30  ;;  %v10694_v14 = vld [vmem:[%s10469_s15 + $0x900] sm:$0xff] }
  0xe1   : > { %785 = vmatprep.mubr.f32.mxu1 %v10213_v0  ;;  %4239 = vmatpush1.bf16.msra.mxu1 %v8539_v26  ;;  %v8618_v28 = vcombine.high %v10694_v14, %v1126_v19 }
  0xe2   : > { %8311 = vmatmul.mubr.msk.f32.gmra.mrb[28].mxu0 %vm427_vm0, %v387_v21  ;;  %4240 = vmatprep.subr.bf16.mxu1 %v8556_v34 }
  0xe3   : > { %630 = vmatprep.mubr.f32.mxu0 %v10213_v0  ;;  %4015 = vmatpush1.bf16.msra.mxu0 %v8553_v32 }
  0xe4   : > { %8327 = vmatmul.mubr.msk.f32.gmra.mrb[28].mxu1 %vm427_vm0, %v387_v21  ;;  %4016 = vmatprep.subr.bf16.mxu0 %v8570_v37  ;;  %v1127_v21 = vld [vmem:[%s10469_s15 + $0x948] sm:$0xff] }
  0xe5   : > { %791 = vmatprep.mubr.f32.mxu1 %v10213_v0  ;;  %v1071_v0 = vld [vmem:[%s10469_s15 + $0x788] sm:$0xff]  ;;  %4241 = vmatpush1.bf16.msra.mxu1 %v8555_v33  ;;  %v8620_v29 = vcombine.high %v1119_v20, %v1127_v21 }
  0xe6   : > { %8312 = vmatmul.mubr.msk.f32.gmra.mrb[30].mxu0 %vm427_vm0, %v388_v25  ;;  %v8571_v40 = vcombine.low %v1071_v0, %v1079_v38  ;;  %v8572_v41 = vcombine.high %v1071_v0, %v1079_v38  ;;  %v1142_v38 = vld [vmem:[%s10469_s15 + $0x9c0] sm:$0xff] }
  0xe7   : > { %4017 = vmatpush1.bf16.msra.mxu0 %v8569_v39  ;;  %v1135_v39 = vld [vmem:[%s10469_s15 + $0x988] sm:$0xff]  ;;  %v8633_v2 = vcombine.low %v1134_v35, %v1142_v38 }
  0xe8   : > { %8328 = vmatmul.mubr.msk.f32.gmra.mrb[30].mxu1 %vm427_vm0, %v388_v25  ;;  %4242 = vmatprep.subr.bf16.mxu1 %v8572_v41 }
  0xe9   : > { %4243 = vmatpush1.bf16.msra.mxu1 %v8571_v40  ;;  %4099 = vmatprep.subr.bf16.mxu0 %v8586_v45  ;;  %v1143_v40 = vld [vmem:[%s10469_s15 + $0x9c8] sm:$0xff] }
  0xea   : > { %4325 = vmatprep.subr.bf16.mxu1 %v8588_v49  ;;  %v10726_v49 = vld [vmem:[%s10469_s15 + $0xa00] sm:$0xff] }
 0x17d   : > { %v542_v55 = vpop.f32.mrb[0].mxu0 }
 0x17e   : > { %v544_v57 = vpop.f32.mrb[1].mxu0  ;;  %v543_v62 = vadd.f32 %v542_v55, %v10664_v56  ;;  %v8634_v55 = vcombine.high %v1134_v35, %v1142_v38  ;;  %v1183_v38 = vld [vmem:[%s10469_s15 + $0xb08] sm:$0xff] }
 0x17f   : > { %v545_v3 = vadd.f32 %v544_v57, %v10667_v58  ;;  %v703_v10 = vpop.f32.mrb[0].mxu1  ;;  %v8636_v57 = vcombine.high %v1135_v39, %v1143_v40 }
 0x180   : > { %v705_v15 = vpop.f32.mrb[1].mxu1  ;;  %v704_v22 = vadd.f32 %v703_v10, %v10684_v8 }
 0x181   : > { %v548_v61 = vpop.f32.mrb[2].mxu0  ;;  %v706_v25 = vadd.f32 %v705_v15, %v10689_v11 }
 0x182   : > { %v549_v63 = vadd.f32 %v548_v61, %v10664_v56  ;;  %v550_v1 = vpop.f32.mrb[3].mxu0  ;;  %v1158_v61 = vld [vmem:[%s10469_s15 + $0xa40] sm:$0xff] }
 0x183   : > { %v551_v4 = vadd.f32 %v550_v1, %v10667_v58  ;;  %v709_v26 = vpop.f32.mrb[2].mxu1  ;;  %v8650_v7 = vcombine.high %v10726_v49, %v1158_v61 }
 0x184   : > { %v10686_v9 = vpack.c.bf16 %v549_v63, %v543_v62  ;;  %v710_v30 = vadd.f32 %v709_v26, %v10684_v8  ;;  %v711_v31 = vpop.f32.mrb[3].mxu1  ;;  %v1151_v62 = vld [vmem:[%s10469_s15 + $0xa08] sm:$0xff] }
 0x185   : > { %v10691_v12 = vpack.c.bf16 %v551_v4, %v545_v3  ;;  %v554_v13 = vpop.f32.mrb[4].mxu0  ;;  %v712_v36 = vadd.f32 %v711_v31, %v10689_v11  ;;  %v1159_v63 = vld [vmem:[%s10469_s15 + $0xa48] sm:$0xff]  ;;  %v8635_v3 = vcombine.low %v1135_v39, %v1143_v40  ;;  %v8649_v31 = vcombine.low %v10726_v49, %v1158_v61 }
 0x186   : > { %13638 = vst [vmem:[#allocation27_spill] sm:$0xff] %v10686_v9  ;;  %v556_v16 = vpop.f32.mrb[5].mxu0  ;;  %v555_v32 = vadd.f32 %v554_v13, %v10664_v56  ;;  %v10716_v41 = vpack.c.bf16 %v710_v30, %v704_v22  ;;  %v8652_v10 = vcombine.high %v1151_v62, %v1159_v63  ;;  %v1174_v22 = vld [vmem:[%s10469_s15 + $0xac0] sm:$0xff]  ;;  %v1191_v39 = vld [vmem:[%s10469_s15 + $0xb48] sm:$0xff] }
 0x187   : > { %13639 = vst [vmem:[#allocation28_spill] sm:$0xff] %v10691_v12  ;;  %4018 = vmatprep.mubr.bf16.mxu0 %v10691_v12  ;;  %4244 = vmatprep.mubr.bf16.mxu1 %v10691_v12  ;;  %v557_v0 = vadd.f32 %v556_v16, %v10667_v58  ;;  %v10720_v43 = vpack.c.bf16 %v712_v36, %v706_v25  ;;  %v715_v44 = vpop.f32.mrb[4].mxu1 }
 0x188   : > { %4019 = vmatmul.mubr.bf16.vlgmr.msra.gmra.mrb[32].mxu0 %v10686_v9  ;;  %4245 = vmatmul.mubr.bf16.vlgmr.msra.gmra.mrb[32].mxu1 %v10686_v9  ;;  %13640 = vst [vmem:[#allocation29_spill] sm:$0xff] %v10716_v41  ;;  %v717_v50 = vpop.f32.mrb[5].mxu1  ;;  %v716_v1 = vadd.f32 %v715_v44, %v10684_v8 }
 0x189   : > { %4100 = vmatpush1.bf16.msra.mxu0 %v8585_v47  ;;  %4326 = vmatpush1.bf16.msra.mxu1 %v8587_v48  ;;  %v560_v27 = vpop.f32.mrb[6].mxu0  ;;  %13642 = vst [vmem:[#allocation31_spill] sm:$0xff] %v10720_v43  ;;  %v8617_v47 = vcombine.low %v10694_v14, %v1126_v19  ;;  %v8619_v48 = vcombine.low %v1119_v20, %v1127_v21 }
 0x18a   : > { %v561_v33 = vadd.f32 %v560_v27, %v10664_v56  ;;  %v562_v34 = vpop.f32.mrb[7].mxu0  ;;  %4101 = vmatprep.subr.bf16.mxu0 %v8602_v17  ;;  %4327 = vmatprep.subr.bf16.mxu1 %v8604_v18  ;;  %v718_v4 = vadd.f32 %v717_v50, %v10689_v11  ;;  %v1166_v18 = vld [vmem:[%s10469_s15 + $0xa80] sm:$0xff] }
 0x18b   : > { %v563_v37 = vadd.f32 %v562_v34, %v10667_v58  ;;  %v721_v5 = vpop.f32.mrb[6].mxu1  ;;  %v8666_v36 = vcombine.high %v1166_v18, %v1174_v22  ;;  %v8665_v44 = vcombine.low %v1166_v18, %v1174_v22 }
 0x18c   : > { %v10718_v42 = vpack.c.bf16 %v561_v33, %v555_v32  ;;  %v722_v13 = vadd.f32 %v721_v5, %v10684_v8  ;;  %v723_v14 = vpop.f32.mrb[7].mxu1  ;;  %v8651_v32 = vcombine.low %v1151_v62, %v1159_v63  ;;  %v10758_v33 = vld [vmem:[%s10469_s15 + $0xb00] sm:$0xff] }
 0x18d   : > { %v10722_v45 = vpack.c.bf16 %v563_v37, %v557_v0  ;;  %4102 = vmatpush1.bf16.msra.mxu0 %v8601_v23  ;;  %4328 = vmatpush1.bf16.msra.mxu1 %v8603_v24  ;;  %v566_v46 = vpop.f32.mrb[8].mxu0  ;;  %v724_v19 = vadd.f32 %v723_v14, %v10689_v11  ;;  %v1167_v23 = vld [vmem:[%s10469_s15 + $0xa88] sm:$0xff]  ;;  %v1190_v37 = vld [vmem:[%s10469_s15 + $0xb40] sm:$0xff] }
 0x18e   : > { %13641 = vst [vmem:[#allocation30_spill] sm:$0xff] %v10718_v42  ;;  %v568_v53 = vpop.f32.mrb[9].mxu0  ;;  %4103 = vmatprep.subr.bf16.mxu0 %v8618_v28  ;;  %4329 = vmatprep.subr.bf16.mxu1 %v8620_v29  ;;  %v567_v15 = vadd.f32 %v566_v46, %v10664_v56  ;;  %v1175_v24 = vld [vmem:[%s10469_s15 + $0xac8] sm:$0xff]  ;;  %v10748_v25 = vpack.c.bf16 %v722_v13, %v716_v1  ;;  %v1198_v1 = vld [vmem:[%s10469_s15 + $0xb80] sm:$0xff] }
 0x18f   : > { %13643 = vst [vmem:[#allocation32_spill] sm:$0xff] %v10722_v45  ;;  %4028 = vmatprep.mubr.bf16.mxu0 %v10722_v45  ;;  %4254 = vmatprep.mubr.bf16.mxu1 %v10722_v45  ;;  %v569_v20 = vadd.f32 %v568_v53, %v10667_v58  ;;  %v10752_v27 = vpack.c.bf16 %v724_v19, %v718_v4  ;;  %v727_v28 = vpop.f32.mrb[8].mxu1  ;;  %v1206_v5 = vld [vmem:[%s10469_s15 + $0xbc0] sm:$0xff] }
 0x190   : > { %4029 = vmatmul.mubr.bf16.gmra.mrb[36].mxu0 %v10718_v42  ;;  %4255 = vmatmul.mubr.bf16.gmra.mrb[36].mxu1 %v10718_v42  ;;  %13644 = vst [vmem:[#allocation33_spill] sm:$0xff] %v10748_v25  ;;  %v729_v34 = vpop.f32.mrb[9].mxu1  ;;  %v8668_v0 = vcombine.high %v1167_v23, %v1175_v24  ;;  %v728_v40 = vadd.f32 %v727_v28, %v10684_v8  ;;  %v1222_v28 = vld [vmem:[%s10469_s15 + $0xc40] sm:$0xff] }
 0x191   : > { %4104 = vmatpush1.bf16.msra.mxu0 %v8617_v47  ;;  %4330 = vmatpush1.bf16.msra.mxu1 %v8619_v48  ;;  %v572_v6 = vpop.f32.mrb[10].mxu0  ;;  %13646 = vst [vmem:[#allocation35_spill] sm:$0xff] %v10752_v27  ;;  %v8667_v46 = vcombine.low %v1167_v23, %v1175_v24  ;;  %v730_v47 = vadd.f32 %v729_v34, %v10689_v11 }
 0x192   : > { %v573_v16 = vadd.f32 %v572_v6, %v10664_v56  ;;  %v574_v17 = vpop.f32.mrb[11].mxu0  ;;  %4105 = vmatprep.subr.bf16.mxu0 %v8634_v55  ;;  %4331 = vmatprep.subr.bf16.mxu1 %v8636_v57  ;;  %v8682_v50 = vcombine.high %v10758_v33, %v1190_v37  ;;  %v8684_v53 = vcombine.high %v1183_v38, %v1191_v39  ;;  %v1199_v6 = vld [vmem:[%s10469_s15 + $0xb88] sm:$0xff] }
 0x193   : > { %v575_v21 = vadd.f32 %v574_v17, %v10667_v58  ;;  %v733_v48 = vpop.f32.mrb[10].mxu1  ;;  %v8681_v18 = vcombine.low %v10758_v33, %v1190_v37  ;;  %v8683_v19 = vcombine.low %v1183_v38, %v1191_v39  ;;  %v8698_v23 = vcombine.high %v1198_v1, %v1206_v5 }
 0x194   : > { %v10750_v26 = vpack.c.bf16 %v573_v16, %v567_v15  ;;  %v734_v55 = vadd.f32 %v733_v48, %v10684_v8  ;;  %v735_v57 = vpop.f32.mrb[11].mxu1  ;;  %v8697_v33 = vcombine.low %v1198_v1, %v1206_v5  ;;  %v1230_v48 = vld [vmem:[%s10469_s15 + $0xc80] sm:$0xff] }
 0x195   : > { %v10754_v29 = vpack.c.bf16 %v575_v21, %v569_v20  ;;  %4106 = vmatpush1.bf16.msra.mxu0 %v8633_v2  ;;  %4332 = vmatpush1.bf16.msra.mxu1 %v8635_v3  ;;  %v578_v30 = vpop.f32.mrb[12].mxu0  ;;  %v736_v2 = vadd.f32 %v735_v57, %v10689_v11  ;;  %v10790_v20 = vld [vmem:[%s10469_s15 + $0xc00] sm:$0xff]  ;;  %v1231_v57 = vld [vmem:[%s10469_s15 + $0xc88] sm:$0xff] }
 0x196   : > { %13645 = vst [vmem:[#allocation34_spill] sm:$0xff] %v10750_v26  ;;  %v580_v35 = vpop.f32.mrb[13].mxu0  ;;  %4107 = vmatprep.subr.bf16.mxu0 %v8650_v7  ;;  %4333 = vmatprep.subr.bf16.mxu1 %v8652_v10  ;;  %v579_v61 = vadd.f32 %v578_v30, %v10664_v56  ;;  %v1207_v7 = vld [vmem:[%s10469_s15 + $0xbc8] sm:$0xff]  ;;  %v10780_v10 = vpack.c.bf16 %v734_v55, %v728_v40  ;;  %v1238_v55 = vld [vmem:[%s10469_s15 + $0xcc0] sm:$0xff] }
 0x197   : > { %13647 = vst [vmem:[#allocation36_spill] sm:$0xff] %v10754_v29  ;;  %4038 = vmatprep.mubr.bf16.mxu0 %v10754_v29  ;;  %4264 = vmatprep.mubr.bf16.mxu1 %v10754_v29  ;;  %v581_v3 = vadd.f32 %v580_v35, %v10667_v58  ;;  %v10784_v14 = vpack.c.bf16 %v736_v2, %v730_v47  ;;  %v739_v15 = vpop.f32.mrb[12].mxu1  ;;  %v1215_v30 = vld [vmem:[%s10469_s15 + $0xc08] sm:$0xff] }
 0x198   : > { %4039 = vmatmul.mubr.bf16.gmra.mrb[40].mxu0 %v10750_v26  ;;  %4265 = vmatmul.mubr.bf16.gmra.mrb[40].mxu1 %v10750_v26  ;;  %13648 = vst [vmem:[#allocation37_spill] sm:$0xff] %v10780_v10  ;;  %v741_v21 = vpop.f32.mrb[13].mxu1  ;;  %v8700_v24 = vcombine.high %v1199_v6, %v1207_v7  ;;  %v8699_v34 = vcombine.low %v1199_v6, %v1207_v7  ;;  %v10822_v7 = vld [vmem:[%s10469_s15 + $0xd00] sm:$0xff] }
 0x199   : > { %4108 = vmatpush1.bf16.msra.mxu0 %v8649_v31  ;;  %4334 = vmatpush1.bf16.msra.mxu1 %v8651_v32  ;;  %v584_v49 = vpop.f32.mrb[14].mxu0  ;;  %13650 = vst [vmem:[#allocation39_spill] sm:$0xff] %v10784_v14  ;;  %v1223_v31 = vld [vmem:[%s10469_s15 + $0xc48] sm:$0xff]  ;;  %v740_v32 = vadd.f32 %v739_v15, %v10684_v8  ;;  %v742_v35 = vadd.f32 %v741_v21, %v10689_v11  ;;  %v1254_v21 = vld [vmem:[%s10469_s15 + $0xd40] sm:$0xff] }
 0x19a   : > { %v585_v62 = vadd.f32 %v584_v49, %v10664_v56  ;;  %v586_v63 = vpop.f32.mrb[15].mxu0  ;;  %4109 = vmatprep.subr.bf16.mxu0 %v8666_v36  ;;  %4335 = vmatprep.subr.bf16.mxu1 %v8668_v0  ;;  %v8714_v37 = vcombine.high %v10790_v20, %v1222_v28  ;;  %v8716_v38 = vcombine.high %v1215_v30, %v1223_v31 }
 0x19b   : > { %v587_v4 = vadd.f32 %v586_v63, %v10667_v58  ;;  %v745_v36 = vpop.f32.mrb[14].mxu1  ;;  %v8713_v5 = vcombine.low %v10790_v20, %v1222_v28  ;;  %v8715_v6 = vcombine.low %v1215_v30, %v1223_v31  ;;  %v8729_v20 = vcombine.low %v1230_v48, %v1238_v55 }
 0x19c   : > { %v10782_v13 = vpack.c.bf16 %v585_v62, %v579_v61  ;;  %v746_v39 = vadd.f32 %v745_v36, %v10684_v8  ;;  %v747_v40 = vpop.f32.mrb[15].mxu1  ;;  %v1239_v61 = vld [vmem:[%s10469_s15 + $0xcc8] sm:$0xff] }
 0x19d   : > { %v10786_v16 = vpack.c.bf16 %v587_v4, %v581_v3  ;;  %4110 = vmatpush1.bf16.msra.mxu0 %v8665_v44  ;;  %4336 = vmatpush1.bf16.msra.mxu1 %v8667_v46  ;;  %v590_v17 = vpop.f32.mrb[16].mxu0  ;;  %v748_v49 = vadd.f32 %v747_v40, %v10689_v11  ;;  %v8731_v28 = vcombine.low %v1231_v57, %v1239_v61 }
 0x19e   : > { %13649 = vst [vmem:[#allocation38_spill] sm:$0xff] %v10782_v13  ;;  %v592_v22 = vpop.f32.mrb[17].mxu0  ;;  %4111 = vmatprep.subr.bf16.mxu0 %v8682_v50  ;;  %4337 = vmatprep.subr.bf16.mxu1 %v8684_v53  ;;  %v591_v44 = vadd.f32 %v590_v17, %v10664_v56  ;;  %v10812_v62 = vpack.c.bf16 %v746_v39, %v740_v32  ;;  %v1262_v39 = vld [vmem:[%s10469_s15 + $0xd80] sm:$0xff] }
 0x19f   : > { %13651 = vst [vmem:[#allocation40_spill] sm:$0xff] %v10786_v16  ;;  %4048 = vmatprep.mubr.bf16.mxu0 %v10786_v16  ;;  %4274 = vmatprep.mubr.bf16.mxu1 %v10786_v16  ;;  %v593_v50 = vadd.f32 %v592_v22, %v10667_v58  ;;  %v10816_v1 = vpack.c.bf16 %v748_v49, %v742_v35  ;;  %v751_v2 = vpop.f32.mrb[16].mxu1  ;;  %v1247_v22 = vld [vmem:[%s10469_s15 + $0xd08] sm:$0xff] }
 0x1a0   : > { %4049 = vmatmul.mubr.bf16.gmra.mrb[44].mxu0 %v10782_v13  ;;  %4275 = vmatmul.mubr.bf16.gmra.mrb[44].mxu1 %v10782_v13  ;;  %13652 = vst [vmem:[#allocation41_spill] sm:$0xff] %v10812_v62  ;;  %v753_v15 = vpop.f32.mrb[17].mxu1  ;;  %v1271_v49 = vld [vmem:[%s10469_s15 + $0xdc8] sm:$0xff] }
 0x1a1   : > { %4112 = vmatpush1.bf16.msra.mxu0 %v8681_v18  ;;  %4338 = vmatpush1.bf16.msra.mxu1 %v8683_v19  ;;  %v596_v0 = vpop.f32.mrb[18].mxu0  ;;  %13653 = vst [vmem:[#allocation42_spill] sm:$0xff] %v10816_v1  ;;  %v8730_v18 = vcombine.high %v1230_v48, %v1238_v55  ;;  %v8732_v19 = vcombine.high %v1231_v57, %v1239_v61  ;;  %v1263_v48 = vld [vmem:[%s10469_s15 + $0xd88] sm:$0xff] }
 0x1a2   : > { %v597_v46 = vadd.f32 %v596_v0, %v10664_v56  ;;  %v598_v47 = vpop.f32.mrb[19].mxu0  ;;  %4113 = vmatprep.subr.bf16.mxu0 %v8698_v23  ;;  %4339 = vmatprep.subr.bf16.mxu1 %v8700_v24  ;;  %v1255_v23 = vld [vmem:[%s10469_s15 + $0xd48] sm:$0xff]  ;;  %v752_v24 = vadd.f32 %v751_v2, %v10684_v8  ;;  %v754_v30 = vadd.f32 %v753_v15, %v10689_v11 }
 0x1a3   : > { %v599_v53 = vadd.f32 %v598_v47, %v10667_v58  ;;  %v757_v31 = vpop.f32.mrb[18].mxu1  ;;  %v1270_v47 = vld [vmem:[%s10469_s15 + $0xdc0] sm:$0xff] }
 0x1a4   : > { %v10814_v63 = vpack.c.bf16 %v597_v46, %v591_v44  ;;  %v758_v35 = vadd.f32 %v757_v31, %v10684_v8  ;;  %v759_v36 = vpop.f32.mrb[19].mxu1  ;;  %v1287_v31 = vld [vmem:[%s10469_s15 + $0xe48] sm:$0xff] }
 0x1a5   : > { %v10818_v3 = vpack.c.bf16 %v599_v53, %v593_v50  ;;  %4114 = vmatpush1.bf16.msra.mxu0 %v8697_v33  ;;  %4340 = vmatpush1.bf16.msra.mxu1 %v8699_v34  ;;  %v602_v4 = vpop.f32.mrb[20].mxu0  ;;  %v8746_v33 = vcombine.high %v10822_v7, %v1254_v21  ;;  %v8748_v34 = vcombine.high %v1247_v22, %v1255_v23 }
 0x1a6   : > { %v604_v17 = vpop.f32.mrb[21].mxu0  ;;  %4115 = vmatprep.subr.bf16.mxu0 %v8714_v37  ;;  %4341 = vmatprep.subr.bf16.mxu1 %v8716_v38  ;;  %v603_v0 = vadd.f32 %v602_v4, %v10664_v56  ;;  %v760_v40 = vadd.f32 %v759_v36, %v10689_v11  ;;  %v10844_v50 = vpack.c.bf16 %v758_v35, %v752_v24  ;;  %v1286_v24 = vld [vmem:[%s10469_s15 + $0xe40] sm:$0xff] }
 0x1a7   : > { %4058 = vmatprep.mubr.bf16.mxu0 %v10818_v3  ;;  %4284 = vmatprep.mubr.bf16.mxu1 %v10818_v3  ;;  %v605_v44 = vadd.f32 %v604_v17, %v10667_v58  ;;  %v763_v57 = vpop.f32.mrb[20].mxu1  ;;  %v8745_v4 = vcombine.low %v10822_v7, %v1254_v21  ;;  %v8761_v7 = vcombine.low %v1262_v39, %v1270_v47 }
 0x1a8   : > { %4059 = vmatmul.mubr.bf16.gmra.mrb[48].mxu0 %v10814_v63  ;;  %4285 = vmatmul.mubr.bf16.gmra.mrb[48].mxu1 %v10814_v63  ;;  %13654 = vst [vmem:[#allocation43_spill] sm:$0xff] %v10844_v50  ;;  %v10848_v55 = vpack.c.bf16 %v760_v40, %v754_v30  ;;  %v765_v15 = vpop.f32.mrb[21].mxu1  ;;  %v1279_v30 = vld [vmem:[%s10469_s15 + $0xe08] sm:$0xff]  ;;  %v8763_v21 = vcombine.low %v1263_v48, %v1271_v49 }
 0x1a9   : > { %4116 = vmatpush1.bf16.msra.mxu0 %v8713_v5  ;;  %4342 = vmatpush1.bf16.msra.mxu1 %v8715_v6  ;;  %v608_v32 = vpop.f32.mrb[22].mxu0  ;;  %v8747_v5 = vcombine.low %v1247_v22, %v1255_v23  ;;  %v10854_v6 = vld [vmem:[%s10469_s15 + $0xe00] sm:$0xff]  ;;  %v766_v22 = vadd.f32 %v765_v15, %v10689_v11 }
 0x1aa   : > { %v609_v37 = vadd.f32 %v608_v32, %v10664_v56  ;;  %v610_v38 = vpop.f32.mrb[23].mxu0  ;;  %4117 = vmatprep.subr.bf16.mxu0 %v8730_v18  ;;  %4343 = vmatprep.subr.bf16.mxu1 %v8732_v19  ;;  %13655 = vst [vmem:[#allocation44_spill] sm:$0xff] %v10848_v55  ;;  %v8762_v18 = vcombine.high %v1262_v39, %v1270_v47  ;;  %v1295_v47 = vld [vmem:[%s10469_s15 + $0xe88] sm:$0xff] }
 0x1ab   : > { %v611_v46 = vadd.f32 %v610_v38, %v10667_v58  ;;  %v8764_v19 = vcombine.high %v1263_v48, %v1271_v49  ;;  %v769_v23 = vpop.f32.mrb[22].mxu1  ;;  %v8778_v32 = vcombine.high %v10854_v6, %v1286_v24  ;;  %v1294_v38 = vld [vmem:[%s10469_s15 + $0xe80] sm:$0xff]  ;;  %v1303_v48 = vld [vmem:[%s10469_s15 + $0xec8] sm:$0xff] }
 0x1ac   : > { %v10846_v53 = vpack.c.bf16 %v609_v37, %v603_v0  ;;  %v771_v35 = vpop.f32.mrb[23].mxu1 }
 0x1ad   : > { %v10850_v61 = vpack.c.bf16 %v611_v46, %v605_v44  ;;  %4118 = vmatpush1.bf16.msra.mxu0 %v8729_v20  ;;  %4344 = vmatpush1.bf16.msra.mxu1 %v8731_v28  ;;  %v614_v2 = vpop.f32.mrb[24].mxu0  ;;  %v764_v20 = vadd.f32 %v763_v57, %v10684_v8  ;;  %v772_v39 = vadd.f32 %v771_v35, %v10689_v11  ;;  %v1302_v46 = vld [vmem:[%s10469_s15 + $0xec0] sm:$0xff]  ;;  %v1311_v35 = vld [vmem:[%s10469_s15 + $0xf08] sm:$0xff] }
 0x1ae   : > { %v616_v17 = vpop.f32.mrb[25].mxu0  ;;  %4119 = vmatprep.subr.bf16.mxu0 %v8746_v33  ;;  %4345 = vmatprep.subr.bf16.mxu1 %v8748_v34  ;;  %v8780_v33 = vcombine.high %v1279_v30, %v1287_v31  ;;  %v770_v34 = vadd.f32 %v769_v23, %v10684_v8  ;;  %v615_v36 = vadd.f32 %v614_v2, %v10664_v56 }
 0x1af   : > { %4068 = vmatprep.mubr.bf16.mxu0 %v10850_v61  ;;  %4294 = vmatprep.mubr.bf16.mxu1 %v10850_v61  ;;  %v617_v40 = vadd.f32 %v616_v17, %v10667_v58  ;;  %v10880_v2 = vpack.c.bf16 %v772_v39, %v766_v22  ;;  %v8777_v17 = vcombine.low %v10854_v6, %v1286_v24 }
 0x1b0   : > { %4069 = vmatmul.mubr.bf16.gmra.mrb[52].mxu0 %v10846_v53  ;;  %4295 = vmatmul.mubr.bf16.gmra.mrb[52].mxu1 %v10846_v53  ;;  %v10876_v49 = vpack.c.bf16 %v770_v34, %v764_v20  ;;  %v8796_v22 = vcombine.high %v1295_v47, %v1303_v48  ;;  %v1318_v34 = vld [vmem:[%s10469_s15 + $0xf40] sm:$0xff]  ;;  %v8793_v6 = vcombine.low %v1294_v38, %v1302_v46 }
 0x1b1   : > { %4120 = vmatpush1.bf16.msra.mxu0 %v8745_v4  ;;  %4346 = vmatpush1.bf16.msra.mxu1 %v8747_v5  ;;  %v620_v28 = vpop.f32.mrb[26].mxu0  ;;  %13658 = vst [vmem:[#allocation47_spill] sm:$0xff] %v10880_v2  ;;  %v775_v4 = vpop.f32.mrb[24].mxu1  ;;  %v8795_v24 = vcombine.low %v1295_v47, %v1303_v48  ;;  %v1326_v48 = vld [vmem:[%s10469_s15 + $0xf80] sm:$0xff] }
 0x1b2   : > { %v621_v0 = vadd.f32 %v620_v28, %v10664_v56  ;;  %v622_v37 = vpop.f32.mrb[27].mxu0  ;;  %4121 = vmatprep.subr.bf16.mxu0 %v8762_v18  ;;  %4347 = vmatprep.subr.bf16.mxu1 %v8764_v19  ;;  %13656 = vst [vmem:[#allocation45_spill] sm:$0xff] %v10876_v49  ;;  %v8779_v18 = vcombine.low %v1279_v30, %v1287_v31  ;;  %v10886_v19 = vld [vmem:[%s10469_s15 + $0xf00] sm:$0xff]  ;;  %v777_v20 = vpop.f32.mrb[25].mxu1 }
 0x1b3   : > { %v623_v44 = vadd.f32 %v622_v37, %v10667_v58  ;;  %v8794_v28 = vcombine.high %v1294_v38, %v1302_v46  ;;  %v778_v30 = vadd.f32 %v777_v20, %v10689_v11  ;;  %v781_v31 = vpop.f32.mrb[26].mxu1  ;;  %v1327_v20 = vld [vmem:[%s10469_s15 + $0xf88] sm:$0xff] }
 0x1b4   : > { %v10878_v57 = vpack.c.bf16 %v621_v0, %v615_v36  ;;  %v1319_v36 = vld [vmem:[%s10469_s15 + $0xf48] sm:$0xff]  ;;  %v782_v0 = vadd.f32 %v781_v31, %v10684_v8  ;;  %v783_v37 = vpop.f32.mrb[27].mxu1  ;;  %v832_v31 = vld [vmem:[%s10469_s15 + $0x10] sm:$0xff] }
 0x1b5   : > { %v10882_v5 = vpack.c.bf16 %v623_v44, %v617_v40  ;;  %4122 = vmatpush1.bf16.msra.mxu0 %v8761_v7  ;;  %4348 = vmatpush1.bf16.msra.mxu1 %v8763_v21  ;;  %v626_v15 = vpop.f32.mrb[28].mxu0  ;;  %v776_v7 = vadd.f32 %v775_v4, %v10684_v8  ;;  %v784_v44 = vadd.f32 %v783_v37, %v10689_v11  ;;  %v833_v37 = vld [vmem:[%s10469_s15 + $0x18] sm:$0xff] }
 0x1b6   : > { %13657 = vst [vmem:[#allocation46_spill] sm:$0xff] %v10878_v57  ;;  %v628_v23 = vpop.f32.mrb[29].mxu0  ;;  %4123 = vmatprep.subr.bf16.mxu0 %v8778_v32  ;;  %4349 = vmatprep.subr.bf16.mxu1 %v8780_v33  ;;  %v8810_v32 = vcombine.high %v10886_v19, %v1318_v34  ;;  %v8812_v33 = vcombine.high %v1311_v35, %v1319_v36 }
 0x1b7   : > { %4078 = vmatprep.mubr.bf16.mxu0 %v10882_v5  ;;  %4304 = vmatprep.mubr.bf16.mxu1 %v10882_v5  ;;  %v627_v39 = vadd.f32 %v626_v15, %v10664_v56  ;;  %v629_v46 = vadd.f32 %v628_v23, %v10667_v58  ;;  %v10905_v4 = vpack.c.bf16 %v782_v0, %v776_v7  ;;  %v1335_v15 = vld [vmem:[%s10469_s15 + $0xfc8] sm:$0xff]  ;;  %v840_v0 = vld [vmem:[%s10469_s15 + $0x50] sm:$0xff] }
 0x1b8   : > { %4079 = vmatmul.mubr.bf16.gmra.mrb[56].mxu0 %v10878_v57  ;;  %4305 = vmatmul.mubr.bf16.gmra.mrb[56].mxu1 %v10878_v57  ;;  %v8811_v23 = vcombine.low %v1311_v35, %v1319_v36  ;;  %v8827_v36 = vcombine.low %v1327_v20, %v1335_v15 }
 0x1b9   : > { %4124 = vmatpush1.bf16.msra.mxu0 %v8777_v17  ;;  %4350 = vmatpush1.bf16.msra.mxu1 %v8779_v18  ;;  %v632_v21 = vpop.f32.mrb[30].mxu0  ;;  %13659 = vst [vmem:[#allocation48_spill] sm:$0xff] %v10905_v4  ;;  %v1334_v18 = vld [vmem:[%s10469_s15 + $0xfc0] sm:$0xff] }
 0x1ba   : > { %v633_v38 = vadd.f32 %v632_v21, %v10664_v56  ;;  %v634_v40 = vpop.f32.mrb[31].mxu0  ;;  %4125 = vmatprep.subr.bf16.mxu0 %v8794_v28  ;;  %4351 = vmatprep.subr.bf16.mxu1 %v8796_v22  ;;  %v10912_v56 = vpack.c.bf16 %v784_v44, %v778_v30  ;;  %v787_v28 = vpop.f32.mrb[28].mxu1  ;;  %v8826_v30 = vcombine.high %v1326_v48, %v1334_v18  ;;  %v848_v44 = vld [vmem:[%s10469_s15 + $0x90] sm:$0xff] }
 0x1bb   : > { %v635_v47 = vadd.f32 %v634_v40, %v10667_v58  ;;  %v8809_v58 = vcombine.low %v10886_v19, %v1318_v34  ;;  %v789_v7 = vpop.f32.mrb[29].mxu1  ;;  %v8828_v21 = vcombine.high %v1327_v20, %v1335_v15  ;;  %v8825_v35 = vcombine.low %v1326_v48, %v1334_v18  ;;  %v857_v48 = vld [vmem:[%s10469_s15 + $0xd8] sm:$0xff] }
 0x1bc   : > { %v10907_v17 = vpack.c.bf16 %v633_v38, %v627_v39  ;;  %13661 = vst [vmem:[#allocation50_spill] sm:$0xff] %v10912_v56  ;;  %v841_v39 = vld [vmem:[%s10469_s15 + $0x58] sm:$0xff]  ;;  %v788_v38 = vadd.f32 %v787_v28, %v10684_v8  ;;  %v790_v19 = vadd.f32 %v789_v7, %v10689_v11  ;;  %v793_v34 = vpop.f32.mrb[30].mxu1  ;;  %v8333_v20 = vcombine.low %v832_v31, %v840_v0 }
 0x1bd   : > { %v10914_v22 = vpack.c.bf16 %v635_v47, %v629_v46  ;;  %4126 = vmatpush1.bf16.msra.mxu0 %v8793_v6  ;;  %4352 = vmatpush1.bf16.msra.mxu1 %v8795_v24  ;;  %v794_v6 = vadd.f32 %v793_v34, %v10684_v8  ;;  %v795_v24 = vpop.f32.mrb[31].mxu1  ;;  %v856_v47 = vld [vmem:[%s10469_s15 + $0xd0] sm:$0xff]  ;;  %v849_v8 = vld [vmem:[%s10469_s15 + $0x98] sm:$0xff]  ;;  %v8335_v15 = vcombine.low %v833_v37, %v841_v39 }
 0x1be   : > { %13660 = vst [vmem:[#allocation49_spill] sm:$0xff] %v10907_v17  ;;  %4127 = vmatprep.subr.bf16.mxu0 %v8810_v32  ;;  %4353 = vmatprep.subr.bf16.mxu1 %v8812_v33  ;;  %v8334_v32 = vcombine.high %v832_v31, %v840_v0  ;;  %v8336_v33 = vcombine.high %v833_v37, %v841_v39  ;;  %v865_v7 = vld [vmem:[%s10469_s15 + $0x118] sm:$0xff]  ;;  %v880_v39 = vld [vmem:[%s10469_s15 + $0x190] sm:$0xff] }
 0x1bf   : > { %13662 = vst [vmem:[#allocation51_spill] sm:$0xff] %v10914_v22  ;;  %4088 = vmatprep.mubr.bf16.mxu0 %v10914_v22  ;;  %4314 = vmatprep.mubr.bf16.mxu1 %v10914_v22  ;;  %v796_v40 = vadd.f32 %v795_v24, %v10689_v11  ;;  %v10932_v46 = vpack.c.bf16 %v794_v6, %v788_v38  ;;  %v864_v11 = vld [vmem:[%s10469_s15 + $0x110] sm:$0xff]  ;;  %v889_v34 = vld [vmem:[%s10469_s15 + $0x1d8] sm:$0xff] }
 0x1c0   : > { %4089 = vmatmul.mubr.bf16.gmra.mrb[60].mxu0 %v10907_v17  ;;  %4315 = vmatmul.mubr.bf16.gmra.mrb[60].mxu1 %v10907_v17  ;;  %v8350_v28 = vcombine.high %v848_v44, %v856_v47  ;;  %v8349_v31 = vcombine.low %v848_v44, %v856_v47  ;;  %v888_v38 = vld [vmem:[%s10469_s15 + $0x1d0] sm:$0xff]  ;;  %v905_v44 = vld [vmem:[%s10469_s15 + $0x258] sm:$0xff] }
 0x1c1   : > { %4128 = vmatpush1.bf16.msra.mxu0 %v8809_v58  ;;  %4354 = vmatpush1.bf16.msra.mxu1 %v8811_v23  ;;  %13663 = vst [vmem:[#allocation52_spill] sm:$0xff] %v10932_v46  ;;  %v10937_v18 = vpack.c.bf16 %v796_v40, %v790_v19  ;;  %v8352_v58 = vcombine.high %v849_v8, %v857_v48  ;;  %v872_v23 = vld [vmem:[%s10469_s15 + $0x150] sm:$0xff]  ;;  %v881_v19 = vld [vmem:[%s10469_s15 + $0x198] sm:$0xff] }
 0x1c2   : > { %4131 = vmatprep.mubr.bf16.mxu0 %v10720_v43  ;;  %4357 = vmatprep.mubr.bf16.mxu1 %v10720_v43  ;;  %v8366_v0 = vcombine.high %v864_v11, %v872_v23  ;;  %v896_v6 = vld [vmem:[%s10469_s15 + $0x210] sm:$0xff]  ;;  %v8382_v24 = vcombine.high %v880_v39, %v888_v38  ;;  %v897_v40 = vld [vmem:[%s10469_s15 + $0x218] sm:$0xff]  ;;  %v8381_v47 = vcombine.low %v880_v39, %v888_v38 }
 0x1c3   : > { %4129 = vmatprep.subr.bf16.mxu0 %v8826_v30  ;;  %4355 = vmatprep.subr.bf16.mxu1 %v8828_v21  ;;  %13664 = vst [vmem:[#allocation53_spill] sm:$0xff] %v10937_v18  ;;  %v873_v30 = vld [vmem:[%s10469_s15 + $0x158] sm:$0xff]  ;;  %v8351_v21 = vcombine.low %v849_v8, %v857_v48  ;;  %v8383_v8 = vcombine.low %v881_v19, %v889_v34 }
 0x1c4   : > { %v8368_v37 = vcombine.high %v865_v7, %v873_v30  ;;  %v937_v39 = vld [vmem:[%s10469_s15 + $0x358] sm:$0xff] }
 0x1c5   : > { %4130 = vmatpush1.bf16.msra.mxu0 %v8825_v35  ;;  %4356 = vmatpush1.bf16.msra.mxu1 %v8827_v36  ;;  %v8365_v35 = vcombine.low %v864_v11, %v872_v23  ;;  %v8367_v36 = vcombine.low %v865_v7, %v873_v30  ;;  %v920_v11 = vld [vmem:[%s10469_s15 + $0x2d0] sm:$0xff]  ;;  %v8399_v7 = vcombine.low %v897_v40, %v905_v44 }
 0x1c6   : > { %4438 = vmatprep.subr.bf16.mxu0 %v8334_v32  ;;  %4664 = vmatprep.subr.bf16.mxu1 %v8336_v33  ;;  %v8384_v32 = vcombine.high %v881_v19, %v889_v34  ;;  %v904_v33 = vld [vmem:[%s10469_s15 + $0x250] sm:$0xff] }
 0x1c7   : > { %v8398_v48 = vcombine.high %v896_v6, %v904_v33  ;;  %v8397_v23 = vcombine.low %v896_v6, %v904_v33  ;;  %v928_v30 = vld [vmem:[%s10469_s15 + $0x310] sm:$0xff] }
 0x1c8   : > { %4132 = vmatmul.mubr.bf16.vlgmr.msra.gmra.mrb[32].mxu0 %v10716_v41  ;;  %4358 = vmatmul.mubr.bf16.vlgmr.msra.gmra.mrb[32].mxu1 %v10716_v41  ;;  %v952_v6 = vld [vmem:[%s10469_s15 + $0x3d0] sm:$0xff] }
 0x1c9   : > { %4439 = vmatpush1.bf16.msra.mxu0 %v8333_v20  ;;  %4665 = vmatpush1.bf16.msra.mxu1 %v8335_v15  ;;  %v8400_v20 = vcombine.high %v897_v40, %v905_v44  ;;  %v912_v15 = vld [vmem:[%s10469_s15 + $0x290] sm:$0xff] }
 0x1ca   : > { %4141 = vmatprep.mubr.bf16.mxu0 %v10752_v27  ;;  %4367 = vmatprep.mubr.bf16.mxu1 %v10752_v27  ;;  %v8413_v38 = vcombine.low %v912_v15, %v920_v11  ;;  %v960_v44 = vld [vmem:[%s10469_s15 + $0x410] sm:$0xff] }
 0x1cb   : > { %4440 = vmatprep.subr.bf16.mxu0 %v8350_v28  ;;  %4666 = vmatprep.subr.bf16.mxu1 %v8352_v58  ;;  %v913_v28 = vld [vmem:[%s10469_s15 + $0x298] sm:$0xff] }
 0x1cc   : > { %v921_v58 = vld [vmem:[%s10469_s15 + $0x2d8] sm:$0xff] }
 0x1cd   : > { %4441 = vmatpush1.bf16.msra.mxu0 %v8349_v31  ;;  %4667 = vmatpush1.bf16.msra.mxu1 %v8351_v21  ;;  %v8414_v31 = vcombine.high %v912_v15, %v920_v11  ;;  %v8416_v21 = vcombine.high %v913_v28, %v921_v58  ;;  %v8415_v19 = vcombine.low %v913_v28, %v921_v58  ;;  %v969_v15 = vld [vmem:[%s10469_s15 + $0x458] sm:$0xff] }
 0x1ce   : > { %4442 = vmatprep.subr.bf16.mxu0 %v8366_v0  ;;  %4668 = vmatprep.subr.bf16.mxu1 %v8368_v37  ;;  %v936_v0 = vld [vmem:[%s10469_s15 + $0x350] sm:$0xff]  ;;  %v929_v37 = vld [vmem:[%s10469_s15 + $0x318] sm:$0xff] }
 0x1cf   : > { %v8430_v34 = vcombine.high %v928_v30, %v936_v0  ;;  %v8429_v33 = vcombine.low %v928_v30, %v936_v0  ;;  %v8431_v40 = vcombine.low %v929_v37, %v937_v39  ;;  %v984_v30 = vld [vmem:[%s10469_s15 + $0x4d0] sm:$0xff] }
 0x1d0   : > { %4142 = vmatmul.mubr.bf16.gmra.mrb[36].mxu0 %v10748_v25  ;;  %4368 = vmatmul.mubr.bf16.gmra.mrb[36].mxu1 %v10748_v25 }
 0x1d1   : > { %4443 = vmatpush1.bf16.msra.mxu0 %v8365_v35  ;;  %4669 = vmatpush1.bf16.msra.mxu1 %v8367_v36  ;;  %v8432_v35 = vcombine.high %v929_v37, %v937_v39  ;;  %v944_v36 = vld [vmem:[%s10469_s15 + $0x390] sm:$0xff] }
 0x1d2   : > { %4151 = vmatprep.mubr.bf16.mxu0 %v10784_v14  ;;  %4377 = vmatprep.mubr.bf16.mxu1 %v10784_v14  ;;  %v8445_v11 = vcombine.low %v944_v36, %v952_v6  ;;  %v992_v39 = vld [vmem:[%s10469_s15 + $0x510] sm:$0xff] }
 0x1d3   : > { %4444 = vmatprep.subr.bf16.mxu0 %v8382_v24  ;;  %4670 = vmatprep.subr.bf16.mxu1 %v8384_v32  ;;  %v945_v24 = vld [vmem:[%s10469_s15 + $0x398] sm:$0xff] }
 0x1d4   : > { %v953_v32 = vld [vmem:[%s10469_s15 + $0x3d8] sm:$0xff] }
 0x1d5   : > { %4445 = vmatpush1.bf16.msra.mxu0 %v8381_v47  ;;  %4671 = vmatpush1.bf16.msra.mxu1 %v8383_v8  ;;  %v8446_v47 = vcombine.high %v944_v36, %v952_v6  ;;  %v8448_v8 = vcombine.high %v945_v24, %v953_v32  ;;  %v8447_v28 = vcombine.low %v945_v24, %v953_v32  ;;  %v1001_v36 = vld [vmem:[%s10469_s15 + $0x558] sm:$0xff] }
 0x1d6   : > { %4446 = vmatprep.subr.bf16.mxu0 %v8398_v48  ;;  %4672 = vmatprep.subr.bf16.mxu1 %v8400_v20  ;;  %v968_v48 = vld [vmem:[%s10469_s15 + $0x450] sm:$0xff]  ;;  %v961_v20 = vld [vmem:[%s10469_s15 + $0x418] sm:$0xff] }
 0x1d7   : > { %v8462_v58 = vcombine.high %v960_v44, %v968_v48  ;;  %v8461_v0 = vcombine.low %v960_v44, %v968_v48  ;;  %v8463_v37 = vcombine.low %v961_v20, %v969_v15  ;;  %v1016_v44 = vld [vmem:[%s10469_s15 + $0x5d0] sm:$0xff] }
 0x1d8   : > { %4152 = vmatmul.mubr.bf16.gmra.mrb[40].mxu0 %v10780_v10  ;;  %4378 = vmatmul.mubr.bf16.gmra.mrb[40].mxu1 %v10780_v10 }
 0x1d9   : > { %4447 = vmatpush1.bf16.msra.mxu0 %v8397_v23  ;;  %4673 = vmatpush1.bf16.msra.mxu1 %v8399_v7  ;;  %v8464_v23 = vcombine.high %v961_v20, %v969_v15  ;;  %v976_v7 = vld [vmem:[%s10469_s15 + $0x490] sm:$0xff] }
 0x1da   : > { %4161 = vmatprep.mubr.bf16.mxu0 %v10816_v1  ;;  %4387 = vmatprep.mubr.bf16.mxu1 %v10816_v1  ;;  %v8477_v6 = vcombine.low %v976_v7, %v984_v30  ;;  %v1024_v15 = vld [vmem:[%s10469_s15 + $0x610] sm:$0xff] }
 0x1db   : > { %4448 = vmatprep.subr.bf16.mxu0 %v8414_v31  ;;  %4674 = vmatprep.subr.bf16.mxu1 %v8416_v21  ;;  %v977_v31 = vld [vmem:[%s10469_s15 + $0x498] sm:$0xff] }
 0x1dc   : > { %v985_v21 = vld [vmem:[%s10469_s15 + $0x4d8] sm:$0xff] }
 0x1dd   : > { %4449 = vmatpush1.bf16.msra.mxu0 %v8413_v38  ;;  %4675 = vmatpush1.bf16.msra.mxu1 %v8415_v19  ;;  %v8478_v38 = vcombine.high %v976_v7, %v984_v30  ;;  %v8480_v19 = vcombine.high %v977_v31, %v985_v21  ;;  %v8479_v24 = vcombine.low %v977_v31, %v985_v21  ;;  %v1033_v7 = vld [vmem:[%s10469_s15 + $0x658] sm:$0xff] }
 0x1de   : > { %4450 = vmatprep.subr.bf16.mxu0 %v8430_v34  ;;  %4676 = vmatprep.subr.bf16.mxu1 %v8432_v35  ;;  %v1000_v34 = vld [vmem:[%s10469_s15 + $0x550] sm:$0xff]  ;;  %v993_v35 = vld [vmem:[%s10469_s15 + $0x518] sm:$0xff] }
 0x1df   : > { %v8494_v32 = vcombine.high %v992_v39, %v1000_v34  ;;  %v8493_v48 = vcombine.low %v992_v39, %v1000_v34  ;;  %v8495_v20 = vcombine.low %v993_v35, %v1001_v36  ;;  %v1048_v39 = vld [vmem:[%s10469_s15 + $0x6d0] sm:$0xff] }
 0x1e0   : > { %4162 = vmatmul.mubr.bf16.gmra.mrb[44].mxu0 %v10812_v62  ;;  %4388 = vmatmul.mubr.bf16.gmra.mrb[44].mxu1 %v10812_v62 }
 0x1e1   : > { %4451 = vmatpush1.bf16.msra.mxu0 %v8429_v33  ;;  %4677 = vmatpush1.bf16.msra.mxu1 %v8431_v40  ;;  %v8496_v33 = vcombine.high %v993_v35, %v1001_v36  ;;  %v1008_v40 = vld [vmem:[%s10469_s15 + $0x590] sm:$0xff] }
 0x1e2   : > { %4171 = vmatprep.mubr.bf16.mxu0 %v10848_v55  ;;  %4397 = vmatprep.mubr.bf16.mxu1 %v10848_v55  ;;  %v8509_v30 = vcombine.low %v1008_v40, %v1016_v44  ;;  %v1056_v36 = vld [vmem:[%s10469_s15 + $0x710] sm:$0xff] }
 0x1e3   : > { %4452 = vmatprep.subr.bf16.mxu0 %v8446_v47  ;;  %4678 = vmatprep.subr.bf16.mxu1 %v8448_v8  ;;  %v1009_v47 = vld [vmem:[%s10469_s15 + $0x598] sm:$0xff] }
 0x1e4   : > { %v1017_v8 = vld [vmem:[%s10469_s15 + $0x5d8] sm:$0xff] }
 0x1e5   : > { %4453 = vmatpush1.bf16.msra.mxu0 %v8445_v11  ;;  %4679 = vmatpush1.bf16.msra.mxu1 %v8447_v28  ;;  %v8510_v11 = vcombine.high %v1008_v40, %v1016_v44  ;;  %v8512_v28 = vcombine.high %v1009_v47, %v1017_v8  ;;  %v8511_v31 = vcombine.low %v1009_v47, %v1017_v8  ;;  %v1065_v40 = vld [vmem:[%s10469_s15 + $0x758] sm:$0xff] }
 0x1e6   : > { %4454 = vmatprep.subr.bf16.mxu0 %v8462_v58  ;;  %4680 = vmatprep.subr.bf16.mxu1 %v8464_v23  ;;  %v1032_v58 = vld [vmem:[%s10469_s15 + $0x650] sm:$0xff]  ;;  %v1025_v23 = vld [vmem:[%s10469_s15 + $0x618] sm:$0xff] }
 0x1e7   : > { %v8526_v21 = vcombine.high %v1024_v15, %v1032_v58  ;;  %v8525_v34 = vcombine.low %v1024_v15, %v1032_v58  ;;  %v8527_v35 = vcombine.low %v1025_v23, %v1033_v7  ;;  %v1080_v15 = vld [vmem:[%s10469_s15 + $0x7d0] sm:$0xff] }
 0x1e8   : > { %4172 = vmatmul.mubr.bf16.gmra.mrb[48].mxu0 %v10844_v50  ;;  %4398 = vmatmul.mubr.bf16.gmra.mrb[48].mxu1 %v10844_v50 }
 0x1e9   : > { %4455 = vmatpush1.bf16.msra.mxu0 %v8461_v0  ;;  %4681 = vmatpush1.bf16.msra.mxu1 %v8463_v37  ;;  %v8528_v0 = vcombine.high %v1025_v23, %v1033_v7  ;;  %v1040_v37 = vld [vmem:[%s10469_s15 + $0x690] sm:$0xff] }
 0x1ea   : > { %4181 = vmatprep.mubr.bf16.mxu0 %v10880_v2  ;;  %4407 = vmatprep.mubr.bf16.mxu1 %v10880_v2  ;;  %v8541_v44 = vcombine.low %v1040_v37, %v1048_v39  ;;  %v1088_v7 = vld [vmem:[%s10469_s15 + $0x810] sm:$0xff] }
 0x1eb   : > { %4456 = vmatprep.subr.bf16.mxu0 %v8478_v38  ;;  %4682 = vmatprep.subr.bf16.mxu1 %v8480_v19  ;;  %v1041_v38 = vld [vmem:[%s10469_s15 + $0x698] sm:$0xff] }
 0x1ec   : > { %v1049_v19 = vld [vmem:[%s10469_s15 + $0x6d8] sm:$0xff] }
 0x1ed   : > { %4457 = vmatpush1.bf16.msra.mxu0 %v8477_v6  ;;  %4683 = vmatpush1.bf16.msra.mxu1 %v8479_v24  ;;  %v8542_v6 = vcombine.high %v1040_v37, %v1048_v39  ;;  %v8544_v24 = vcombine.high %v1041_v38, %v1049_v19  ;;  %v8543_v47 = vcombine.low %v1041_v38, %v1049_v19  ;;  %v1097_v37 = vld [vmem:[%s10469_s15 + $0x858] sm:$0xff] }
 0x1ee   : > { %4458 = vmatprep.subr.bf16.mxu0 %v8494_v32  ;;  %4684 = vmatprep.subr.bf16.mxu1 %v8496_v33  ;;  %v1064_v32 = vld [vmem:[%s10469_s15 + $0x750] sm:$0xff]  ;;  %v1057_v33 = vld [vmem:[%s10469_s15 + $0x718] sm:$0xff] }
 0x1ef   : > { %v8558_v8 = vcombine.high %v1056_v36, %v1064_v32  ;;  %v8557_v58 = vcombine.low %v1056_v36, %v1064_v32  ;;  %v8559_v23 = vcombine.low %v1057_v33, %v1065_v40  ;;  %v1112_v36 = vld [vmem:[%s10469_s15 + $0x8d0] sm:$0xff] }
 0x1f0   : > { %4182 = vmatmul.mubr.bf16.gmra.mrb[52].mxu0 %v10876_v49  ;;  %4408 = vmatmul.mubr.bf16.gmra.mrb[52].mxu1 %v10876_v49 }
 0x1f1   : > { %4459 = vmatpush1.bf16.msra.mxu0 %v8493_v48  ;;  %4685 = vmatpush1.bf16.msra.mxu1 %v8495_v20  ;;  %v8560_v48 = vcombine.high %v1057_v33, %v1065_v40  ;;  %v1072_v20 = vld [vmem:[%s10469_s15 + $0x790] sm:$0xff] }
 0x1f2   : > { %4191 = vmatprep.mubr.bf16.mxu0 %v10912_v56  ;;  %4417 = vmatprep.mubr.bf16.mxu1 %v10912_v56  ;;  %v8573_v39 = vcombine.low %v1072_v20, %v1080_v15  ;;  %v1120_v40 = vld [vmem:[%s10469_s15 + $0x910] sm:$0xff] }
 0x1f3   : > { %4460 = vmatprep.subr.bf16.mxu0 %v8510_v11  ;;  %4686 = vmatprep.subr.bf16.mxu1 %v8512_v28  ;;  %v1073_v11 = vld [vmem:[%s10469_s15 + $0x798] sm:$0xff] }
 0x1f4   : > { %v1081_v28 = vld [vmem:[%s10469_s15 + $0x7d8] sm:$0xff] }
 0x1f5   : > { %4461 = vmatpush1.bf16.msra.mxu0 %v8509_v30  ;;  %4687 = vmatpush1.bf16.msra.mxu1 %v8511_v31  ;;  %v8574_v30 = vcombine.high %v1072_v20, %v1080_v15  ;;  %v8576_v31 = vcombine.high %v1073_v11, %v1081_v28  ;;  %v8575_v38 = vcombine.low %v1073_v11, %v1081_v28  ;;  %v1129_v20 = vld [vmem:[%s10469_s15 + $0x958] sm:$0xff] }
 0x1f6   : > { %4462 = vmatprep.subr.bf16.mxu0 %v8526_v21  ;;  %4688 = vmatprep.subr.bf16.mxu1 %v8528_v0  ;;  %v1096_v21 = vld [vmem:[%s10469_s15 + $0x850] sm:$0xff]  ;;  %v1089_v0 = vld [vmem:[%s10469_s15 + $0x818] sm:$0xff] }
 0x1f7   : > { %v8590_v19 = vcombine.high %v1088_v7, %v1096_v21  ;;  %v8589_v32 = vcombine.low %v1088_v7, %v1096_v21  ;;  %v8591_v33 = vcombine.low %v1089_v0, %v1097_v37  ;;  %v1144_v7 = vld [vmem:[%s10469_s15 + $0x9d0] sm:$0xff] }
 0x1f8   : > { %4192 = vmatmul.mubr.bf16.gmra.mrb[56].mxu0 %v10905_v4  ;;  %4418 = vmatmul.mubr.bf16.gmra.mrb[56].mxu1 %v10905_v4 }
 0x1f9   : > { %4463 = vmatpush1.bf16.msra.mxu0 %v8525_v34  ;;  %4689 = vmatpush1.bf16.msra.mxu1 %v8527_v35  ;;  %v8592_v34 = vcombine.high %v1089_v0, %v1097_v37  ;;  %v1104_v35 = vld [vmem:[%s10469_s15 + $0x890] sm:$0xff] }
 0x1fa   : > { %4201 = vmatprep.mubr.bf16.mxu0 %v10937_v18  ;;  %4427 = vmatprep.mubr.bf16.mxu1 %v10937_v18  ;;  %v8605_v15 = vcombine.low %v1104_v35, %v1112_v36  ;;  %v1152_v37 = vld [vmem:[%s10469_s15 + $0xa10] sm:$0xff] }
 0x1fb   : > { %4464 = vmatprep.subr.bf16.mxu0 %v8542_v6  ;;  %4690 = vmatprep.subr.bf16.mxu1 %v8544_v24  ;;  %v1105_v6 = vld [vmem:[%s10469_s15 + $0x898] sm:$0xff] }
 0x1fc   : > { %v1113_v24 = vld [vmem:[%s10469_s15 + $0x8d8] sm:$0xff] }
 0x1fd   : > { %4465 = vmatpush1.bf16.msra.mxu0 %v8541_v44  ;;  %4691 = vmatpush1.bf16.msra.mxu1 %v8543_v47  ;;  %v8606_v44 = vcombine.high %v1104_v35, %v1112_v36  ;;  %v8608_v47 = vcombine.high %v1105_v6, %v1113_v24  ;;  %v8607_v11 = vcombine.low %v1105_v6, %v1113_v24  ;;  %v1161_v35 = vld [vmem:[%s10469_s15 + $0xa58] sm:$0xff] }
 0x1fe   : > { %4466 = vmatprep.subr.bf16.mxu0 %v8558_v8  ;;  %4692 = vmatprep.subr.bf16.mxu1 %v8560_v48  ;;  %v1128_v8 = vld [vmem:[%s10469_s15 + $0x950] sm:$0xff]  ;;  %v1121_v48 = vld [vmem:[%s10469_s15 + $0x918] sm:$0xff] }
 0x1ff   : > { %v8622_v28 = vcombine.high %v1120_v40, %v1128_v8  ;;  %v8621_v21 = vcombine.low %v1120_v40, %v1128_v8  ;;  %v8623_v0 = vcombine.low %v1121_v48, %v1129_v20  ;;  %v1176_v40 = vld [vmem:[%s10469_s15 + $0xad0] sm:$0xff] }
 0x200   : > { %4202 = vmatmul.mubr.bf16.gmra.mrb[60].mxu0 %v10932_v46  ;;  %4428 = vmatmul.mubr.bf16.gmra.mrb[60].mxu1 %v10932_v46 }
 0x201   : > { %4467 = vmatpush1.bf16.msra.mxu0 %v8557_v58  ;;  %4693 = vmatpush1.bf16.msra.mxu1 %v8559_v23  ;;  %v8624_v58 = vcombine.high %v1121_v48, %v1129_v20  ;;  %v1136_v23 = vld [vmem:[%s10469_s15 + $0x990] sm:$0xff] }
 0x202   : > { %4470 = vmatprep.mubr.bf16.mxu0 %v10691_v12  ;;  %4696 = vmatprep.mubr.bf16.mxu1 %v10691_v12  ;;  %v8637_v36 = vcombine.low %v1136_v23, %v1144_v7  ;;  %v1184_v20 = vld [vmem:[%s10469_s15 + $0xb10] sm:$0xff] }
 0x203   : > { %4468 = vmatprep.subr.bf16.mxu0 %v8574_v30  ;;  %4694 = vmatprep.subr.bf16.mxu1 %v8576_v31  ;;  %v1137_v30 = vld [vmem:[%s10469_s15 + $0x998] sm:$0xff] }
 0x204   : > { %v1145_v31 = vld [vmem:[%s10469_s15 + $0x9d8] sm:$0xff] }
 0x205   : > { %4469 = vmatpush1.bf16.msra.mxu0 %v8573_v39  ;;  %4695 = vmatpush1.bf16.msra.mxu1 %v8575_v38  ;;  %v8638_v39 = vcombine.high %v1136_v23, %v1144_v7  ;;  %v8640_v38 = vcombine.high %v1137_v30, %v1145_v31  ;;  %v8639_v6 = vcombine.low %v1137_v30, %v1145_v31  ;;  %v1193_v23 = vld [vmem:[%s10469_s15 + $0xb58] sm:$0xff] }
 0x206   : > { %4551 = vmatprep.subr.bf16.mxu0 %v8590_v19  ;;  %4777 = vmatprep.subr.bf16.mxu1 %v8592_v34  ;;  %v1160_v19 = vld [vmem:[%s10469_s15 + $0xa50] sm:$0xff]  ;;  %v1153_v34 = vld [vmem:[%s10469_s15 + $0xa18] sm:$0xff] }
 0x207   : > { %v8654_v24 = vcombine.high %v1152_v37, %v1160_v19  ;;  %v8653_v8 = vcombine.low %v1152_v37, %v1160_v19  ;;  %v8655_v48 = vcombine.low %v1153_v34, %v1161_v35  ;;  %v1208_v37 = vld [vmem:[%s10469_s15 + $0xbd0] sm:$0xff] }
 0x208   : > { %4471 = vmatmul.mubr.bf16.vlgmr.msra.gmra.mrb[64].mxu0 %v10686_v9  ;;  %4697 = vmatmul.mubr.bf16.vlgmr.msra.gmra.mrb[64].mxu1 %v10686_v9 }
 0x209   : > { %4552 = vmatpush1.bf16.msra.mxu0 %v8589_v32  ;;  %4778 = vmatpush1.bf16.msra.mxu1 %v8591_v33  ;;  %v8656_v32 = vcombine.high %v1153_v34, %v1161_v35  ;;  %v1168_v33 = vld [vmem:[%s10469_s15 + $0xa90] sm:$0xff] }
 0x20a   : > { %4480 = vmatprep.mubr.bf16.mxu0 %v10722_v45  ;;  %4706 = vmatprep.mubr.bf16.mxu1 %v10722_v45  ;;  %v8669_v7 = vcombine.low %v1168_v33, %v1176_v40  ;;  %v1216_v35 = vld [vmem:[%s10469_s15 + $0xc10] sm:$0xff] }
 0x20b   : > { %4553 = vmatprep.subr.bf16.mxu0 %v8606_v44  ;;  %4779 = vmatprep.subr.bf16.mxu1 %v8608_v47  ;;  %v1169_v44 = vld [vmem:[%s10469_s15 + $0xa98] sm:$0xff] }
 0x20c   : > { %v1177_v47 = vld [vmem:[%s10469_s15 + $0xad8] sm:$0xff] }
 0x20d   : > { %4554 = vmatpush1.bf16.msra.mxu0 %v8605_v15  ;;  %4780 = vmatpush1.bf16.msra.mxu1 %v8607_v11  ;;  %v8670_v15 = vcombine.high %v1168_v33, %v1176_v40  ;;  %v8672_v11 = vcombine.high %v1169_v44, %v1177_v47  ;;  %v8671_v30 = vcombine.low %v1169_v44, %v1177_v47  ;;  %v1225_v33 = vld [vmem:[%s10469_s15 + $0xc58] sm:$0xff] }
 0x20e   : > { %4555 = vmatprep.subr.bf16.mxu0 %v8622_v28  ;;  %4781 = vmatprep.subr.bf16.mxu1 %v8624_v58  ;;  %v1192_v28 = vld [vmem:[%s10469_s15 + $0xb50] sm:$0xff]  ;;  %v1185_v58 = vld [vmem:[%s10469_s15 + $0xb18] sm:$0xff] }
 0x20f   : > { %v8686_v31 = vcombine.high %v1184_v20, %v1192_v28  ;;  %v8685_v19 = vcombine.low %v1184_v20, %v1192_v28  ;;  %v8687_v34 = vcombine.low %v1185_v58, %v1193_v23  ;;  %v1240_v20 = vld [vmem:[%s10469_s15 + $0xcd0] sm:$0xff] }
 0x210   : > { %4481 = vmatmul.mubr.bf16.gmra.mrb[68].mxu0 %v10718_v42  ;;  %4707 = vmatmul.mubr.bf16.gmra.mrb[68].mxu1 %v10718_v42 }
 0x211   : > { %4556 = vmatpush1.bf16.msra.mxu0 %v8621_v21  ;;  %4782 = vmatpush1.bf16.msra.mxu1 %v8623_v0  ;;  %v8688_v21 = vcombine.high %v1185_v58, %v1193_v23  ;;  %v1200_v0 = vld [vmem:[%s10469_s15 + $0xb90] sm:$0xff] }
 0x212   : > { %4490 = vmatprep.mubr.bf16.mxu0 %v10754_v29  ;;  %4716 = vmatprep.mubr.bf16.mxu1 %v10754_v29  ;;  %v8701_v40 = vcombine.low %v1200_v0, %v1208_v37  ;;  %v1248_v23 = vld [vmem:[%s10469_s15 + $0xd10] sm:$0xff] }
 0x213   : > { %4557 = vmatprep.subr.bf16.mxu0 %v8638_v39  ;;  %4783 = vmatprep.subr.bf16.mxu1 %v8640_v38  ;;  %v1201_v39 = vld [vmem:[%s10469_s15 + $0xb98] sm:$0xff] }
 0x214   : > { %v1209_v38 = vld [vmem:[%s10469_s15 + $0xbd8] sm:$0xff] }
 0x215   : > { %4558 = vmatpush1.bf16.msra.mxu0 %v8637_v36  ;;  %4784 = vmatpush1.bf16.msra.mxu1 %v8639_v6  ;;  %v8702_v36 = vcombine.high %v1200_v0, %v1208_v37  ;;  %v8704_v6 = vcombine.high %v1201_v39, %v1209_v38  ;;  %v8703_v44 = vcombine.low %v1201_v39, %v1209_v38  ;;  %v1257_v0 = vld [vmem:[%s10469_s15 + $0xd58] sm:$0xff] }
 0x216   : > { %4559 = vmatprep.subr.bf16.mxu0 %v8654_v24  ;;  %4785 = vmatprep.subr.bf16.mxu1 %v8656_v32  ;;  %v1224_v24 = vld [vmem:[%s10469_s15 + $0xc50] sm:$0xff]  ;;  %v1217_v32 = vld [vmem:[%s10469_s15 + $0xc18] sm:$0xff] }
 0x217   : > { %v8718_v47 = vcombine.high %v1216_v35, %v1224_v24  ;;  %v8717_v28 = vcombine.low %v1216_v35, %v1224_v24  ;;  %v8719_v58 = vcombine.low %v1217_v32, %v1225_v33  ;;  %v1272_v35 = vld [vmem:[%s10469_s15 + $0xdd0] sm:$0xff] }
 0x218   : > { %4491 = vmatmul.mubr.bf16.gmra.mrb[72].mxu0 %v10750_v26  ;;  %4717 = vmatmul.mubr.bf16.gmra.mrb[72].mxu1 %v10750_v26 }
 0x219   : > { %4560 = vmatpush1.bf16.msra.mxu0 %v8653_v8  ;;  %4786 = vmatpush1.bf16.msra.mxu1 %v8655_v48  ;;  %v8720_v8 = vcombine.high %v1217_v32, %v1225_v33  ;;  %v1232_v48 = vld [vmem:[%s10469_s15 + $0xc90] sm:$0xff] }
 0x21a   : > { %4500 = vmatprep.mubr.bf16.mxu0 %v10786_v16  ;;  %4726 = vmatprep.mubr.bf16.mxu1 %v10786_v16  ;;  %v8733_v37 = vcombine.low %v1232_v48, %v1240_v20  ;;  %v1280_v33 = vld [vmem:[%s10469_s15 + $0xe10] sm:$0xff] }
 0x21b   : > { %4561 = vmatprep.subr.bf16.mxu0 %v8670_v15  ;;  %4787 = vmatprep.subr.bf16.mxu1 %v8672_v11  ;;  %v1233_v15 = vld [vmem:[%s10469_s15 + $0xc98] sm:$0xff] }
 0x21c   : > { %v1241_v11 = vld [vmem:[%s10469_s15 + $0xcd8] sm:$0xff] }
 0x21d   : > { %4562 = vmatpush1.bf16.msra.mxu0 %v8669_v7  ;;  %4788 = vmatpush1.bf16.msra.mxu1 %v8671_v30  ;;  %v8734_v7 = vcombine.high %v1232_v48, %v1240_v20  ;;  %v8736_v30 = vcombine.high %v1233_v15, %v1241_v11  ;;  %v8735_v39 = vcombine.low %v1233_v15, %v1241_v11  ;;  %v1289_v48 = vld [vmem:[%s10469_s15 + $0xe58] sm:$0xff] }
 0x21e   : > { %4563 = vmatprep.subr.bf16.mxu0 %v8686_v31  ;;  %4789 = vmatprep.subr.bf16.mxu1 %v8688_v21  ;;  %v1256_v31 = vld [vmem:[%s10469_s15 + $0xd50] sm:$0xff]  ;;  %v1249_v21 = vld [vmem:[%s10469_s15 + $0xd18] sm:$0xff] }
 0x21f   : > { %v8750_v38 = vcombine.high %v1248_v23, %v1256_v31  ;;  %v8749_v24 = vcombine.low %v1248_v23, %v1256_v31  ;;  %v8751_v32 = vcombine.low %v1249_v21, %v1257_v0  ;;  %v1304_v23 = vld [vmem:[%s10469_s15 + $0xed0] sm:$0xff] }
 0x220   : > { %4501 = vmatmul.mubr.bf16.gmra.mrb[76].mxu0 %v10782_v13  ;;  %4727 = vmatmul.mubr.bf16.gmra.mrb[76].mxu1 %v10782_v13 }
 0x221   : > { %4564 = vmatpush1.bf16.msra.mxu0 %v8685_v19  ;;  %4790 = vmatpush1.bf16.msra.mxu1 %v8687_v34  ;;  %v8752_v19 = vcombine.high %v1249_v21, %v1257_v0  ;;  %v1264_v34 = vld [vmem:[%s10469_s15 + $0xd90] sm:$0xff] }
 0x222   : > { %4510 = vmatprep.mubr.bf16.mxu0 %v10818_v3  ;;  %4736 = vmatprep.mubr.bf16.mxu1 %v10818_v3  ;;  %v8765_v20 = vcombine.low %v1264_v34, %v1272_v35  ;;  %v1312_v0 = vld [vmem:[%s10469_s15 + $0xf10] sm:$0xff] }
 0x223   : > { %4565 = vmatprep.subr.bf16.mxu0 %v8702_v36  ;;  %4791 = vmatprep.subr.bf16.mxu1 %v8704_v6  ;;  %v1265_v36 = vld [vmem:[%s10469_s15 + $0xd98] sm:$0xff] }
 0x224   : > { %v1273_v6 = vld [vmem:[%s10469_s15 + $0xdd8] sm:$0xff] }
 0x225   : > { %4566 = vmatpush1.bf16.msra.mxu0 %v8701_v40  ;;  %4792 = vmatpush1.bf16.msra.mxu1 %v8703_v44  ;;  %v8766_v40 = vcombine.high %v1264_v34, %v1272_v35  ;;  %v8768_v44 = vcombine.high %v1265_v36, %v1273_v6  ;;  %v8767_v15 = vcombine.low %v1265_v36, %v1273_v6  ;;  %v1321_v34 = vld [vmem:[%s10469_s15 + $0xf58] sm:$0xff] }
 0x226   : > { %4567 = vmatprep.subr.bf16.mxu0 %v8718_v47  ;;  %4793 = vmatprep.subr.bf16.mxu1 %v8720_v8  ;;  %v1288_v47 = vld [vmem:[%s10469_s15 + $0xe50] sm:$0xff]  ;;  %v1281_v8 = vld [vmem:[%s10469_s15 + $0xe18] sm:$0xff] }
 0x227   : > { %v8782_v11 = vcombine.high %v1280_v33, %v1288_v47  ;;  %v8781_v31 = vcombine.low %v1280_v33, %v1288_v47  ;;  %v8783_v21 = vcombine.low %v1281_v8, %v1289_v48  ;;  %v1336_v33 = vld [vmem:[%s10469_s15 + $0xfd0] sm:$0xff] }
 0x228   : > { %4511 = vmatmul.mubr.bf16.gmra.mrb[80].mxu0 %v10814_v63  ;;  %4737 = vmatmul.mubr.bf16.gmra.mrb[80].mxu1 %v10814_v63 }
 0x229   : > { %4568 = vmatpush1.bf16.msra.mxu0 %v8717_v28  ;;  %4794 = vmatpush1.bf16.msra.mxu1 %v8719_v58  ;;  %v8784_v28 = vcombine.high %v1281_v8, %v1289_v48  ;;  %v1296_v58 = vld [vmem:[%s10469_s15 + $0xe90] sm:$0xff]  ;;  %v834_v48 = vld [vmem:[%s10469_s15 + $0x20] sm:$0xff] }
 0x22a   : > { %4520 = vmatprep.mubr.bf16.mxu0 %v10850_v61  ;;  %4746 = vmatprep.mubr.bf16.mxu1 %v10850_v61  ;;  %v8797_v35 = vcombine.low %v1296_v58, %v1304_v23 }
 0x22b   : > { %4569 = vmatprep.subr.bf16.mxu0 %v8734_v7  ;;  %4795 = vmatprep.subr.bf16.mxu1 %v8736_v30  ;;  %v1297_v7 = vld [vmem:[%s10469_s15 + $0xe98] sm:$0xff] }
 0x22c   : > { %v1305_v30 = vld [vmem:[%s10469_s15 + $0xed8] sm:$0xff] }
 0x22d   : > { %4570 = vmatpush1.bf16.msra.mxu0 %v8733_v37  ;;  %4796 = vmatpush1.bf16.msra.mxu1 %v8735_v39  ;;  %v8798_v37 = vcombine.high %v1296_v58, %v1304_v23  ;;  %v8800_v39 = vcombine.high %v1297_v7, %v1305_v30  ;;  %v8799_v36 = vcombine.low %v1297_v7, %v1305_v30  ;;  %v843_v58 = vld [vmem:[%s10469_s15 + $0x68] sm:$0xff] }
 0x22e   : > { %4571 = vmatprep.subr.bf16.mxu0 %v8750_v38  ;;  %4797 = vmatprep.subr.bf16.mxu1 %v8752_v19  ;;  %v1320_v38 = vld [vmem:[%s10469_s15 + $0xf50] sm:$0xff]  ;;  %v1313_v19 = vld [vmem:[%s10469_s15 + $0xf18] sm:$0xff] }
 0x22f   : > { %v8814_v6 = vcombine.high %v1312_v0, %v1320_v38  ;;  %v8813_v47 = vcombine.low %v1312_v0, %v1320_v38  ;;  %v8815_v8 = vcombine.low %v1313_v19, %v1321_v34  ;;  %v858_v0 = vld [vmem:[%s10469_s15 + $0xe0] sm:$0xff] }
 0x230   : > { %4521 = vmatmul.mubr.bf16.gmra.mrb[84].mxu0 %v10846_v53  ;;  %4747 = vmatmul.mubr.bf16.gmra.mrb[84].mxu1 %v10846_v53 }
 0x231   : > { %4572 = vmatpush1.bf16.msra.mxu0 %v8749_v24  ;;  %4798 = vmatpush1.bf16.msra.mxu1 %v8751_v32  ;;  %v8816_v24 = vcombine.high %v1313_v19, %v1321_v34  ;;  %v1328_v32 = vld [vmem:[%s10469_s15 + $0xf90] sm:$0xff]  ;;  %v866_v34 = vld [vmem:[%s10469_s15 + $0x120] sm:$0xff] }
 0x232   : > { %4530 = vmatprep.mubr.bf16.mxu0 %v10882_v5  ;;  %4756 = vmatprep.mubr.bf16.mxu1 %v10882_v5  ;;  %v8829_v23 = vcombine.low %v1328_v32, %v1336_v33 }
 0x233   : > { %4573 = vmatprep.subr.bf16.mxu0 %v8766_v40  ;;  %4799 = vmatprep.subr.bf16.mxu1 %v8768_v44  ;;  %v1329_v40 = vld [vmem:[%s10469_s15 + $0xf98] sm:$0xff] }
 0x234   : > { %v1337_v44 = vld [vmem:[%s10469_s15 + $0xfd8] sm:$0xff] }
 0x235   : > { %4574 = vmatpush1.bf16.msra.mxu0 %v8765_v20  ;;  %4800 = vmatpush1.bf16.msra.mxu1 %v8767_v15  ;;  %v8830_v20 = vcombine.high %v1328_v32, %v1336_v33  ;;  %v8832_v15 = vcombine.high %v1329_v40, %v1337_v44  ;;  %v8831_v7 = vcombine.low %v1329_v40, %v1337_v44  ;;  %v875_v32 = vld [vmem:[%s10469_s15 + $0x168] sm:$0xff] }
 0x236   : > { %4575 = vmatprep.subr.bf16.mxu0 %v8782_v11  ;;  %4801 = vmatprep.subr.bf16.mxu1 %v8784_v28  ;;  %v842_v11 = vld [vmem:[%s10469_s15 + $0x60] sm:$0xff]  ;;  %v835_v28 = vld [vmem:[%s10469_s15 + $0x28] sm:$0xff] }
 0x237   : > { %v8338_v30 = vcombine.high %v834_v48, %v842_v11  ;;  %v8337_v38 = vcombine.low %v834_v48, %v842_v11  ;;  %v8339_v19 = vcombine.low %v835_v28, %v843_v58  ;;  %v890_v48 = vld [vmem:[%s10469_s15 + $0x1e0] sm:$0xff] }
 0x238   : > { %4531 = vmatmul.mubr.bf16.gmra.mrb[88].mxu0 %v10878_v57  ;;  %4757 = vmatmul.mubr.bf16.gmra.mrb[88].mxu1 %v10878_v57  ;;  %v11498_v57 = vld [vmem:[%s10469_s15 + $0xee0] sm:$0xff] }
 0x239   : > { %4576 = vmatpush1.bf16.msra.mxu0 %v8781_v31  ;;  %4802 = vmatpush1.bf16.msra.mxu1 %v8783_v21  ;;  %v8340_v31 = vcombine.high %v835_v28, %v843_v58  ;;  %v850_v21 = vld [vmem:[%s10469_s15 + $0xa0] sm:$0xff] }
 0x23a   : > { %4540 = vmatprep.mubr.bf16.mxu0 %v10914_v22  ;;  %4766 = vmatprep.mubr.bf16.mxu1 %v10914_v22  ;;  %v8353_v33 = vcombine.low %v850_v21, %v858_v0  ;;  %v898_v58 = vld [vmem:[%s10469_s15 + $0x220] sm:$0xff] }
 0x23b   : > { %4577 = vmatprep.subr.bf16.mxu0 %v8798_v37  ;;  %4803 = vmatprep.subr.bf16.mxu1 %v8800_v39  ;;  %v851_v37 = vld [vmem:[%s10469_s15 + $0xa8] sm:$0xff]  ;;  %v11495_v22 = vld [vmem:[%s10469_s15 + $0xea0] sm:$0xff] }
 0x23c   : > { %v859_v39 = vld [vmem:[%s10469_s15 + $0xe8] sm:$0xff] }
 0x23d   : > { %4578 = vmatpush1.bf16.msra.mxu0 %v8797_v35  ;;  %4804 = vmatpush1.bf16.msra.mxu1 %v8799_v36  ;;  %v8354_v35 = vcombine.high %v850_v21, %v858_v0  ;;  %v8356_v36 = vcombine.high %v851_v37, %v859_v39  ;;  %v8355_v40 = vcombine.low %v851_v37, %v859_v39  ;;  %v907_v21 = vld [vmem:[%s10469_s15 + $0x268] sm:$0xff] }
 0x23e   : > { %4579 = vmatprep.subr.bf16.mxu0 %v8814_v6  ;;  %4805 = vmatprep.subr.bf16.mxu1 %v8816_v24  ;;  %v874_v6 = vld [vmem:[%s10469_s15 + $0x160] sm:$0xff]  ;;  %v867_v24 = vld [vmem:[%s10469_s15 + $0x128] sm:$0xff] }
 0x23f   : > { %v8370_v44 = vcombine.high %v866_v34, %v874_v6  ;;  %v8369_v11 = vcombine.low %v866_v34, %v874_v6  ;;  %v8371_v28 = vcombine.low %v867_v24, %v875_v32  ;;  %v922_v34 = vld [vmem:[%s10469_s15 + $0x2e0] sm:$0xff] }
 0x240   : > { %4541 = vmatmul.mubr.bf16.gmra.mrb[92].mxu0 %v10907_v17  ;;  %4767 = vmatmul.mubr.bf16.gmra.mrb[92].mxu1 %v10907_v17  ;;  %v11518_v17 = vld [vmem:[%s10469_s15 + $0xf60] sm:$0xff] }
 0x241   : > { %4580 = vmatpush1.bf16.msra.mxu0 %v8813_v47  ;;  %4806 = vmatpush1.bf16.msra.mxu1 %v8815_v8  ;;  %v8372_v47 = vcombine.high %v867_v24, %v875_v32  ;;  %v882_v8 = vld [vmem:[%s10469_s15 + $0x1a0] sm:$0xff]  ;;  %13676 = vst [vmem:[#allocation62_spill] sm:$0xff] %v11518_v17  ;;  %v11611_v17 = vld [vmem:[%s10469_s15 + $0xb8] sm:$0xff] }
 0x242   : > { %4583 = vmatprep.mubr.bf16.mxu0 %v10720_v43  ;;  %4809 = vmatprep.mubr.bf16.mxu1 %v10720_v43  ;;  %v8385_v0 = vcombine.low %v882_v8, %v890_v48  ;;  %v930_v32 = vld [vmem:[%s10469_s15 + $0x320] sm:$0xff]  ;;  %v11480_v43 = vld [vmem:[%s10469_s15 + $0xe68] sm:$0xff]  ;;  %13689 = vst [vmem:[#allocation69_spill] sm:$0xff] %v11611_v17 }
 0x243   : > { %4581 = vmatprep.subr.bf16.mxu0 %v8830_v20  ;;  %4807 = vmatprep.subr.bf16.mxu1 %v8832_v15  ;;  %v883_v20 = vld [vmem:[%s10469_s15 + $0x1a8] sm:$0xff]  ;;  %13671 = vst [vmem:[#allocation59_spill] sm:$0xff] %v11480_v43  ;;  %v11597_v43 = vld [vmem:[%s10469_s15 + $0xb0] sm:$0xff] }
 0x244   : > { %v891_v15 = vld [vmem:[%s10469_s15 + $0x1e8] sm:$0xff] }
 0x245   : > { %4582 = vmatpush1.bf16.msra.mxu0 %v8829_v23  ;;  %4808 = vmatpush1.bf16.msra.mxu1 %v8831_v7  ;;  %v8386_v23 = vcombine.high %v882_v8, %v890_v48  ;;  %v8388_v7 = vcombine.high %v883_v20, %v891_v15  ;;  %v8387_v37 = vcombine.low %v883_v20, %v891_v15  ;;  %v939_v8 = vld [vmem:[%s10469_s15 + $0x368] sm:$0xff] }
 0x246   : > { %4890 = vmatprep.subr.bf16.mxu0 %v8338_v30  ;;  %5116 = vmatprep.subr.bf16.mxu1 %v8340_v31  ;;  %v906_v30 = vld [vmem:[%s10469_s15 + $0x260] sm:$0xff]  ;;  %v899_v31 = vld [vmem:[%s10469_s15 + $0x228] sm:$0xff] }
 0x247   : > { %v8402_v39 = vcombine.high %v898_v58, %v906_v30  ;;  %v8401_v6 = vcombine.low %v898_v58, %v906_v30  ;;  %v8403_v24 = vcombine.low %v899_v31, %v907_v21  ;;  %v954_v58 = vld [vmem:[%s10469_s15 + $0x3e0] sm:$0xff] }
 0x248   : > { %4584 = vmatmul.mubr.bf16.vlgmr.msra.gmra.mrb[64].mxu0 %v10716_v41  ;;  %4810 = vmatmul.mubr.bf16.vlgmr.msra.gmra.mrb[64].mxu1 %v10716_v41  ;;  %v11477_v41 = vld [vmem:[%s10469_s15 + $0xe28] sm:$0xff] }
 0x249   : > { %4891 = vmatpush1.bf16.msra.mxu0 %v8337_v38  ;;  %5117 = vmatpush1.bf16.msra.mxu1 %v8339_v19  ;;  %v8404_v38 = vcombine.high %v899_v31, %v907_v21  ;;  %v914_v19 = vld [vmem:[%s10469_s15 + $0x2a0] sm:$0xff]  ;;  %13670 = vst [vmem:[#allocation58_spill] sm:$0xff] %v11477_v41  ;;  %v11573_v41 = vld [vmem:[%s10469_s15 + $0x30] sm:$0xff] }
 0x24a   : > { %4593 = vmatprep.mubr.bf16.mxu0 %v10752_v27  ;;  %4819 = vmatprep.mubr.bf16.mxu1 %v10752_v27  ;;  %v8417_v48 = vcombine.low %v914_v19, %v922_v34  ;;  %v962_v21 = vld [vmem:[%s10469_s15 + $0x420] sm:$0xff]  ;;  %13684 = vst [vmem:[#allocation66_spill] sm:$0xff] %v11573_v41  ;;  %v11652_v41 = vld [vmem:[%s10469_s15 + $0x1f0] sm:$0xff] }
 0x24b   : > { %4892 = vmatprep.subr.bf16.mxu0 %v8354_v35  ;;  %5118 = vmatprep.subr.bf16.mxu1 %v8356_v36  ;;  %v915_v35 = vld [vmem:[%s10469_s15 + $0x2a8] sm:$0xff]  ;;  %v11463_v27 = vld [vmem:[%s10469_s15 + $0xe20] sm:$0xff]  ;;  %13697 = vst [vmem:[#allocation75_spill] sm:$0xff] %v11652_v41 }
 0x24c   : > { %v923_v36 = vld [vmem:[%s10469_s15 + $0x2e8] sm:$0xff] }
 0x24d   : > { %4893 = vmatpush1.bf16.msra.mxu0 %v8353_v33  ;;  %5119 = vmatpush1.bf16.msra.mxu1 %v8355_v40  ;;  %v8418_v33 = vcombine.high %v914_v19, %v922_v34  ;;  %v8420_v40 = vcombine.high %v915_v35, %v923_v36  ;;  %v8419_v20 = vcombine.low %v915_v35, %v923_v36  ;;  %v971_v19 = vld [vmem:[%s10469_s15 + $0x468] sm:$0xff] }
 0x24e   : > { %4894 = vmatprep.subr.bf16.mxu0 %v8370_v44  ;;  %5120 = vmatprep.subr.bf16.mxu1 %v8372_v47  ;;  %v938_v44 = vld [vmem:[%s10469_s15 + $0x360] sm:$0xff]  ;;  %v931_v47 = vld [vmem:[%s10469_s15 + $0x328] sm:$0xff] }
 0x24f   : > { %v8434_v15 = vcombine.high %v930_v32, %v938_v44  ;;  %v8433_v30 = vcombine.low %v930_v32, %v938_v44  ;;  %v8435_v31 = vcombine.low %v931_v47, %v939_v8  ;;  %v986_v32 = vld [vmem:[%s10469_s15 + $0x4e0] sm:$0xff] }
 0x250   : > { %4594 = vmatmul.mubr.bf16.gmra.mrb[68].mxu0 %v10748_v25  ;;  %4820 = vmatmul.mubr.bf16.gmra.mrb[68].mxu1 %v10748_v25  ;;  %v11460_v25 = vld [vmem:[%s10469_s15 + $0xde8] sm:$0xff] }
 0x251   : > { %4895 = vmatpush1.bf16.msra.mxu0 %v8369_v11  ;;  %5121 = vmatpush1.bf16.msra.mxu1 %v8371_v28  ;;  %v8436_v11 = vcombine.high %v931_v47, %v939_v8  ;;  %v946_v28 = vld [vmem:[%s10469_s15 + $0x3a0] sm:$0xff]  ;;  %13669 = vst [vmem:[#allocation57_spill] sm:$0xff] %v11460_v25 }
 0x252   : > { %4603 = vmatprep.mubr.bf16.mxu0 %v10784_v14  ;;  %4829 = vmatprep.mubr.bf16.mxu1 %v10784_v14  ;;  %v8449_v34 = vcombine.low %v946_v28, %v954_v58  ;;  %v994_v8 = vld [vmem:[%s10469_s15 + $0x520] sm:$0xff] }
 0x253   : > { %4896 = vmatprep.subr.bf16.mxu0 %v8386_v23  ;;  %5122 = vmatprep.subr.bf16.mxu1 %v8388_v7  ;;  %v947_v23 = vld [vmem:[%s10469_s15 + $0x3a8] sm:$0xff]  ;;  %v11428_v14 = vld [vmem:[%s10469_s15 + $0xd60] sm:$0xff] }
 0x254   : > { %v955_v7 = vld [vmem:[%s10469_s15 + $0x3e8] sm:$0xff]  ;;  %v11552_v25 = vld [vmem:[%s10469_s15 + $0xfe0] sm:$0xff] }
 0x255   : > { %4897 = vmatpush1.bf16.msra.mxu0 %v8385_v0  ;;  %5123 = vmatpush1.bf16.msra.mxu1 %v8387_v37  ;;  %v8450_v0 = vcombine.high %v946_v28, %v954_v58  ;;  %v8452_v37 = vcombine.high %v947_v23, %v955_v7  ;;  %v8451_v35 = vcombine.low %v947_v23, %v955_v7  ;;  %v1003_v28 = vld [vmem:[%s10469_s15 + $0x568] sm:$0xff] }
 0x256   : > { %4898 = vmatprep.subr.bf16.mxu0 %v8402_v39  ;;  %5124 = vmatprep.subr.bf16.mxu1 %v8404_v38  ;;  %v970_v39 = vld [vmem:[%s10469_s15 + $0x460] sm:$0xff]  ;;  %v963_v38 = vld [vmem:[%s10469_s15 + $0x428] sm:$0xff]  ;;  %13681 = vst [vmem:[#allocation65_spill] sm:$0xff] %v11552_v25  ;;  %v11631_v25 = vld [vmem:[%s10469_s15 + $0x138] sm:$0xff] }
 0x257   : > { %v8466_v36 = vcombine.high %v962_v21, %v970_v39  ;;  %v8465_v44 = vcombine.low %v962_v21, %v970_v39  ;;  %v8467_v47 = vcombine.low %v963_v38, %v971_v19  ;;  %v1018_v21 = vld [vmem:[%s10469_s15 + $0x5e0] sm:$0xff]  ;;  %13692 = vst [vmem:[#allocation72_spill] sm:$0xff] %v11631_v25 }
 0x258   : > { %4604 = vmatmul.mubr.bf16.gmra.mrb[72].mxu0 %v10780_v10  ;;  %4830 = vmatmul.mubr.bf16.gmra.mrb[72].mxu1 %v10780_v10  ;;  %v11413_v10 = vld [vmem:[%s10469_s15 + $0xce8] sm:$0xff] }
 0x259   : > { %4899 = vmatpush1.bf16.msra.mxu0 %v8401_v6  ;;  %5125 = vmatpush1.bf16.msra.mxu1 %v8403_v24  ;;  %v8468_v6 = vcombine.high %v963_v38, %v971_v19  ;;  %v978_v24 = vld [vmem:[%s10469_s15 + $0x4a0] sm:$0xff] }
 0x25a   : > { %4613 = vmatprep.mubr.bf16.mxu0 %v10816_v1  ;;  %4839 = vmatprep.mubr.bf16.mxu1 %v10816_v1  ;;  %v8481_v58 = vcombine.low %v978_v24, %v986_v32  ;;  %v1026_v19 = vld [vmem:[%s10469_s15 + $0x620] sm:$0xff]  ;;  %v11410_v1 = vld [vmem:[%s10469_s15 + $0xca8] sm:$0xff] }
 0x25b   : > { %4900 = vmatprep.subr.bf16.mxu0 %v8418_v33  ;;  %5126 = vmatprep.subr.bf16.mxu1 %v8420_v40  ;;  %v979_v33 = vld [vmem:[%s10469_s15 + $0x4a8] sm:$0xff] }
 0x25c   : > { %v987_v40 = vld [vmem:[%s10469_s15 + $0x4e8] sm:$0xff] }
 0x25d   : > { %4901 = vmatpush1.bf16.msra.mxu0 %v8417_v48  ;;  %5127 = vmatpush1.bf16.msra.mxu1 %v8419_v20  ;;  %v8482_v48 = vcombine.high %v978_v24, %v986_v32  ;;  %v8484_v20 = vcombine.high %v979_v33, %v987_v40  ;;  %v8483_v23 = vcombine.low %v979_v33, %v987_v40  ;;  %v1035_v24 = vld [vmem:[%s10469_s15 + $0x668] sm:$0xff] }
 0x25e   : > { %4902 = vmatprep.subr.bf16.mxu0 %v8434_v15  ;;  %5128 = vmatprep.subr.bf16.mxu1 %v8436_v11  ;;  %v1002_v15 = vld [vmem:[%s10469_s15 + $0x560] sm:$0xff]  ;;  %v995_v11 = vld [vmem:[%s10469_s15 + $0x528] sm:$0xff] }
 0x25f   : > { %v8498_v7 = vcombine.high %v994_v8, %v1002_v15  ;;  %v8497_v39 = vcombine.low %v994_v8, %v1002_v15  ;;  %v8499_v38 = vcombine.low %v995_v11, %v1003_v28  ;;  %v1050_v8 = vld [vmem:[%s10469_s15 + $0x6e0] sm:$0xff] }
 0x260   : > { %4614 = vmatmul.mubr.bf16.gmra.mrb[76].mxu0 %v10812_v62  ;;  %4840 = vmatmul.mubr.bf16.gmra.mrb[76].mxu1 %v10812_v62  ;;  %v11395_v62 = vld [vmem:[%s10469_s15 + $0xca0] sm:$0xff] }
 0x261   : > { %4903 = vmatpush1.bf16.msra.mxu0 %v8433_v30  ;;  %5129 = vmatpush1.bf16.msra.mxu1 %v8435_v31  ;;  %v8500_v30 = vcombine.high %v995_v11, %v1003_v28  ;;  %v1010_v31 = vld [vmem:[%s10469_s15 + $0x5a0] sm:$0xff] }
 0x262   : > { %4623 = vmatprep.mubr.bf16.mxu0 %v10848_v55  ;;  %4849 = vmatprep.mubr.bf16.mxu1 %v10848_v55  ;;  %v8513_v32 = vcombine.low %v1010_v31, %v1018_v21  ;;  %v1058_v28 = vld [vmem:[%s10469_s15 + $0x720] sm:$0xff]  ;;  %v11392_v55 = vld [vmem:[%s10469_s15 + $0xc68] sm:$0xff] }
 0x263   : > { %4904 = vmatprep.subr.bf16.mxu0 %v8450_v0  ;;  %5130 = vmatprep.subr.bf16.mxu1 %v8452_v37  ;;  %v1011_v0 = vld [vmem:[%s10469_s15 + $0x5a8] sm:$0xff] }
 0x264   : > { %v1019_v37 = vld [vmem:[%s10469_s15 + $0x5e8] sm:$0xff] }
 0x265   : > { %4905 = vmatpush1.bf16.msra.mxu0 %v8449_v34  ;;  %5131 = vmatpush1.bf16.msra.mxu1 %v8451_v35  ;;  %v8514_v34 = vcombine.high %v1010_v31, %v1018_v21  ;;  %v8516_v35 = vcombine.high %v1011_v0, %v1019_v37  ;;  %v8515_v33 = vcombine.low %v1011_v0, %v1019_v37  ;;  %v1067_v31 = vld [vmem:[%s10469_s15 + $0x768] sm:$0xff] }
 0x266   : > { %4906 = vmatprep.subr.bf16.mxu0 %v8466_v36  ;;  %5132 = vmatprep.subr.bf16.mxu1 %v8468_v6  ;;  %v1034_v36 = vld [vmem:[%s10469_s15 + $0x660] sm:$0xff]  ;;  %v1027_v6 = vld [vmem:[%s10469_s15 + $0x628] sm:$0xff] }
 0x267   : > { %v8530_v40 = vcombine.high %v1026_v19, %v1034_v36  ;;  %v8529_v15 = vcombine.low %v1026_v19, %v1034_v36  ;;  %v8531_v11 = vcombine.low %v1027_v6, %v1035_v24  ;;  %v1082_v19 = vld [vmem:[%s10469_s15 + $0x7e0] sm:$0xff] }
 0x268   : > { %4624 = vmatmul.mubr.bf16.gmra.mrb[80].mxu0 %v10844_v50  ;;  %4850 = vmatmul.mubr.bf16.gmra.mrb[80].mxu1 %v10844_v50  ;;  %v11379_v50 = vld [vmem:[%s10469_s15 + $0xc60] sm:$0xff] }
 0x269   : > { %4907 = vmatpush1.bf16.msra.mxu0 %v8465_v44  ;;  %5133 = vmatpush1.bf16.msra.mxu1 %v8467_v47  ;;  %v8532_v44 = vcombine.high %v1027_v6, %v1035_v24  ;;  %v1042_v47 = vld [vmem:[%s10469_s15 + $0x6a0] sm:$0xff] }
 0x26a   : > { %4633 = vmatprep.mubr.bf16.mxu0 %v10880_v2  ;;  %4859 = vmatprep.mubr.bf16.mxu1 %v10880_v2  ;;  %v8545_v21 = vcombine.low %v1042_v47, %v1050_v8  ;;  %v11216_v24 = vld [vmem:[%s10469_s15 + $0x820] sm:$0xff]  ;;  %v11361_v2 = vld [vmem:[%s10469_s15 + $0xba8] sm:$0xff] }
 0x26b   : > { %4908 = vmatprep.subr.bf16.mxu0 %v8482_v48  ;;  %5134 = vmatprep.subr.bf16.mxu1 %v8484_v20  ;;  %v1043_v48 = vld [vmem:[%s10469_s15 + $0x6a8] sm:$0xff] }
 0x26c   : > { %v1051_v20 = vld [vmem:[%s10469_s15 + $0x6e8] sm:$0xff] }
 0x26d   : > { %4909 = vmatpush1.bf16.msra.mxu0 %v8481_v58  ;;  %5135 = vmatpush1.bf16.msra.mxu1 %v8483_v23  ;;  %v8546_v58 = vcombine.high %v1042_v47, %v1050_v8  ;;  %v8548_v23 = vcombine.high %v1043_v48, %v1051_v20  ;;  %v8547_v0 = vcombine.low %v1043_v48, %v1051_v20  ;;  %v11225_v47 = vld [vmem:[%s10469_s15 + $0x868] sm:$0xff]  ;;  %v11230_v8 = vld [vmem:[%s10469_s15 + $0x8a0] sm:$0xff] }
 0x26e   : > { %4910 = vmatprep.subr.bf16.mxu0 %v8498_v7  ;;  %5136 = vmatprep.subr.bf16.mxu1 %v8500_v30  ;;  %v1066_v7 = vld [vmem:[%s10469_s15 + $0x760] sm:$0xff]  ;;  %v1059_v30 = vld [vmem:[%s10469_s15 + $0x728] sm:$0xff] }
 0x26f   : > { %v8562_v37 = vcombine.high %v1058_v28, %v1066_v7  ;;  %v8561_v36 = vcombine.low %v1058_v28, %v1066_v7  ;;  %v8563_v6 = vcombine.low %v1059_v30, %v1067_v31  ;;  %v11240_v28 = vld [vmem:[%s10469_s15 + $0x8e8] sm:$0xff]  ;;  %v11249_v7 = vld [vmem:[%s10469_s15 + $0x920] sm:$0xff] }
 0x270   : > { %4634 = vmatmul.mubr.bf16.gmra.mrb[84].mxu0 %v10876_v49  ;;  %4860 = vmatmul.mubr.bf16.gmra.mrb[84].mxu1 %v10876_v49  ;;  %v11358_v49 = vld [vmem:[%s10469_s15 + $0xbe0] sm:$0xff] }
 0x271   : > { %4911 = vmatpush1.bf16.msra.mxu0 %v8497_v39  ;;  %5137 = vmatpush1.bf16.msra.mxu1 %v8499_v38  ;;  %v8564_v39 = vcombine.high %v1059_v30, %v1067_v31  ;;  %v1074_v38 = vld [vmem:[%s10469_s15 + $0x7a0] sm:$0xff]  ;;  %v11255_v31 = vld [vmem:[%s10469_s15 + $0x928] sm:$0xff] }
 0x272   : > { %4643 = vmatprep.mubr.bf16.mxu0 %v10912_v56  ;;  %4869 = vmatprep.mubr.bf16.mxu1 %v10912_v56  ;;  %v8577_v48 = vcombine.low %v1074_v38, %v1082_v19  ;;  %v11252_v30 = vld [vmem:[%s10469_s15 + $0x960] sm:$0xff]  ;;  %v11345_v56 = vld [vmem:[%s10469_s15 + $0xb68] sm:$0xff] }
 0x273   : > { %4912 = vmatprep.subr.bf16.mxu0 %v8514_v34  ;;  %5138 = vmatprep.subr.bf16.mxu1 %v8516_v35  ;;  %v1075_v34 = vld [vmem:[%s10469_s15 + $0x7a8] sm:$0xff] }
 0x274   : > { %v1083_v35 = vld [vmem:[%s10469_s15 + $0x7e8] sm:$0xff] }
 0x275   : > { %4913 = vmatpush1.bf16.msra.mxu0 %v8513_v32  ;;  %5139 = vmatpush1.bf16.msra.mxu1 %v8515_v33  ;;  %v8578_v32 = vcombine.high %v1074_v38, %v1082_v19  ;;  %v8580_v33 = vcombine.high %v1075_v34, %v1083_v35  ;;  %v8579_v20 = vcombine.low %v1075_v34, %v1083_v35  ;;  %v11273_v34 = vld [vmem:[%s10469_s15 + $0x9a8] sm:$0xff]  ;;  %v11355_v19 = vld [vmem:[%s10469_s15 + $0xba0] sm:$0xff] }
 0x276   : > { %4914 = vmatprep.subr.bf16.mxu0 %v8530_v40  ;;  %5140 = vmatprep.subr.bf16.mxu1 %v8532_v44  ;;  %v11219_v40 = vld [vmem:[%s10469_s15 + $0x860] sm:$0xff]  ;;  %v11222_v44 = vld [vmem:[%s10469_s15 + $0x828] sm:$0xff] }
 0x277   : > { %v8595_v38 = vcombine.low %v11222_v44, %v11225_v47  ;;  %v11276_v35 = vld [vmem:[%s10469_s15 + $0x9e8] sm:$0xff] }
 0x278   : > { %4644 = vmatmul.mubr.bf16.gmra.mrb[88].mxu0 %v10905_v4  ;;  %4870 = vmatmul.mubr.bf16.gmra.mrb[88].mxu1 %v10905_v4  ;;  %v11342_v4 = vld [vmem:[%s10469_s15 + $0xb28] sm:$0xff] }
 0x279   : > { %4915 = vmatpush1.bf16.msra.mxu0 %v8529_v15  ;;  %5141 = vmatpush1.bf16.msra.mxu1 %v8531_v11  ;;  %v11234_v15 = vld [vmem:[%s10469_s15 + $0x8e0] sm:$0xff]  ;;  %v11237_v11 = vld [vmem:[%s10469_s15 + $0x8a8] sm:$0xff]  ;;  %v13703_v41 = vcombine.high %v11342_v4, %v11345_v56 }
 0x27a   : > { %4653 = vmatprep.mubr.bf16.mxu0 %v10937_v18  ;;  %4879 = vmatprep.mubr.bf16.mxu1 %v10937_v18  ;;  %v11339_v18 = vld [vmem:[%s10469_s15 + $0xb60] sm:$0xff] }
 0x27b   : > { %4916 = vmatprep.subr.bf16.mxu0 %v8546_v58  ;;  %5142 = vmatprep.subr.bf16.mxu1 %v8548_v23  ;;  %v8594_v58 = vcombine.high %v11216_v24, %v11219_v40  ;;  %v8596_v23 = vcombine.high %v11222_v44, %v11225_v47  ;;  %v11294_v44 = vld [vmem:[%s10469_s15 + $0xa68] sm:$0xff] }
 0x27c   : > { %v11389_v47 = vld [vmem:[%s10469_s15 + $0xc28] sm:$0xff] }
 0x27d   : > { %4917 = vmatpush1.bf16.msra.mxu0 %v8545_v21  ;;  %5143 = vmatpush1.bf16.msra.mxu1 %v8547_v0  ;;  %v11258_v21 = vld [vmem:[%s10469_s15 + $0x968] sm:$0xff]  ;;  %v11261_v0 = vld [vmem:[%s10469_s15 + $0x9a0] sm:$0xff] }
 0x27e   : > { %4918 = vmatprep.subr.bf16.mxu0 %v8562_v37  ;;  %5144 = vmatprep.subr.bf16.mxu1 %v8564_v39  ;;  %v11264_v37 = vld [vmem:[%s10469_s15 + $0x9e0] sm:$0xff]  ;;  %v8593_v39 = vcombine.low %v11216_v24, %v11219_v40  ;;  %v8611_v24 = vcombine.low %v11237_v11, %v11240_v28  ;;  %v11291_v40 = vld [vmem:[%s10469_s15 + $0xa28] sm:$0xff] }
 0x280   : > { %4654 = vmatmul.mubr.bf16.gmra.mrb[92].mxu0 %v10932_v46  ;;  %4880 = vmatmul.mubr.bf16.gmra.mrb[92].mxu1 %v10932_v46  ;;  %v11328_v46 = vld [vmem:[%s10469_s15 + $0xb20] sm:$0xff] }
 0x281   : > { %4919 = vmatpush1.bf16.msra.mxu0 %v8561_v36  ;;  %5145 = vmatpush1.bf16.msra.mxu1 %v8563_v6  ;;  %v11279_v36 = vld [vmem:[%s10469_s15 + $0xa20] sm:$0xff]  ;;  %v8610_v6 = vcombine.high %v11230_v8, %v11234_v15 }
 0x282   : > { %4922 = vmatprep.mubr.bf16.mxu0 %v10691_v12  ;;  %5148 = vmatprep.mubr.bf16.mxu1 %v10691_v12  ;;  %v11325_v12 = vld [vmem:[%s10469_s15 + $0xae8] sm:$0xff] }
 0x283   : > { %4920 = vmatprep.subr.bf16.mxu0 %v8578_v32  ;;  %5146 = vmatprep.subr.bf16.mxu1 %v8580_v33  ;;  %v8612_v32 = vcombine.high %v11237_v11, %v11240_v28  ;;  %v11288_v33 = vld [vmem:[%s10469_s15 + $0xa60] sm:$0xff] }
 0x284   : > { %v1342_v11 = vld [vmem:[%s11304_s8] sm:$0xff] }
 0x285   : > { %4921 = vmatpush1.bf16.msra.mxu0 %v8577_v48  ;;  %5147 = vmatpush1.bf16.msra.mxu1 %v8579_v20  ;;  %v8626_v48 = vcombine.high %v11249_v7, %v11252_v30  ;;  %v11308_v28 = vld [vmem:[%s10469_s15 + $0xaa0] sm:$0xff]  ;;  %v11373_v20 = vld [vmem:[%s10469_s15 + $0xbe8] sm:$0xff] }
 0x286   : > { %5003 = vmatprep.subr.bf16.mxu0 %v8594_v58  ;;  %5229 = vmatprep.subr.bf16.mxu1 %v8596_v23  ;;  %v11311_v58 = vld [vmem:[%s10469_s15 + $0xae0] sm:$0xff]  ;;  %v8628_v23 = vcombine.high %v11255_v31, %v11258_v21 }
 0x288   : > { %4923 = vmatmul.mubr.bf16.vlgmr.msra.gmra.mrb[96].mxu0 %v10686_v9  ;;  %5149 = vmatmul.mubr.bf16.vlgmr.msra.gmra.mrb[96].mxu1 %v10686_v9  ;;  %v11352_v9 = vrot.slane %v1342_v11, %v10658_v52  ;;  %v11376_v52 = vld [vmem:[%s10469_s15 + $0xc20] sm:$0xff] }
 0x289   : > { %5004 = vmatpush1.bf16.msra.mxu0 %v8593_v39  ;;  %5230 = vmatpush1.bf16.msra.mxu1 %v8595_v38  ;;  %v11366_v39 = vrot.slane %v1342_v11, %v10670_v59  ;;  %v11440_v38 = vld [vmem:[%s10469_s15 + $0xd68] sm:$0xff]  ;;  %v11443_v59 = vld [vmem:[%s10469_s15 + $0xda0] sm:$0xff] }
 0x28a   : > { %4932 = vmatprep.mubr.bf16.mxu0 %v10722_v45  ;;  %5158 = vmatprep.mubr.bf16.mxu1 %v10722_v45  ;;  %v11386_v45 = vrot.slane %v1342_v11, %v10661_v54  ;;  %v11407_v54 = vld [vmem:[%s10469_s15 + $0xce0] sm:$0xff]  ;;  %13666 = vst [vmem:[#allocation54_spill] sm:$0xff] %v11443_v59  ;;  %v11558_v59 = vld [vmem:[%s10469_s15 + $0xfe8] sm:$0xff] }
 0x28b   : > { %5005 = vmatprep.subr.bf16.mxu0 %v8610_v6  ;;  %5231 = vmatprep.subr.bf16.mxu1 %v8612_v32  ;;  %v11398_v6 = vrot.slane %v1342_v11, %v10673_v60  ;;  %v13665_v11 = vcombine.low %v11230_v8, %v11234_v15  ;;  %v11425_v60 = vld [vmem:[%s10469_s15 + $0xd20] sm:$0xff]  ;;  %v11431_v8 = vld [vmem:[%s10469_s15 + $0xd28] sm:$0xff] }
 0x28c   : > { %v11446_v32 = vld [vmem:[%s10469_s15 + $0xde0] sm:$0xff] }
 0x28d   : > { %5006 = vmatpush1.bf16.msra.mxu0 %v13665_v11  ;;  %5232 = vmatpush1.bf16.msra.mxu1 %v8611_v24  ;;  %13667 = vst [vmem:[#allocation55_spill] sm:$0xff] %v11446_v32  ;;  %v11457_v24 = vld [vmem:[%s10469_s15 + $0xda8] sm:$0xff]  ;;  %v11474_v15 = vld [vmem:[%s10469_s15 + $0xe60] sm:$0xff]  ;;  %v11594_v11 = vld [vmem:[%s10469_s15 + $0x78] sm:$0xff] }
 0x28e   : > { %5007 = vmatprep.subr.bf16.mxu0 %v8626_v48  ;;  %5233 = vmatprep.subr.bf16.mxu1 %v8628_v23  ;;  %13668 = vst [vmem:[#allocation56_spill] sm:$0xff] %v11457_v24  ;;  %v13673_v23 = vcombine.low %v11255_v31, %v11258_v21  ;;  %v11512_v21 = vld [vmem:[%s10469_s15 + $0xee8] sm:$0xff]  ;;  %v13677_v48 = vcombine.high %v11261_v0, %v11264_v37  ;;  %v11541_v32 = vld [vmem:[%s10469_s15 + $0xfa0] sm:$0xff] }
 0x28f   : > { %13674 = vst [vmem:[#allocation60_spill] sm:$0xff] %v11512_v21  ;;  %13680 = vst [vmem:[#allocation64_spill] sm:$0xff] %v11541_v32  ;;  %v11555_v24 = vld [vmem:[%s10469_s15 + $0xfa8] sm:$0xff]  ;;  %v11617_v21 = vld [vmem:[%s10469_s15 + $0x130] sm:$0xff] }
 0x290   : > { %4933 = vmatmul.mubr.bf16.gmra.mrb[100].mxu0 %v10718_v42  ;;  %5159 = vmatmul.mubr.bf16.gmra.mrb[100].mxu1 %v10718_v42  ;;  %v13672_v42 = vcombine.low %v11249_v7, %v11252_v30  ;;  %v11501_v7 = vld [vmem:[%s10469_s15 + $0xea8] sm:$0xff]  ;;  %v13683_v30 = vcombine.low %v11273_v34, %v11276_v35  ;;  %v11634_v32 = vld [vmem:[%s10469_s15 + $0x178] sm:$0xff] }
 0x291   : > { %5234 = vmatpush1.bf16.msra.mxu1 %v13673_v23  ;;  %4942 = vmatprep.mubr.bf16.mxu0 %v10754_v29  ;;  %v11515_v23 = vld [vmem:[%s10469_s15 + $0xf20] sm:$0xff]  ;;  %13693 = vst [vmem:[#allocation73_spill] sm:$0xff] %v11634_v32 }
 0x292   : > { %5008 = vmatpush1.bf16.msra.mxu0 %v13672_v42  ;;  %5168 = vmatprep.mubr.bf16.mxu1 %v10754_v29  ;;  %13675 = vst [vmem:[#allocation61_spill] sm:$0xff] %v11515_v23  ;;  %v13678_v42 = vcombine.high %v11273_v34, %v11276_v35  ;;  %v11535_v29 = vld [vmem:[%s10469_s15 + $0xf28] sm:$0xff]  ;;  %v13686_v34 = vcombine.high %v11279_v36, %v11288_v33  ;;  %v11614_v23 = vld [vmem:[%s10469_s15 + $0xf8] sm:$0xff] }
 0x293   : > { %5009 = vmatprep.subr.bf16.mxu0 %v13677_v48  ;;  %v11538_v48 = vld [vmem:[%s10469_s15 + $0xf68] sm:$0xff]  ;;  %v13687_v35 = vcombine.high %v11291_v40, %v11294_v44  ;;  %13690 = vst [vmem:[#allocation70_spill] sm:$0xff] %v11614_v23 }
 0x294   : > { %5235 = vmatprep.subr.bf16.mxu1 %v13678_v42  ;;  %13679 = vst [vmem:[#allocation63_spill] sm:$0xff] %v11538_v48  ;;  %v13682_v42 = vcombine.low %v11261_v0, %v11264_v37  ;;  %v11576_v0 = vld [vmem:[%s10469_s15 + $0x70] sm:$0xff]  ;;  %v11579_v37 = vld [vmem:[%s10469_s15 + $0x38] sm:$0xff]  ;;  %v13694_v48 = vcombine.low %v11279_v36, %v11288_v33  ;;  %v13700_v33 = vcombine.low %v11308_v28, %v11311_v58 }
 0x295   : > { %5236 = vmatpush1.bf16.msra.mxu1 %v13683_v30  ;;  %13685 = vst [vmem:[#allocation67_spill] sm:$0xff] %v11576_v0  ;;  %v13695_v30 = vcombine.low %v11291_v40, %v11294_v44  ;;  %v11649_v0 = vld [vmem:[%s10469_s15 + $0x1b0] sm:$0xff] }
 0x296   : > { %5010 = vmatpush1.bf16.msra.mxu0 %v13682_v42  ;;  %5237 = vmatprep.subr.bf16.mxu1 %v13687_v35  ;;  %v11628_v35 = vld [vmem:[%s10469_s15 + $0x170] sm:$0xff]  ;;  %13696 = vst [vmem:[#allocation74_spill] sm:$0xff] %v11649_v0  ;;  %v13699_v42 = vcombine.high %v11322_v51, %v11325_v12 }
 0x297   : > { %5011 = vmatprep.subr.bf16.mxu0 %v13686_v34  ;;  %v11600_v34 = vld [vmem:[%s10469_s15 + $0xf0] sm:$0xff]  ;;  %13691 = vst [vmem:[#allocation71_spill] sm:$0xff] %v11628_v35 }
 0x298   : > { %13688 = vst [vmem:[#allocation68_spill] sm:$0xff] %v11600_v34  ;;  %4943 = vmatmul.mubr.bf16.gmra.mrb[104].mxu0 %v10750_v26  ;;  %5169 = vmatmul.mubr.bf16.gmra.mrb[104].mxu1 %v10750_v26  ;;  %v13698_v26 = vcombine.high %v11308_v28, %v11311_v58 }
 0x299   : > { %5238 = vmatpush1.bf16.msra.mxu1 %v13695_v30  ;;  %4952 = vmatprep.mubr.bf16.mxu0 %v10786_v16 }
 0x29a   : > { %5012 = vmatpush1.bf16.msra.mxu0 %v13694_v48  ;;  %5178 = vmatprep.mubr.bf16.mxu1 %v10786_v16  ;;  %v11663_v48 = vstv %s11526_s25 }
 0x29b   : > { %v4133_v44 = vpop.f32.mrb[32].mxu0  ;;  %v4359_v30 = vpop.f32.mrb[32].mxu1  ;;  %5013 = vmatprep.subr.bf16.mxu0 %v13698_v26  ;;  %5239 = vmatprep.subr.bf16.mxu1 %v13699_v42 }
 0x29c   : > { %v9381_v31 = vadd.f32 %v4133_v44, %v11352_v9  ;;  %v9413_v16 = vadd.f32 %v4359_v30, %v11366_v39  ;;  %v4135_v23 = vpop.f32.mrb[33].mxu0  ;;  %v4361_v26 = vpop.f32.mrb[33].mxu1  ;;  %v13701_v44 = vcombine.low %v11322_v51, %v11325_v12  ;;  %v13702_v51 = vcombine.high %v11328_v46, %v11339_v18 }
 0x29d   : > { %v9382_v36 = vadd.f32 %v4135_v23, %v11386_v45  ;;  %v9414_v34 = vadd.f32 %v4361_v26, %v11398_v6  ;;  %v4137_v30 = vpop.f32.mrb[34].mxu0  ;;  %v4363_v40 = vpop.f32.mrb[34].mxu1 }
 0x29e   : > { %5014 = vmatpush1.bf16.msra.mxu0 %v13700_v33  ;;  %5240 = vmatpush1.bf16.msra.mxu1 %v13701_v44  ;;  %v6692_v42 = vmul.f32 %v9381_v31, %v11663_v48  ;;  %v6694_v23 = vmul.f32 %v9413_v16, %v11663_v48  ;;  %v9383_v26 = vadd.f32 %v4137_v30, %v11352_v9  ;;  %v4139_v58 = vpop.f32.mrb[35].mxu0  ;;  %v4365_v33 = vpop.f32.mrb[35].mxu1  ;;  %v11707_v30 = vld [vmem:[%s10469_s15 + $0x1b8] sm:$0xff] }
 0x29f   : > { %v9415_v28 = vadd.f32 %v4363_v40, %v11366_v39  ;;  %5015 = vmatprep.subr.bf16.mxu0 %v13702_v51  ;;  %v9107_v12 = vpack.c.bf16 %v9382_v36, %v9381_v31  ;;  %v6693_v44 = vmul.f32 %v9382_v36, %v11663_v48  ;;  %v9108_v32 = vpack.c.bf16 %v9414_v34, %v9413_v16  ;;  %v11710_v40 = vld [vmem:[%s10469_s15 + $0x1f8] sm:$0xff] }
 0x2a0   : > { %v6695_v17 = vmul.f32 %v9414_v34, %v11663_v48  ;;  %5241 = vmatprep.subr.bf16.mxu1 %v13703_v41  ;;  %v6948_v0 = vmax.f32 %v6692_v42, 0.0  ;;  %v6950_v25 = vmax.f32 %v6694_v23, 0.0  ;;  %v6708_v35 = vmul.f32 %v9383_v26, %v11663_v48  ;;  %4953 = vmatmul.mubr.bf16.gmra.mrb[108].mxu0 %v10782_v13 }
 0x2a1   : > { %v6710_v51 = vmul.f32 %v9415_v28, %v11663_v48  ;;  %5179 = vmatmul.mubr.bf16.gmra.mrb[108].mxu1 %v10782_v13  ;;  %6562 = vst [vmem:[%s11718_s16] sm:$0xff] %v9107_v12  ;;  %v6949_v41 = vmax.f32 %v6693_v44, 0.0  ;;  %6563 = vst [vmem:[%s11718_s16 + $0x8] sm:$0xff] %v9108_v32  ;;  %v9384_v31 = vadd.f32 %v4139_v58, %v11386_v45  ;;  %4962 = vmatprep.mubr.bf16.mxu0 %v10818_v3  ;;  %v11737_v58 = vld [vmem:[%s10469_s15 + $0x230] sm:$0xff] }
 0x2a2   : > { %v6951_v16 = vmax.f32 %v6695_v17, 0.0  ;;  %v9416_v34 = vadd.f32 %v4365_v33, %v11398_v6  ;;  %v13704_v36 = vcombine.low %v11328_v46, %v11339_v18  ;;  %v13705_v42 = vcombine.low %v11342_v4, %v11345_v56  ;;  %5188 = vmatprep.mubr.bf16.mxu1 %v10818_v3  ;;  %v11740_v46 = vld [vmem:[%s10469_s15 + $0x270] sm:$0xff] }
 0x2a3   : > { %v6964_v23 = vmax.f32 %v6708_v35, 0.0  ;;  %v6966_v13 = vmax.f32 %v6710_v51, 0.0  ;;  %v8392_v32 = vcombine.high %v11707_v30, %v11710_v40  ;;  %v9235_v18 = vpack.c.bf16 %v6949_v41, %v6948_v0  ;;  %v4143_v33 = vpop.f32.mrb[36].mxu0  ;;  %v4369_v12 = vpop.f32.mrb[36].mxu1 }
 0x2a4   : > { %5016 = vmatpush1.bf16.msra.mxu0 %v13704_v36  ;;  %5242 = vmatpush1.bf16.msra.mxu1 %v13705_v42  ;;  %v9236_v4 = vpack.c.bf16 %v6951_v16, %v6950_v25  ;;  %v9115_v56 = vpack.c.bf16 %v9384_v31, %v9383_v26  ;;  %v6709_v35 = vmul.f32 %v9384_v31, %v11663_v48  ;;  %v4145_v0 = vpop.f32.mrb[37].mxu0  ;;  %v4371_v26 = vpop.f32.mrb[37].mxu1 }
 0x2a5   : > { %v13706_v44 = vcombine.high %v11355_v19, %v11358_v49  ;;  %v9116_v51 = vpack.c.bf16 %v9416_v34, %v9415_v28  ;;  %v6711_v36 = vmul.f32 %v9416_v34, %v11663_v48  ;;  %v9385_v42 = vadd.f32 %v4143_v33, %v11352_v9  ;;  %7972 = vst [vmem:[%s11754_s4] sm:$0xff] %v9235_v18  ;;  %v4147_v33 = vpop.f32.mrb[38].mxu0 }
 0x2a6   : > { %v9417_v17 = vadd.f32 %v4369_v12, %v11366_v39  ;;  %v13707_v25 = vcombine.high %v11361_v2, %v11373_v20  ;;  %7973 = vst [vmem:[%s11754_s4 + $0x8] sm:$0xff] %v9236_v4  ;;  %6570 = vst [vmem:[%s11718_s16 + $0x40] sm:$0xff] %v9115_v56  ;;  %v6965_v28 = vmax.f32 %v6709_v35, 0.0  ;;  %v9386_v41 = vadd.f32 %v4145_v0, %v11386_v45  ;;  %v4373_v12 = vpop.f32.mrb[38].mxu1 }
 0x2a7   : > { %5017 = vmatprep.subr.bf16.mxu0 %v13706_v44  ;;  %v9418_v16 = vadd.f32 %v4371_v26, %v11398_v6  ;;  %v13708_v31 = vcombine.low %v11355_v19, %v11358_v49  ;;  %v13709_v34 = vcombine.low %v11361_v2, %v11373_v20  ;;  %6571 = vst [vmem:[%s11718_s16 + $0x48] sm:$0xff] %v9116_v51  ;;  %v6967_v4 = vmax.f32 %v6711_v36, 0.0  ;;  %v4149_v19 = vpop.f32.mrb[39].mxu0  ;;  %v4375_v44 = vpop.f32.mrb[39].mxu1  ;;  %v11781_v26 = vld [vmem:[%s10469_s15 + $0x238] sm:$0xff] }
 0x2a8   : > { %5243 = vmatprep.subr.bf16.mxu1 %v13707_v25  ;;  %v6724_v56 = vmul.f32 %v9385_v42, %v11663_v48  ;;  %v6726_v35 = vmul.f32 %v9417_v17, %v11663_v48  ;;  %v9387_v49 = vadd.f32 %v4147_v33, %v11352_v9  ;;  %v13710_v2 = vcombine.high %v11376_v52, %v11379_v50 }
 0x2a9   : > { %5018 = vmatpush1.bf16.msra.mxu0 %v13708_v31  ;;  %5244 = vmatpush1.bf16.msra.mxu1 %v13709_v34  ;;  %v13711_v20 = vcombine.high %v11389_v47, %v11392_v55  ;;  %v9243_v51 = vpack.c.bf16 %v6965_v28, %v6964_v23  ;;  %v9123_v36 = vpack.c.bf16 %v9386_v41, %v9385_v42  ;;  %v11784_v31 = vld [vmem:[%s10469_s15 + $0x278] sm:$0xff] }
 0x2aa   : > { %5019 = vmatprep.subr.bf16.mxu0 %v13710_v2  ;;  %v6725_v25 = vmul.f32 %v9386_v41, %v11663_v48  ;;  %v9124_v0 = vpack.c.bf16 %v9418_v16, %v9417_v17  ;;  %v9244_v34 = vpack.c.bf16 %v6967_v4, %v6966_v13  ;;  %v6980_v33 = vmax.f32 %v6724_v56, 0.0  ;;  %4963 = vmatmul.mubr.bf16.gmra.mrb[112].mxu0 %v10814_v63 }
 0x2ab   : > { %5245 = vmatprep.subr.bf16.mxu1 %v13711_v20  ;;  %v6982_v18 = vmax.f32 %v6726_v35, 0.0  ;;  %v6727_v2 = vmul.f32 %v9418_v16, %v11663_v48  ;;  %5189 = vmatmul.mubr.bf16.gmra.mrb[112].mxu1 %v10814_v63  ;;  %7980 = vst [vmem:[%s11754_s4 + $0x40] sm:$0xff] %v9243_v51  ;;  %6578 = vst [vmem:[%s11718_s16 + $0x80] sm:$0xff] %v9123_v36  ;;  %v6740_v17 = vmul.f32 %v9387_v49, %v11663_v48  ;;  %v4153_v35 = vpop.f32.mrb[40].mxu0 }
 0x2ac   : > { %v6981_v23 = vmax.f32 %v6725_v25, 0.0  ;;  %6579 = vst [vmem:[%s11718_s16 + $0x88] sm:$0xff] %v9124_v0  ;;  %v9419_v42 = vadd.f32 %v4373_v12, %v11366_v39  ;;  %v9388_v28 = vadd.f32 %v4149_v19, %v11386_v45  ;;  %v13712_v13 = vcombine.low %v11376_v52, %v11379_v50  ;;  %7981 = vst [vmem:[%s11754_s4 + $0x48] sm:$0xff] %v9244_v34  ;;  %v4379_v19 = vpop.f32.mrb[40].mxu1  ;;  %v4155_v34 = vpop.f32.mrb[41].mxu0 }
 0x2ad   : > { %v13713_v41 = vcombine.low %v11389_v47, %v11392_v55  ;;  %v6983_v16 = vmax.f32 %v6727_v2, 0.0  ;;  %v9420_v4 = vadd.f32 %v4375_v44, %v11398_v6  ;;  %4972 = vmatprep.mubr.bf16.mxu0 %v10850_v61  ;;  %5198 = vmatprep.mubr.bf16.mxu1 %v10850_v61  ;;  %v8405_v12 = vcombine.low %v11737_v58, %v11740_v46 }
 0x2ae   : > { %5020 = vmatpush1.bf16.msra.mxu0 %v13712_v13  ;;  %v8407_v52 = vcombine.low %v11781_v26, %v11784_v31  ;;  %v9251_v50 = vpack.c.bf16 %v6981_v23, %v6980_v33  ;;  %v6996_v56 = vmax.f32 %v6740_v17, 0.0  ;;  %v6742_v55 = vmul.f32 %v9419_v42, %v11663_v48 }
 0x2af   : > { %5246 = vmatpush1.bf16.msra.mxu1 %v13713_v41  ;;  %v9131_v47 = vpack.c.bf16 %v9388_v28, %v9387_v49  ;;  %v13714_v44 = vcombine.high %v11395_v62, %v11407_v54  ;;  %v13715_v20 = vcombine.high %v11410_v1, %v11413_v10  ;;  %v9252_v51 = vpack.c.bf16 %v6983_v16, %v6982_v18  ;;  %v4381_v49 = vpop.f32.mrb[41].mxu1 }
 0x2b0   : > { %v6741_v36 = vmul.f32 %v9388_v28, %v11663_v48  ;;  %v9132_v25 = vpack.c.bf16 %v9420_v4, %v9419_v42  ;;  %v6743_v0 = vmul.f32 %v9420_v4, %v11663_v48  ;;  %7988 = vst [vmem:[%s11754_s4 + $0x80] sm:$0xff] %v9251_v50  ;;  %v6998_v33 = vmax.f32 %v6742_v55, 0.0  ;;  %v4157_v28 = vpop.f32.mrb[42].mxu0  ;;  %v4383_v13 = vpop.f32.mrb[42].mxu1 }
 0x2b1   : > { %5021 = vmatprep.subr.bf16.mxu0 %v13714_v44  ;;  %5247 = vmatprep.subr.bf16.mxu1 %v13715_v20  ;;  %6586 = vst [vmem:[%s11718_s16 + $0xc0] sm:$0xff] %v9131_v47  ;;  %v9389_v2 = vadd.f32 %v4153_v35, %v11352_v9  ;;  %v9421_v23 = vadd.f32 %v4379_v19, %v11366_v39  ;;  %7989 = vst [vmem:[%s11754_s4 + $0x88] sm:$0xff] %v9252_v51  ;;  %v4159_v55 = vpop.f32.mrb[43].mxu0  ;;  %v4385_v47 = vpop.f32.mrb[43].mxu1 }
 0x2b2   : > { %v9390_v17 = vadd.f32 %v4155_v34, %v11386_v45  ;;  %v13716_v18 = vcombine.low %v11395_v62, %v11407_v54  ;;  %v13717_v42 = vcombine.low %v11410_v1, %v11413_v10  ;;  %v6997_v41 = vmax.f32 %v6741_v36, 0.0  ;;  %6587 = vst [vmem:[%s11718_s16 + $0xc8] sm:$0xff] %v9132_v25  ;;  %4973 = vmatmul.mubr.bf16.gmra.mrb[116].mxu0 %v10846_v53  ;;  %v11845_v25 = vld [vmem:[%s10469_s15 + $0x2b0] sm:$0xff] }
 0x2b3   : > { %v6999_v16 = vmax.f32 %v6743_v0, 0.0  ;;  %v9422_v4 = vadd.f32 %v4381_v49, %v11398_v6  ;;  %v9391_v50 = vadd.f32 %v4157_v28, %v11352_v9  ;;  %v13718_v54 = vcombine.high %v11425_v60, %v11428_v14  ;;  %v11848_v0 = vld [vmem:[%s10469_s15 + $0x2f0] sm:$0xff]  ;;  %5199 = vmatmul.mubr.bf16.gmra.mrb[116].mxu1 %v10846_v53  ;;  %4982 = vmatprep.mubr.bf16.mxu0 %v10882_v5 }
 0x2b4   : > { %5022 = vmatpush1.bf16.msra.mxu0 %v13716_v18  ;;  %5248 = vmatpush1.bf16.msra.mxu1 %v13717_v42  ;;  %v13719_v10 = vcombine.high %v11431_v8, %v11440_v38  ;;  %v6756_v62 = vmul.f32 %v9389_v2, %v11663_v48  ;;  %v6758_v1 = vmul.f32 %v9421_v23, %v11663_v48 }
 0x2b5   : > { %5023 = vmatprep.subr.bf16.mxu0 %v13718_v54  ;;  %v9139_v35 = vpack.c.bf16 %v9390_v17, %v9389_v2  ;;  %v6757_v19 = vmul.f32 %v9390_v17, %v11663_v48  ;;  %v9259_v44 = vpack.c.bf16 %v6997_v41, %v6996_v56  ;;  %v9260_v20 = vpack.c.bf16 %v6999_v16, %v6998_v33  ;;  %v4163_v41 = vpop.f32.mrb[44].mxu0  ;;  %v4389_v16 = vpop.f32.mrb[44].mxu1  ;;  %v13723_v54 = vld [vmem:[#allocation55_spill] sm:$0xff] }
 0x2b6   : > { %5249 = vmatprep.subr.bf16.mxu1 %v13719_v10  ;;  %v9140_v51 = vpack.c.bf16 %v9422_v4, %v9421_v23  ;;  %v6759_v36 = vmul.f32 %v9422_v4, %v11663_v48  ;;  %v7012_v34 = vmax.f32 %v6756_v62, 0.0  ;;  %v7014_v49 = vmax.f32 %v6758_v1, 0.0  ;;  %5208 = vmatprep.mubr.bf16.mxu1 %v10882_v5  ;;  %v13722_v4 = vld [vmem:[#allocation54_spill] sm:$0xff]  ;;  %v13725_v1 = vld [vmem:[#allocation56_spill] sm:$0xff] }
 0x2b7   : > { %6594 = vst [vmem:[%s11718_s16 + $0x100] sm:$0xff] %v9139_v35  ;;  %v7013_v2 = vmax.f32 %v6757_v19, 0.0  ;;  %v6772_v18 = vmul.f32 %v9391_v50, %v11663_v48  ;;  %v13720_v56 = vcombine.low %v11425_v60, %v11428_v14  ;;  %7996 = vst [vmem:[%s11754_s4 + $0xc0] sm:$0xff] %v9259_v44  ;;  %v9423_v23 = vadd.f32 %v4383_v13, %v11366_v39  ;;  %v13726_v35 = vld [vmem:[#allocation57_spill] sm:$0xff]  ;;  %v4165_v44 = vpop.f32.mrb[45].mxu0 }
 0x2b8   : > { %7997 = vst [vmem:[%s11754_s4 + $0xc8] sm:$0xff] %v9260_v20  ;;  %6595 = vst [vmem:[%s11718_s16 + $0x108] sm:$0xff] %v9140_v51  ;;  %v7015_v33 = vmax.f32 %v6759_v36, 0.0  ;;  %v9392_v17 = vadd.f32 %v4159_v55, %v11386_v45  ;;  %v9424_v42 = vadd.f32 %v4385_v47, %v11398_v6  ;;  %v13721_v28 = vcombine.low %v11431_v8, %v11440_v38  ;;  %v4391_v20 = vpop.f32.mrb[45].mxu1 }
 0x2b9   : > { %5024 = vmatpush1.bf16.msra.mxu0 %v13720_v56  ;;  %v9267_v60 = vpack.c.bf16 %v7013_v2, %v7012_v34  ;;  %v7028_v14 = vmax.f32 %v6772_v18, 0.0  ;;  %v13724_v13 = vcombine.high %v13722_v4, %v13723_v54  ;;  %v8408_v55 = vcombine.high %v11781_v26, %v11784_v31  ;;  %v4167_v2 = vpop.f32.mrb[46].mxu0  ;;  %v4393_v18 = vpop.f32.mrb[46].mxu1 }
 0x2ba   : > { %5250 = vmatpush1.bf16.msra.mxu1 %v13721_v28  ;;  %v8422_v38 = vcombine.high %v11845_v25, %v11848_v0  ;;  %v9268_v8 = vpack.c.bf16 %v7015_v33, %v7014_v49  ;;  %v6774_v47 = vmul.f32 %v9423_v23, %v11663_v48  ;;  %v9147_v10 = vpack.c.bf16 %v9392_v17, %v9391_v50  ;;  %v4169_v28 = vpop.f32.mrb[47].mxu0 }
 0x2bb   : > { %5025 = vmatprep.subr.bf16.mxu0 %v13724_v13  ;;  %v6773_v62 = vmul.f32 %v9392_v17, %v11663_v48  ;;  %v13727_v19 = vcombine.high %v13725_v1, %v13726_v35  ;;  %8004 = vst [vmem:[%s11754_s4 + $0x100] sm:$0xff] %v9267_v60  ;;  %v9148_v51 = vpack.c.bf16 %v9424_v42, %v9423_v23  ;;  %v4395_v60 = vpop.f32.mrb[47].mxu1 }
 0x2bc   : > { %v6775_v36 = vmul.f32 %v9424_v42, %v11663_v48  ;;  %v9393_v34 = vadd.f32 %v4163_v41, %v11352_v9  ;;  %v9425_v49 = vadd.f32 %v4389_v16, %v11366_v39  ;;  %v13728_v50 = vcombine.low %v13722_v4, %v13723_v54  ;;  %8005 = vst [vmem:[%s11754_s4 + $0x108] sm:$0xff] %v9268_v8  ;;  %v13731_v8 = vld [vmem:[#allocation58_spill] sm:$0xff] }
 0x2bd   : > { %5251 = vmatprep.subr.bf16.mxu1 %v13727_v19  ;;  %v7030_v56 = vmax.f32 %v6774_v47, 0.0  ;;  %6602 = vst [vmem:[%s11718_s16 + $0x140] sm:$0xff] %v9147_v10  ;;  %v7029_v33 = vmax.f32 %v6773_v62, 0.0  ;;  %v9394_v17 = vadd.f32 %v4165_v44, %v11386_v45  ;;  %v9426_v23 = vadd.f32 %v4391_v20, %v11398_v6  ;;  %6603 = vst [vmem:[%s11718_s16 + $0x148] sm:$0xff] %v9148_v51  ;;  %v13732_v47 = vld [vmem:[#allocation59_spill] sm:$0xff]  ;;  %v13734_v44 = vld [vmem:[#allocation46_spill] sm:$0xff] }
 0x2be   : > { %5026 = vmatpush1.bf16.msra.mxu0 %v13728_v50  ;;  %v13729_v42 = vcombine.low %v13725_v1, %v13726_v35  ;;  %v13730_v41 = vcombine.high %v11463_v27, %v11474_v15  ;;  %v7031_v16 = vmax.f32 %v6775_v36, 0.0  ;;  %v6788_v4 = vmul.f32 %v9393_v34, %v11663_v48  ;;  %v11906_v20 = vld [vmem:[%s10469_s15 + $0x2b8] sm:$0xff]  ;;  %5209 = vmatmul.mubr.bf16.gmra.mrb[120].mxu1 %v13734_v44 }
 0x2bf   : > { %v6790_v54 = vmul.f32 %v9425_v49, %v11663_v48  ;;  %v9395_v13 = vadd.f32 %v4167_v2, %v11352_v9  ;;  %v13733_v10 = vcombine.high %v13731_v8, %v13732_v47  ;;  %v9275_v62 = vpack.c.bf16 %v7029_v33, %v7028_v14  ;;  %4983 = vmatmul.mubr.bf16.gmra.mrb[120].mxu0 %v13734_v44  ;;  %v11909_v51 = vld [vmem:[%s10469_s15 + $0x2f8] sm:$0xff] }
 0x2c0   : > { %5252 = vmatpush1.bf16.msra.mxu1 %v13729_v42  ;;  %5027 = vmatprep.subr.bf16.mxu0 %v13730_v41  ;;  %v9155_v1 = vpack.c.bf16 %v9394_v17, %v9393_v34  ;;  %v6789_v35 = vmul.f32 %v9394_v17, %v11663_v48  ;;  %v9156_v19 = vpack.c.bf16 %v9426_v23, %v9425_v49  ;;  %v7044_v50 = vmax.f32 %v6788_v4, 0.0  ;;  %v4173_v41 = vpop.f32.mrb[48].mxu0 }
 0x2c1   : > { %5253 = vmatprep.subr.bf16.mxu1 %v13733_v10  ;;  %v9276_v36 = vpack.c.bf16 %v7031_v16, %v7030_v56  ;;  %v7046_v2 = vmax.f32 %v6790_v54, 0.0  ;;  %v6791_v42 = vmul.f32 %v9426_v23, %v11663_v48  ;;  %v13735_v14 = vcombine.low %v11463_v27, %v11474_v15  ;;  %8012 = vst [vmem:[%s11754_s4 + $0x140] sm:$0xff] %v9275_v62  ;;  %v13737_v23 = vld [vmem:[#allocation51_spill] sm:$0xff]  ;;  %v4399_v16 = vpop.f32.mrb[48].mxu1  ;;  %v13739_v10 = vld [vmem:[#allocation60_spill] sm:$0xff] }
 0x2c2   : > { %6610 = vst [vmem:[%s11718_s16 + $0x180] sm:$0xff] %v9155_v1  ;;  %v7045_v34 = vmax.f32 %v6789_v35, 0.0  ;;  %6611 = vst [vmem:[%s11718_s16 + $0x188] sm:$0xff] %v9156_v19  ;;  %v6804_v49 = vmul.f32 %v9395_v13, %v11663_v48  ;;  %v9427_v33 = vadd.f32 %v4393_v18, %v11366_v39  ;;  %v9396_v56 = vadd.f32 %v4169_v28, %v11386_v45  ;;  %v4175_v1 = vpop.f32.mrb[49].mxu0  ;;  %v4401_v35 = vpop.f32.mrb[49].mxu1 }
 0x2c3   : > { %5028 = vmatpush1.bf16.msra.mxu0 %v13735_v14  ;;  %v13736_v17 = vcombine.low %v13731_v8, %v13732_v47  ;;  %4992 = vmatprep.mubr.bf16.mxu0 %v13737_v23  ;;  %8013 = vst [vmem:[%s11754_s4 + $0x148] sm:$0xff] %v9276_v36  ;;  %v7047_v27 = vmax.f32 %v6791_v42, 0.0  ;;  %v9428_v15 = vadd.f32 %v4395_v60, %v11398_v6 }
 0x2c4   : > { %5218 = vmatprep.mubr.bf16.mxu1 %v13737_v23  ;;  %v13738_v4 = vcombine.high %v11495_v22, %v11498_v57  ;;  %v8421_v18 = vcombine.low %v11845_v25, %v11848_v0  ;;  %v9283_v54 = vpack.c.bf16 %v7045_v34, %v7044_v50  ;;  %v7060_v8 = vmax.f32 %v6804_v49, 0.0  ;;  %v4177_v34 = vpop.f32.mrb[50].mxu0  ;;  %v13791_v0 = vld [vmem:[#allocation41_spill] sm:$0xff]  ;;  %v12545_v23 = vld [vmem:[%s10469_s15 + $0xf70] sm:$0xff] }
 0x2c5   : > { %5254 = vmatpush1.bf16.msra.mxu1 %v13736_v17  ;;  %v6806_v60 = vmul.f32 %v9427_v33, %v11663_v48  ;;  %v9163_v47 = vpack.c.bf16 %v9396_v56, %v9395_v13  ;;  %v13740_v62 = vcombine.high %v11501_v7, %v13739_v10  ;;  %v9284_v19 = vpack.c.bf16 %v7047_v27, %v7046_v2  ;;  %v4403_v13 = vpop.f32.mrb[50].mxu1  ;;  %v4179_v27 = vpop.f32.mrb[51].mxu0 }
 0x2c6   : > { %5029 = vmatprep.subr.bf16.mxu0 %v13738_v4  ;;  %v6805_v36 = vmul.f32 %v9396_v56, %v11663_v48  ;;  %v9164_v42 = vpack.c.bf16 %v9428_v15, %v9427_v33  ;;  %v6807_v14 = vmul.f32 %v9428_v15, %v11663_v48  ;;  %v13741_v50 = vcombine.low %v11495_v22, %v11498_v57  ;;  %v4405_v15 = vpop.f32.mrb[51].mxu1  ;;  %v13743_v57 = vld [vmem:[#allocation61_spill] sm:$0xff]  ;;  %v13744_v22 = vld [vmem:[#allocation62_spill] sm:$0xff] }
 0x2c7   : > { %5255 = vmatprep.subr.bf16.mxu1 %v13740_v62  ;;  %8020 = vst [vmem:[%s11754_s4 + $0x180] sm:$0xff] %v9283_v54  ;;  %v7062_v49 = vmax.f32 %v6806_v60, 0.0  ;;  %6618 = vst [vmem:[%s11718_s16 + $0x1c0] sm:$0xff] %v9163_v47  ;;  %v9397_v17 = vadd.f32 %v4173_v41, %v11352_v9  ;;  %v9429_v2 = vadd.f32 %v4399_v16, %v11366_v39  ;;  %v13746_v47 = vld [vmem:[#allocation63_spill] sm:$0xff] }
 0x2c8   : > { %5030 = vmatpush1.bf16.msra.mxu0 %v13741_v50  ;;  %v9398_v56 = vadd.f32 %v4175_v1, %v11386_v45  ;;  %v13742_v33 = vcombine.low %v11501_v7, %v13739_v10  ;;  %v13745_v4 = vcombine.high %v13743_v57, %v13744_v22  ;;  %8021 = vst [vmem:[%s11754_s4 + $0x188] sm:$0xff] %v9284_v19  ;;  %v7061_v54 = vmax.f32 %v6805_v36, 0.0  ;;  %v13748_v36 = vld [vmem:[#allocation49_spill] sm:$0xff] }
 0x2c9   : > { %6619 = vst [vmem:[%s11718_s16 + $0x1c8] sm:$0xff] %v9164_v42  ;;  %v7063_v60 = vmax.f32 %v6807_v14, 0.0  ;;  %v9430_v41 = vadd.f32 %v4401_v35, %v11398_v6  ;;  %v9399_v16 = vadd.f32 %v4177_v34, %v11352_v9  ;;  %v13747_v62 = vcombine.high %v11535_v29, %v13746_v47  ;;  %4993 = vmatmul.mubr.bf16.gmra.mrb[124].mxu0 %v13748_v36 }
 0x2ca   : > { %5256 = vmatpush1.bf16.msra.mxu1 %v13742_v33  ;;  %5031 = vmatprep.subr.bf16.mxu0 %v13745_v4  ;;  %v6820_v7 = vmul.f32 %v9397_v17, %v11663_v48  ;;  %v6822_v10 = vmul.f32 %v9429_v2, %v11663_v48  ;;  %v9171_v1 = vpack.c.bf16 %v9398_v56, %v9397_v17 }
 0x2cb   : > { %5257 = vmatprep.subr.bf16.mxu1 %v13747_v62  ;;  %v6821_v19 = vmul.f32 %v9398_v56, %v11663_v48  ;;  %v9291_v42 = vpack.c.bf16 %v7061_v54, %v7060_v8  ;;  %v9292_v35 = vpack.c.bf16 %v7063_v60, %v7062_v49  ;;  %v9172_v14 = vpack.c.bf16 %v9430_v41, %v9429_v2  ;;  %v13750_v56 = vld [vmem:[#allocation31_spill] sm:$0xff]  ;;  %v4183_v54 = vpop.f32.mrb[52].mxu0  ;;  %v4409_v60 = vpop.f32.mrb[52].mxu1 }
 0x2cc   : > { %v6823_v50 = vmul.f32 %v9430_v41, %v11663_v48  ;;  %v13749_v34 = vcombine.low %v13743_v57, %v13744_v22  ;;  %v7076_v33 = vmax.f32 %v6820_v7, 0.0  ;;  %v7078_v4 = vmax.f32 %v6822_v10, 0.0  ;;  %6626 = vst [vmem:[%s11718_s16 + $0x200] sm:$0xff] %v9171_v1  ;;  %5219 = vmatmul.mubr.bf16.gmra.mrb[124].mxu1 %v13748_v36  ;;  %5035 = vmatprep.mubr.bf16.mxu0 %v13750_v56 }
 0x2cd   : > { %v7077_v62 = vmax.f32 %v6821_v19, 0.0  ;;  %v6836_v17 = vmul.f32 %v9399_v16, %v11663_v48  ;;  %8028 = vst [vmem:[%s11754_s4 + $0x1c0] sm:$0xff] %v9291_v42  ;;  %8029 = vst [vmem:[%s11754_s4 + $0x1c8] sm:$0xff] %v9292_v35  ;;  %v9431_v49 = vadd.f32 %v4403_v13, %v11366_v39  ;;  %v9400_v2 = vadd.f32 %v4179_v27, %v11386_v45  ;;  %v13752_v13 = vld [vmem:[#allocation64_spill] sm:$0xff]  ;;  %v13753_v19 = vld [vmem:[#allocation65_spill] sm:$0xff] }
 0x2ce   : > { %5032 = vmatpush1.bf16.msra.mxu0 %v13749_v34  ;;  %6627 = vst [vmem:[%s11718_s16 + $0x208] sm:$0xff] %v9172_v14  ;;  %v7079_v8 = vmax.f32 %v6823_v50, 0.0  ;;  %v9432_v57 = vadd.f32 %v4405_v15, %v11398_v6  ;;  %v13751_v22 = vcombine.low %v11535_v29, %v13746_v47  ;;  %5261 = vmatprep.mubr.bf16.mxu1 %v13750_v56  ;;  %v4185_v29 = vpop.f32.mrb[53].mxu0  ;;  %v4411_v47 = vpop.f32.mrb[53].mxu1 }
 0x2cf   : > { %v9299_v41 = vpack.c.bf16 %v7077_v62, %v7076_v33  ;;  %v7092_v7 = vmax.f32 %v6836_v17, 0.0  ;;  %v9401_v10 = vadd.f32 %v4183_v54, %v11352_v9  ;;  %v9433_v1 = vadd.f32 %v4409_v60, %v11366_v39  ;;  %v4187_v33 = vpop.f32.mrb[54].mxu0  ;;  %v4413_v62 = vpop.f32.mrb[54].mxu1 }
 0x2d0   : > { %5258 = vmatpush1.bf16.msra.mxu1 %v13751_v22  ;;  %v13754_v27 = vcombine.high %v13752_v13, %v13753_v19  ;;  %v13755_v15 = vcombine.high %v11555_v24, %v11558_v59  ;;  %v9300_v42 = vpack.c.bf16 %v7079_v8, %v7078_v4  ;;  %v6838_v35 = vmul.f32 %v9431_v49, %v11663_v48  ;;  %v4189_v8 = vpop.f32.mrb[55].mxu0  ;;  %v4415_v60 = vpop.f32.mrb[55].mxu1 }
 0x2d1   : > { %v9179_v14 = vpack.c.bf16 %v9400_v2, %v9399_v16  ;;  %v6837_v50 = vmul.f32 %v9400_v2, %v11663_v48  ;;  %v13756_v34 = vcombine.low %v13752_v13, %v13753_v19  ;;  %8036 = vst [vmem:[%s11754_s4 + $0x200] sm:$0xff] %v9299_v41  ;;  %v9180_v17 = vpack.c.bf16 %v9432_v57, %v9431_v49  ;;  %v13757_v16 = vld [vmem:[#allocation66_spill] sm:$0xff] }
 0x2d2   : > { %5033 = vmatprep.subr.bf16.mxu0 %v13754_v27  ;;  %5259 = vmatprep.subr.bf16.mxu1 %v13755_v15  ;;  %v6839_v22 = vmul.f32 %v9432_v57, %v11663_v48  ;;  %v6852_v54 = vmul.f32 %v9401_v10, %v11663_v48  ;;  %v6854_v4 = vmul.f32 %v9433_v1, %v11663_v48  ;;  %v13758_v27 = vld [vmem:[#allocation67_spill] sm:$0xff]  ;;  %v7094_v13 = vmax.f32 %v6838_v35, 0.0 }
 0x2d3   : > { %5034 = vmatpush1.bf16.msra.mxu0 %v13756_v34  ;;  %v13759_v2 = vcombine.high %v13757_v16, %v13758_v27  ;;  %8037 = vst [vmem:[%s11754_s4 + $0x208] sm:$0xff] %v9300_v42  ;;  %6634 = vst [vmem:[%s11718_s16 + $0x240] sm:$0xff] %v9179_v14  ;;  %v7093_v19 = vmax.f32 %v6837_v50, 0.0  ;;  %v9402_v15 = vadd.f32 %v4185_v29, %v11386_v45  ;;  %v13762_v29 = vld [vmem:[#allocation29_spill] sm:$0xff] }
 0x2d4   : > { %v9434_v49 = vadd.f32 %v4411_v47, %v11398_v6  ;;  %v13760_v57 = vcombine.low %v11555_v24, %v11558_v59  ;;  %6635 = vst [vmem:[%s11718_s16 + $0x248] sm:$0xff] %v9180_v17  ;;  %v7095_v41 = vmax.f32 %v6839_v22, 0.0  ;;  %v7108_v34 = vmax.f32 %v6852_v54, 0.0 }
 0x2d5   : > { %5342 = vmatprep.subr.bf16.mxu0 %v13759_v2  ;;  %v7110_v28 = vmax.f32 %v6854_v4, 0.0  ;;  %v9403_v2 = vadd.f32 %v4187_v33, %v11352_v9  ;;  %v13761_v42 = vcombine.high %v11579_v37, %v11594_v11  ;;  %v9307_v47 = vpack.c.bf16 %v7093_v19, %v7092_v7  ;;  %v13765_v4 = vld [vmem:[#allocation35_spill] sm:$0xff] }
 0x2d6   : > { %5260 = vmatpush1.bf16.msra.mxu1 %v13760_v57  ;;  %5036 = vmatmul.mubr.bf16.vlgmr.msra.gmra.mrb[96].mxu0 %v13762_v29  ;;  %v9187_v35 = vpack.c.bf16 %v9402_v15, %v9401_v10  ;;  %v6853_v59 = vmul.f32 %v9402_v15, %v11663_v48  ;;  %v9188_v24 = vpack.c.bf16 %v9434_v49, %v9433_v1 }
 0x2d7   : > { %5568 = vmatprep.subr.bf16.mxu1 %v13761_v42  ;;  %v13763_v14 = vcombine.low %v13757_v16, %v13758_v27  ;;  %v9308_v50 = vpack.c.bf16 %v7095_v41, %v7094_v13  ;;  %v6855_v33 = vmul.f32 %v9434_v49, %v11663_v48  ;;  %v6868_v17 = vmul.f32 %v9403_v2, %v11663_v48  ;;  %v4193_v16 = vpop.f32.mrb[56].mxu0  ;;  %v4419_v27 = vpop.f32.mrb[56].mxu1 }
 0x2d8   : > { %v9435_v22 = vadd.f32 %v4413_v62, %v11366_v39  ;;  %8044 = vst [vmem:[%s11754_s4 + $0x240] sm:$0xff] %v9307_v47  ;;  %6642 = vst [vmem:[%s11718_s16 + $0x280] sm:$0xff] %v9187_v35  ;;  %v7109_v7 = vmax.f32 %v6853_v59, 0.0  ;;  %v9404_v10 = vadd.f32 %v4189_v8, %v11386_v45  ;;  %v9436_v1 = vadd.f32 %v4415_v60, %v11398_v6  ;;  %v13766_v60 = vld [vmem:[#allocation68_spill] sm:$0xff]  ;;  %v4421_v49 = vpop.f32.mrb[57].mxu1  ;;  %v13768_v35 = vld [vmem:[#allocation69_spill] sm:$0xff] }
 0x2d9   : > { %5343 = vmatpush1.bf16.msra.mxu0 %v13763_v14  ;;  %5262 = vmatmul.mubr.bf16.vlgmr.msra.gmra.mrb[96].mxu1 %v13762_v29  ;;  %6643 = vst [vmem:[%s11718_s16 + $0x288] sm:$0xff] %v9188_v24  ;;  %v13764_v54 = vcombine.low %v11579_v37, %v11594_v11  ;;  %v8424_v62 = vcombine.high %v11906_v20, %v11909_v51  ;;  %8045 = vst [vmem:[%s11754_s4 + $0x248] sm:$0xff] %v9308_v50  ;;  %v7111_v13 = vmax.f32 %v6855_v33, 0.0  ;;  %v4195_v37 = vpop.f32.mrb[57].mxu0  ;;  %v13769_v59 = vld [vmem:[#allocation70_spill] sm:$0xff]  ;;  %v4423_v50 = vpop.f32.mrb[58].mxu1 }
 0x2da   : > { %5045 = vmatprep.mubr.bf16.mxu0 %v13765_v4  ;;  %v7124_v19 = vmax.f32 %v6868_v17, 0.0  ;;  %v6870_v15 = vmul.f32 %v9435_v22, %v11663_v48  ;;  %5271 = vmatprep.mubr.bf16.mxu1 %v13765_v4  ;;  %v9405_v8 = vadd.f32 %v4193_v16, %v11352_v9  ;;  %v13767_v11 = vcombine.high %v11597_v43, %v13766_v60  ;;  %v4197_v14 = vpop.f32.mrb[58].mxu0 }
 0x2db   : > { %5569 = vmatpush1.bf16.msra.mxu1 %v13764_v54  ;;  %v9315_v57 = vpack.c.bf16 %v7109_v7, %v7108_v34  ;;  %v9195_v41 = vpack.c.bf16 %v9404_v10, %v9403_v2  ;;  %v6869_v42 = vmul.f32 %v9404_v10, %v11663_v48  ;;  %v9196_v47 = vpack.c.bf16 %v9436_v1, %v9435_v22  ;;  %v4199_v2 = vpop.f32.mrb[59].mxu0  ;;  %v4425_v7 = vpop.f32.mrb[59].mxu1 }
 0x2dc   : > { %5344 = vmatprep.subr.bf16.mxu0 %v13767_v11  ;;  %v13770_v24 = vcombine.high %v13768_v35, %v13769_v59  ;;  %v9316_v33 = vpack.c.bf16 %v7111_v13, %v7110_v28  ;;  %v7126_v17 = vmax.f32 %v6870_v15, 0.0  ;;  %v6871_v54 = vmul.f32 %v9436_v1, %v11663_v48  ;;  %v13773_v15 = vld [vmem:[#allocation71_spill] sm:$0xff] }
 0x2dd   : > { %v6884_v16 = vmul.f32 %v9405_v8, %v11663_v48  ;;  %v13771_v34 = vcombine.low %v11597_v43, %v13766_v60  ;;  %8052 = vst [vmem:[%s11754_s4 + $0x280] sm:$0xff] %v9315_v57  ;;  %6650 = vst [vmem:[%s11718_s16 + $0x2c0] sm:$0xff] %v9195_v41  ;;  %v7125_v22 = vmax.f32 %v6869_v42, 0.0  ;;  %v9437_v10 = vadd.f32 %v4419_v27, %v11366_v39  ;;  %v13776_v41 = vld [vmem:[#allocation73_spill] sm:$0xff] }
 0x2de   : > { %5570 = vmatprep.subr.bf16.mxu1 %v13770_v24  ;;  %6651 = vst [vmem:[%s11718_s16 + $0x2c8] sm:$0xff] %v9196_v47  ;;  %v9406_v28 = vadd.f32 %v4195_v37, %v11386_v45  ;;  %v9438_v13 = vadd.f32 %v4421_v49, %v11398_v6  ;;  %v13772_v1 = vcombine.low %v13768_v35, %v13769_v59  ;;  %8053 = vst [vmem:[%s11754_s4 + $0x288] sm:$0xff] %v9316_v33  ;;  %v13775_v37 = vld [vmem:[#allocation72_spill] sm:$0xff]  ;;  %v13778_v42 = vld [vmem:[#allocation33_spill] sm:$0xff] }
 0x2df   : > { %5345 = vmatpush1.bf16.msra.mxu0 %v13771_v34  ;;  %v13774_v43 = vcombine.high %v11617_v21, %v13773_v15  ;;  %v7127_v60 = vmax.f32 %v6871_v54, 0.0  ;;  %v7140_v11 = vmax.f32 %v6884_v16, 0.0  ;;  %v9407_v57 = vadd.f32 %v4197_v14, %v11352_v9  ;;  %v13779_v33 = vld [vmem:[#allocation39_spill] sm:$0xff] }
 0x2e0   : > { %5571 = vmatpush1.bf16.msra.mxu1 %v13772_v1  ;;  %v9439_v27 = vadd.f32 %v4423_v50, %v11366_v39  ;;  %v13777_v49 = vcombine.high %v13775_v37, %v13776_v41  ;;  %5046 = vmatmul.mubr.bf16.gmra.mrb[100].mxu0 %v13778_v42  ;;  %v9323_v47 = vpack.c.bf16 %v7125_v22, %v7124_v19 }
 0x2e1   : > { %5346 = vmatprep.subr.bf16.mxu0 %v13774_v43  ;;  %v6886_v35 = vmul.f32 %v9437_v10, %v11663_v48  ;;  %v9203_v59 = vpack.c.bf16 %v9406_v28, %v9405_v8  ;;  %v6885_v24 = vmul.f32 %v9406_v28, %v11663_v48  ;;  %5055 = vmatprep.mubr.bf16.mxu0 %v13779_v33 }
 0x2e2   : > { %5572 = vmatprep.subr.bf16.mxu1 %v13777_v49  ;;  %v9324_v54 = vpack.c.bf16 %v7127_v60, %v7126_v17  ;;  %v9204_v14 = vpack.c.bf16 %v9438_v13, %v9437_v10  ;;  %v6887_v50 = vmul.f32 %v9438_v13, %v11663_v48  ;;  %v6900_v16 = vmul.f32 %v9407_v57, %v11663_v48  ;;  %v4203_v10 = vpop.f32.mrb[60].mxu0  ;;  %v4429_v13 = vpop.f32.mrb[60].mxu1  ;;  %v13782_v49 = vld [vmem:[#allocation74_spill] sm:$0xff] }
 0x2e3   : > { %5272 = vmatmul.mubr.bf16.gmra.mrb[100].mxu1 %v13778_v42  ;;  %8060 = vst [vmem:[%s11754_s4 + $0x2c0] sm:$0xff] %v9323_v47  ;;  %v7142_v34 = vmax.f32 %v6886_v35, 0.0  ;;  %6658 = vst [vmem:[%s11718_s16 + $0x300] sm:$0xff] %v9203_v59  ;;  %v7141_v19 = vmax.f32 %v6885_v24, 0.0  ;;  %v6902_v8 = vmul.f32 %v9439_v27, %v11663_v48  ;;  %v9408_v22 = vadd.f32 %v4199_v2, %v11386_v45  ;;  %v13783_v47 = vld [vmem:[#allocation75_spill] sm:$0xff]  ;;  %v13814_v42 = vld [vmem:[#allocation40_spill] sm:$0xff] }
 0x2e4   : > { %v13780_v28 = vcombine.low %v11617_v21, %v13773_v15  ;;  %v13781_v17 = vcombine.low %v13775_v37, %v13776_v41  ;;  %8061 = vst [vmem:[%s11754_s4 + $0x2c8] sm:$0xff] %v9324_v54  ;;  %6659 = vst [vmem:[%s11718_s16 + $0x308] sm:$0xff] %v9204_v14  ;;  %v7143_v1 = vmax.f32 %v6887_v50, 0.0  ;;  %v7156_v43 = vmax.f32 %v6900_v16, 0.0  ;;  %5281 = vmatprep.mubr.bf16.mxu1 %v13779_v33  ;;  %v4205_v15 = vpop.f32.mrb[61].mxu0  ;;  %v4431_v37 = vpop.f32.mrb[61].mxu1 }
 0x2e5   : > { %v9440_v60 = vadd.f32 %v4425_v7, %v11398_v6  ;;  %v9409_v2 = vadd.f32 %v4203_v10, %v11352_v9  ;;  %v13784_v21 = vcombine.high %v13782_v49, %v13783_v47  ;;  %v9331_v41 = vpack.c.bf16 %v7141_v19, %v7140_v11  ;;  %v4207_v7 = vpop.f32.mrb[62].mxu0  ;;  %v4433_v54 = vpop.f32.mrb[62].mxu1 }
 0x2e6   : > { %5347 = vmatpush1.bf16.msra.mxu0 %v13780_v28  ;;  %5573 = vmatpush1.bf16.msra.mxu1 %v13781_v17  ;;  %v7158_v35 = vmax.f32 %v6902_v8, 0.0  ;;  %v9211_v59 = vpack.c.bf16 %v9408_v22, %v9407_v57  ;;  %v6901_v24 = vmul.f32 %v9408_v22, %v11663_v48  ;;  %v9332_v14 = vpack.c.bf16 %v7143_v1, %v7142_v34  ;;  %v4209_v17 = vpop.f32.mrb[63].mxu0  ;;  %v4435_v11 = vpop.f32.mrb[63].mxu1 }
 0x2e7   : > { %5348 = vmatprep.subr.bf16.mxu0 %v13784_v21  ;;  %5574 = vmatprep.subr.bf16.mxu1 %v8392_v32  ;;  %v9212_v50 = vpack.c.bf16 %v9440_v60, %v9439_v27  ;;  %v6903_v16 = vmul.f32 %v9440_v60, %v11663_v48  ;;  %v6916_v28 = vmul.f32 %v9409_v2, %v11663_v48  ;;  %v13788_v21 = vld [vmem:[#allocation37_spill] sm:$0xff] }
 0x2e8   : > { %8068 = vst [vmem:[%s11754_s4 + $0x300] sm:$0xff] %v9331_v41  ;;  %6666 = vst [vmem:[%s11718_s16 + $0x340] sm:$0xff] %v9211_v59  ;;  %v7157_v57 = vmax.f32 %v6901_v24, 0.0  ;;  %v9441_v19 = vadd.f32 %v4429_v13, %v11366_v39  ;;  %v9410_v32 = vadd.f32 %v4205_v15, %v11386_v45  ;;  %v9442_v8 = vadd.f32 %v4431_v37, %v11398_v6  ;;  %v933_v15 = vld [vmem:[%s10469_s15 + $0x338] sm:$0xff] }
 0x2e9   : > { %v13785_v34 = vcombine.low %v13782_v49, %v13783_v47  ;;  %v13786_v27 = vcombine.low %v11707_v30, %v11710_v40  ;;  %8069 = vst [vmem:[%s11754_s4 + $0x308] sm:$0xff] %v9332_v14  ;;  %6667 = vst [vmem:[%s11718_s16 + $0x348] sm:$0xff] %v9212_v50  ;;  %v7159_v22 = vmax.f32 %v6903_v16, 0.0  ;;  %v7172_v10 = vmax.f32 %v6916_v28, 0.0  ;;  %v12124_v30 = vld [vmem:[%s10469_s15 + $0x330] sm:$0xff]  ;;  %5056 = vmatmul.mubr.bf16.gmra.mrb[104].mxu0 %v13788_v21  ;;  %v941_v37 = vld [vmem:[%s10469_s15 + $0x378] sm:$0xff] }
 0x2ea   : > { %v9411_v13 = vadd.f32 %v4207_v7, %v11352_v9  ;;  %v9443_v1 = vadd.f32 %v4433_v54, %v11366_v39  ;;  %v13787_v60 = vcombine.high %v11737_v58, %v11740_v46  ;;  %v9339_v40 = vpack.c.bf16 %v7157_v57, %v7156_v43  ;;  %v940_v39 = vld [vmem:[%s10469_s15 + $0x370] sm:$0xff]  ;;  %v13789_v50 = vld [vmem:[#allocation42_spill] sm:$0xff]  ;;  %v949_v57 = vld [vmem:[%s10469_s15 + $0x3b8] sm:$0xff] }
 0x2eb   : > { %5349 = vmatpush1.bf16.msra.mxu0 %v13785_v34  ;;  %5575 = vmatpush1.bf16.msra.mxu1 %v13786_v27  ;;  %v6918_v49 = vmul.f32 %v9441_v19, %v11663_v48  ;;  %v9219_v47 = vpack.c.bf16 %v9410_v32, %v9409_v2  ;;  %v6917_v9 = vmul.f32 %v9410_v32, %v11663_v48 }
 0x2ec   : > { %5350 = vmatprep.subr.bf16.mxu0 %v13787_v60  ;;  %5576 = vmatprep.subr.bf16.mxu1 %v8408_v55  ;;  %v9340_v41 = vpack.c.bf16 %v7159_v22, %v7158_v35  ;;  %v9220_v59 = vpack.c.bf16 %v9442_v8, %v9441_v19  ;;  %v6919_v55 = vmul.f32 %v9442_v8, %v11663_v48  ;;  %v957_v19 = vld [vmem:[%s10469_s15 + $0x3f8] sm:$0xff]  ;;  %v964_v22 = vld [vmem:[%s10469_s15 + $0x430] sm:$0xff] }
 0x2ed   : > { %v6932_v24 = vmul.f32 %v9411_v13, %v11663_v48  ;;  %5282 = vmatmul.mubr.bf16.gmra.mrb[104].mxu1 %v13788_v21  ;;  %8076 = vst [vmem:[%s11754_s4 + $0x340] sm:$0xff] %v9339_v40  ;;  %v7174_v43 = vmax.f32 %v6918_v49, 0.0  ;;  %6674 = vst [vmem:[%s11718_s16 + $0x380] sm:$0xff] %v9219_v47  ;;  %v7173_v2 = vmax.f32 %v6917_v9, 0.0  ;;  %v6934_v7 = vmul.f32 %v9443_v1, %v11663_v48  ;;  %v980_v47 = vld [vmem:[%s10469_s15 + $0x4b0] sm:$0xff]  ;;  %v12502_v21 = vld [vmem:[%s10469_s15 + $0xef8] sm:$0xff] }
 0x2ee   : > { %v9412_v54 = vadd.f32 %v4209_v17, %v11386_v45  ;;  %8077 = vst [vmem:[%s11754_s4 + $0x348] sm:$0xff] %v9340_v41  ;;  %6675 = vst [vmem:[%s11718_s16 + $0x388] sm:$0xff] %v9220_v59  ;;  %v7175_v35 = vmax.f32 %v6919_v55, 0.0  ;;  %v9444_v14 = vadd.f32 %v4435_v11, %v11398_v6  ;;  %5065 = vmatprep.mubr.bf16.mxu0 %v13789_v50  ;;  %5291 = vmatprep.mubr.bf16.mxu1 %v13789_v50  ;;  %v948_v6 = vld [vmem:[%s10469_s15 + $0x3b0] sm:$0xff] }
 0x2ef   : > { %5351 = vmatpush1.bf16.msra.mxu0 %v8405_v12  ;;  %5577 = vmatpush1.bf16.msra.mxu1 %v8407_v52  ;;  %v8438_v45 = vcombine.high %v12124_v30, %v940_v39  ;;  %v8440_v58 = vcombine.high %v933_v15, %v941_v37  ;;  %v9347_v46 = vpack.c.bf16 %v7173_v2, %v7172_v10  ;;  %v7188_v26 = vmax.f32 %v6932_v24, 0.0  ;;  %v956_v52 = vld [vmem:[%s10469_s15 + $0x3f0] sm:$0xff]  ;;  %v13793_v24 = vld [vmem:[#allocation43_spill] sm:$0xff] }
 0x2f0   : > { %v9227_v31 = vpack.c.bf16 %v9412_v54, %v9411_v13  ;;  %v6933_v12 = vmul.f32 %v9412_v54, %v11663_v48  ;;  %5352 = vmatprep.subr.bf16.mxu0 %v8422_v38  ;;  %5578 = vmatprep.subr.bf16.mxu1 %v8424_v62  ;;  %v9348_v16 = vpack.c.bf16 %v7175_v35, %v7174_v43  ;;  %v7190_v28 = vmax.f32 %v6934_v7, 0.0  ;;  %v972_v10 = vld [vmem:[%s10469_s15 + $0x470] sm:$0xff]  ;;  %v997_v7 = vld [vmem:[%s10469_s15 + $0x538] sm:$0xff]  ;;  %v13794_v35 = vld [vmem:[#allocation47_spill] sm:$0xff] }
 0x2f1   : > { %v9228_v17 = vpack.c.bf16 %v9444_v14, %v9443_v1  ;;  %v6935_v11 = vmul.f32 %v9444_v14, %v11663_v48  ;;  %8084 = vst [vmem:[%s11754_s4 + $0x380] sm:$0xff] %v9347_v46  ;;  %v13790_v62 = vcombine.low %v11906_v20, %v11909_v51  ;;  %v8437_v32 = vcombine.low %v12124_v30, %v940_v39  ;;  %v965_v20 = vld [vmem:[%s10469_s15 + $0x438] sm:$0xff]  ;;  %v13792_v1 = vld [vmem:[#allocation44_spill] sm:$0xff] }
 0x2f2   : > { %6682 = vst [vmem:[%s11718_s16 + $0x3c0] sm:$0xff] %v9227_v31  ;;  %v7189_v38 = vmax.f32 %v6933_v12, 0.0  ;;  %v8439_v8 = vcombine.low %v933_v15, %v941_v37  ;;  %8085 = vst [vmem:[%s11754_s4 + $0x388] sm:$0xff] %v9348_v16  ;;  %v8454_v27 = vcombine.high %v948_v6, %v956_v52  ;;  %5066 = vmatmul.mubr.bf16.gmra.mrb[108].mxu0 %v13791_v0  ;;  %v973_v51 = vld [vmem:[%s10469_s15 + $0x478] sm:$0xff]  ;;  %v988_v9 = vld [vmem:[%s10469_s15 + $0x4f0] sm:$0xff] }
 0x2f3   : > { %5353 = vmatpush1.bf16.msra.mxu0 %v8421_v18  ;;  %5579 = vmatpush1.bf16.msra.mxu1 %v13790_v62  ;;  %6683 = vst [vmem:[%s11718_s16 + $0x3c8] sm:$0xff] %v9228_v17  ;;  %v7191_v34 = vmax.f32 %v6935_v11, 0.0  ;;  %v8456_v18 = vcombine.high %v949_v57, %v957_v19  ;;  %v8453_v60 = vcombine.low %v948_v6, %v956_v52  ;;  %v981_v39 = vld [vmem:[%s10469_s15 + $0x4b8] sm:$0xff]  ;;  %v996_v55 = vld [vmem:[%s10469_s15 + $0x530] sm:$0xff] }
 0x2f4   : > { %5354 = vmatprep.subr.bf16.mxu0 %v8438_v45  ;;  %5580 = vmatprep.subr.bf16.mxu1 %v8440_v58  ;;  %v9355_v25 = vpack.c.bf16 %v7189_v38, %v7188_v26  ;;  %v8455_v30 = vcombine.low %v949_v57, %v957_v19  ;;  %v8470_v40 = vcombine.high %v964_v22, %v972_v10  ;;  %v989_v15 = vld [vmem:[%s10469_s15 + $0x4f8] sm:$0xff]  ;;  %v1004_v2 = vld [vmem:[%s10469_s15 + $0x570] sm:$0xff] }
 0x2f5   : > { %v9356_v13 = vpack.c.bf16 %v7191_v34, %v7190_v28  ;;  %5292 = vmatmul.mubr.bf16.gmra.mrb[108].mxu1 %v13791_v0  ;;  %5075 = vmatprep.mubr.bf16.mxu0 %v13792_v1  ;;  %v8472_v49 = vcombine.high %v965_v20, %v973_v51  ;;  %v8469_v37 = vcombine.low %v964_v22, %v972_v10  ;;  %v1005_v54 = vld [vmem:[%s10469_s15 + $0x578] sm:$0xff]  ;;  %v1012_v26 = vld [vmem:[%s10469_s15 + $0x5b0] sm:$0xff] }
 0x2f6   : > { %8092 = vst [vmem:[%s11754_s4 + $0x3c0] sm:$0xff] %v9355_v25  ;;  %5301 = vmatprep.mubr.bf16.mxu1 %v13792_v1  ;;  %v8471_v41 = vcombine.low %v965_v20, %v973_v51  ;;  %v8486_v59 = vcombine.high %v980_v47, %v988_v9  ;;  %v8488_v43 = vcombine.high %v981_v39, %v989_v15  ;;  %v1020_v31 = vld [vmem:[%s10469_s15 + $0x5f0] sm:$0xff]  ;;  %v1013_v12 = vld [vmem:[%s10469_s15 + $0x5b8] sm:$0xff] }
 0x2f7   : > { %5355 = vmatpush1.bf16.msra.mxu0 %v8437_v32  ;;  %5581 = vmatpush1.bf16.msra.mxu1 %v8439_v8  ;;  %8093 = vst [vmem:[%s11754_s4 + $0x3c8] sm:$0xff] %v9356_v13  ;;  %v8485_v14 = vcombine.low %v980_v47, %v988_v9  ;;  %v8487_v45 = vcombine.low %v981_v39, %v989_v15  ;;  %v1021_v6 = vld [vmem:[%s10469_s15 + $0x5f8] sm:$0xff]  ;;  %v1028_v17 = vld [vmem:[%s10469_s15 + $0x630] sm:$0xff]  ;;  %v13796_v32 = vld [vmem:[#allocation50_spill] sm:$0xff] }
 0x2f8   : > { %5356 = vmatprep.subr.bf16.mxu0 %v8454_v27  ;;  %5582 = vmatprep.subr.bf16.mxu1 %v8456_v18  ;;  %v8502_v58 = vcombine.high %v996_v55, %v1004_v2  ;;  %v8504_v46 = vcombine.high %v997_v7, %v1005_v54  ;;  %v8501_v52 = vcombine.low %v996_v55, %v1004_v2  ;;  %v13795_v11 = vld [vmem:[#allocation45_spill] sm:$0xff]  ;;  %v1036_v19 = vld [vmem:[%s10469_s15 + $0x670] sm:$0xff] }
 0x2f9   : > { %v8503_v16 = vcombine.low %v997_v7, %v1005_v54  ;;  %v8518_v28 = vcombine.high %v1012_v26, %v1020_v31  ;;  %v8520_v57 = vcombine.high %v1013_v12, %v1021_v6  ;;  %v1029_v38 = vld [vmem:[%s10469_s15 + $0x638] sm:$0xff]  ;;  %v8517_v8 = vcombine.low %v1012_v26, %v1020_v31  ;;  %v1044_v25 = vld [vmem:[%s10469_s15 + $0x6b0] sm:$0xff] }
 0x2fa   : > { %5076 = vmatmul.mubr.bf16.gmra.mrb[112].mxu0 %v13793_v24  ;;  %v1037_v62 = vld [vmem:[%s10469_s15 + $0x678] sm:$0xff]  ;;  %v8519_v34 = vcombine.low %v1013_v12, %v1021_v6  ;;  %v8534_v27 = vcombine.high %v1028_v17, %v1036_v19  ;;  %v1052_v18 = vld [vmem:[%s10469_s15 + $0x6f0] sm:$0xff]  ;;  %v8533_v51 = vcombine.low %v1028_v17, %v1036_v19 }
 0x2fb   : > { %5357 = vmatpush1.bf16.msra.mxu0 %v8453_v60  ;;  %5583 = vmatpush1.bf16.msra.mxu1 %v8455_v30  ;;  %v8536_v22 = vcombine.high %v1029_v38, %v1037_v62  ;;  %v1045_v10 = vld [vmem:[%s10469_s15 + $0x6b8] sm:$0xff]  ;;  %v8535_v13 = vcombine.low %v1029_v38, %v1037_v62  ;;  %v8550_v60 = vcombine.high %v1044_v25, %v1052_v18  ;;  %v1060_v30 = vld [vmem:[%s10469_s15 + $0x730] sm:$0xff] }
 0x2fc   : > { %5358 = vmatprep.subr.bf16.mxu0 %v8470_v40  ;;  %5584 = vmatprep.subr.bf16.mxu1 %v8472_v49  ;;  %v1053_v20 = vld [vmem:[%s10469_s15 + $0x6f8] sm:$0xff]  ;;  %v13797_v40 = vld [vmem:[#allocation48_spill] sm:$0xff] }
 0x2fd   : > { %5302 = vmatmul.mubr.bf16.gmra.mrb[112].mxu1 %v13793_v24  ;;  %5085 = vmatprep.mubr.bf16.mxu0 %v13794_v35  ;;  %v8552_v49 = vcombine.high %v1045_v10, %v1053_v20  ;;  %v1068_v47 = vld [vmem:[%s10469_s15 + $0x770] sm:$0xff]  ;;  %v1061_v9 = vld [vmem:[%s10469_s15 + $0x738] sm:$0xff] }
 0x2fe   : > { %5311 = vmatprep.mubr.bf16.mxu1 %v13794_v35  ;;  %v1069_v39 = vld [vmem:[%s10469_s15 + $0x778] sm:$0xff]  ;;  %v1084_v2 = vld [vmem:[%s10469_s15 + $0x7f0] sm:$0xff] }
 0x2ff   : > { %5359 = vmatpush1.bf16.msra.mxu0 %v8469_v37  ;;  %5585 = vmatpush1.bf16.msra.mxu1 %v8471_v41  ;;  %v13798_v15 = vld [vmem:[#allocation53_spill] sm:$0xff]  ;;  %v8549_v37 = vcombine.low %v1044_v25, %v1052_v18  ;;  %v8551_v41 = vcombine.low %v1045_v10, %v1053_v20  ;;  %v8568_v55 = vcombine.high %v1061_v9, %v1069_v39  ;;  %v13799_v26 = vld [vmem:[#allocation52_spill] sm:$0xff] }
 0x300   : > { %5360 = vmatprep.subr.bf16.mxu0 %v8486_v59  ;;  %5586 = vmatprep.subr.bf16.mxu1 %v8488_v43  ;;  %v8566_v59 = vcombine.high %v1060_v30, %v1068_v47  ;;  %v1076_v43 = vld [vmem:[%s10469_s15 + $0x7b0] sm:$0xff]  ;;  %v1077_v7 = vld [vmem:[%s10469_s15 + $0x7b8] sm:$0xff] }
 0x301   : > { %v1085_v54 = vld [vmem:[%s10469_s15 + $0x7f8] sm:$0xff]  ;;  %v1100_v12 = vld [vmem:[%s10469_s15 + $0x870] sm:$0xff] }
 0x302   : > { %5086 = vmatmul.mubr.bf16.gmra.mrb[116].mxu0 %v13795_v11  ;;  %v8584_v31 = vcombine.high %v1077_v7, %v1085_v54  ;;  %v1093_v6 = vld [vmem:[%s10469_s15 + $0x838] sm:$0xff]  ;;  %v8583_v17 = vcombine.low %v1077_v7, %v1085_v54  ;;  %v1108_v38 = vld [vmem:[%s10469_s15 + $0x8b0] sm:$0xff]  ;;  %v13803_v7 = vld [vmem:[#allocation22_spill] sm:$0xff] }
 0x303   : > { %5361 = vmatpush1.bf16.msra.mxu0 %v8485_v14  ;;  %5587 = vmatpush1.bf16.msra.mxu1 %v8487_v45  ;;  %v8565_v14 = vcombine.low %v1060_v30, %v1068_v47  ;;  %v8567_v45 = vcombine.low %v1061_v9, %v1069_v39  ;;  %v1116_v62 = vld [vmem:[%s10469_s15 + $0x8f0] sm:$0xff]  ;;  %v12257_v39 = vld [vmem:[%s10469_s15 + $0x9b8] sm:$0xff]  ;;  %v13577_v54 = vsub.s32 4, %v13803_v7 }
 0x304   : > { %5362 = vmatprep.subr.bf16.mxu0 %v8502_v58  ;;  %5588 = vmatprep.subr.bf16.mxu1 %v8504_v46  ;;  %v8582_v58 = vcombine.high %v1076_v43, %v1084_v2  ;;  %v1092_v46 = vld [vmem:[%s10469_s15 + $0x830] sm:$0xff]  ;;  %v8614_v18 = vcombine.high %v1108_v38, %v1116_v62  ;;  %v8613_v47 = vcombine.low %v1108_v38, %v1116_v62  ;;  %v13580_v38 = vsub.s32 7, %v13803_v7  ;;  %v12441_v35 = vld [vmem:[%s10469_s15 + $0xdf8] sm:$0xff] }
 0x305   : > { %5312 = vmatmul.mubr.bf16.gmra.mrb[116].mxu1 %v13795_v11  ;;  %5095 = vmatprep.mubr.bf16.mxu0 %v13796_v32  ;;  %v12237_v25 = vld [vmem:[%s10469_s15 + $0x930] sm:$0xff]  ;;  %v12438_v11 = vld [vmem:[%s10469_s15 + $0xdb8] sm:$0xff] }
 0x306   : > { %5321 = vmatprep.mubr.bf16.mxu1 %v13796_v32  ;;  %v12240_v20 = vld [vmem:[%s10469_s15 + $0x970] sm:$0xff] }
 0x307   : > { %5363 = vmatpush1.bf16.msra.mxu0 %v8501_v52  ;;  %5589 = vmatpush1.bf16.msra.mxu1 %v8503_v16  ;;  %v1101_v52 = vld [vmem:[%s10469_s15 + $0x878] sm:$0xff]  ;;  %v13800_v16 = vld [vmem:[#allocation28_spill] sm:$0xff] }
 0x308   : > { %5364 = vmatprep.subr.bf16.mxu0 %v8518_v28  ;;  %5590 = vmatprep.subr.bf16.mxu1 %v8520_v57  ;;  %v8581_v28 = vcombine.low %v1076_v43, %v1084_v2  ;;  %v8598_v57 = vcombine.high %v1092_v46, %v1100_v12  ;;  %v8600_v19 = vcombine.high %v1093_v6, %v1101_v52  ;;  %v12251_v30 = vld [vmem:[%s10469_s15 + $0x9b0] sm:$0xff] }
 0x309   : > { %v12269_v43 = vld [vmem:[%s10469_s15 + $0xa30] sm:$0xff] }
 0x30a   : > { %5096 = vmatmul.mubr.bf16.gmra.mrb[120].mxu0 %v13797_v40  ;;  %v12272_v2 = vld [vmem:[%s10469_s15 + $0xa70] sm:$0xff] }
 0x30b   : > { %5365 = vmatpush1.bf16.msra.mxu0 %v8517_v8  ;;  %5591 = vmatpush1.bf16.msra.mxu1 %v8519_v34  ;;  %v1109_v8 = vld [vmem:[%s10469_s15 + $0x8b8] sm:$0xff]  ;;  %v12424_v32 = vld [vmem:[%s10469_s15 + $0xdb0] sm:$0xff] }
 0x30c   : > { %5366 = vmatprep.subr.bf16.mxu0 %v8534_v27  ;;  %5592 = vmatprep.subr.bf16.mxu1 %v8536_v22  ;;  %v1117_v34 = vld [vmem:[%s10469_s15 + $0x8f8] sm:$0xff]  ;;  %v8597_v27 = vcombine.low %v1092_v46, %v1100_v12  ;;  %v8599_v22 = vcombine.low %v1093_v6, %v1101_v52  ;;  %v13578_v12 = vsub.s32 6, %v13803_v7  ;;  %v12289_v6 = vld [vmem:[%s10469_s15 + $0xab0] sm:$0xff] }
 0x30d   : > { %5322 = vmatmul.mubr.bf16.gmra.mrb[120].mxu1 %v13797_v40  ;;  %5105 = vmatprep.mubr.bf16.mxu0 %v13798_v15  ;;  %v8616_v10 = vcombine.high %v1109_v8, %v1117_v34  ;;  %v8615_v9 = vcombine.low %v1109_v8, %v1117_v34  ;;  %v12282_v46 = vld [vmem:[%s10469_s15 + $0xa38] sm:$0xff]  ;;  %v12356_v8 = vld [vmem:[%s10469_s15 + $0xc30] sm:$0xff]  ;;  %v13804_v34 = vld [vmem:[#allocation30_spill] sm:$0xff] }
 0x30e   : > { %5331 = vmatprep.mubr.bf16.mxu1 %v13798_v15  ;;  %v12409_v15 = vld [vmem:[%s10469_s15 + $0xd70] sm:$0xff]  ;;  %v12421_v40 = vld [vmem:[%s10469_s15 + $0xd78] sm:$0xff] }
 0x30f   : > { %5367 = vmatpush1.bf16.msra.mxu0 %v8533_v51  ;;  %5593 = vmatpush1.bf16.msra.mxu1 %v8535_v13  ;;  %v12243_v51 = vld [vmem:[%s10469_s15 + $0x938] sm:$0xff]  ;;  %v12456_v1 = vld [vmem:[%s10469_s15 + $0xe30] sm:$0xff] }
 0x310   : > { %5368 = vmatprep.subr.bf16.mxu0 %v8550_v60  ;;  %5594 = vmatprep.subr.bf16.mxu1 %v8552_v49  ;;  %v12246_v13 = vld [vmem:[%s10469_s15 + $0x978] sm:$0xff]  ;;  %v13801_v60 = vld [vmem:[#allocation27_spill] sm:$0xff]  ;;  %v12254_v49 = vld [vmem:[%s10469_s15 + $0x9f0] sm:$0xff] }
 0x311   : > { %v8646_v52 = vcombine.high %v12251_v30, %v12254_v49  ;;  %v12459_v0 = vld [vmem:[%s10469_s15 + $0xe70] sm:$0xff] }
 0x312   : > { %5106 = vmatmul.mubr.bf16.gmra.mrb[124].mxu0 %v13799_v26  ;;  %v12480_v24 = vld [vmem:[%s10469_s15 + $0xef0] sm:$0xff] }
 0x313   : > { %5369 = vmatpush1.bf16.msra.mxu0 %v8549_v37  ;;  %5595 = vmatpush1.bf16.msra.mxu1 %v8551_v41  ;;  %v12260_v37 = vld [vmem:[%s10469_s15 + $0x9f8] sm:$0xff]  ;;  %v13802_v41 = vld [vmem:[#allocation32_spill] sm:$0xff]  ;;  %13810 = vst [vmem:[#allocation55_spill] sm:$0xff] %v12480_v24 }
 0x314   : > { %5370 = vmatprep.subr.bf16.mxu0 %v8566_v59  ;;  %5596 = vmatprep.subr.bf16.mxu1 %v8568_v55  ;;  %v8630_v59 = vcombine.high %v12237_v25, %v12240_v20  ;;  %v8632_v55 = vcombine.high %v12243_v51, %v12246_v13  ;;  %v8648_v62 = vcombine.high %v12257_v39, %v12260_v37 }
 0x315   : > { %5332 = vmatmul.mubr.bf16.gmra.mrb[124].mxu1 %v13799_v26  ;;  %5374 = vmatprep.mubr.bf16.mxu0 %v13800_v16  ;;  %v13805_v26 = vld [vmem:[#allocation36_spill] sm:$0xff] }
 0x316   : > { %5600 = vmatprep.mubr.bf16.mxu1 %v13800_v16  ;;  %v12374_v16 = vld [vmem:[%s10469_s15 + $0xc38] sm:$0xff] }
 0x317   : > { %5371 = vmatpush1.bf16.msra.mxu0 %v8565_v14  ;;  %5597 = vmatpush1.bf16.msra.mxu1 %v8567_v45  ;;  %v8629_v14 = vcombine.low %v12237_v25, %v12240_v20  ;;  %v8631_v45 = vcombine.low %v12243_v51, %v12246_v13  ;;  %v12319_v25 = vld [vmem:[%s10469_s15 + $0xb38] sm:$0xff]  ;;  %v9979_v20 = vld [vmem:[%s11304_s8] sm:$0xff] }
 0x318   : > { %5372 = vmatprep.subr.bf16.mxu0 %v8582_v58  ;;  %5598 = vmatprep.subr.bf16.mxu1 %v8584_v31  ;;  %v12285_v31 = vld [vmem:[%s10469_s15 + $0xa78] sm:$0xff]  ;;  %v12328_v51 = vrot.slane %v9979_v20, %v13577_v54 }
 0x319   : > { %v12331_v13 = vld [vmem:[%s10469_s15 + $0xb78] sm:$0xff] }
 0x31a   : > { %v12350_v54 = vld [vmem:[%s10469_s15 + $0xbb8] sm:$0xff] }
 0x31b   : > { %5373 = vmatpush1.bf16.msra.mxu0 %v8581_v28  ;;  %5599 = vmatpush1.bf16.msra.mxu1 %v8583_v17  ;;  %v12296_v28 = vld [vmem:[%s10469_s15 + $0xaf0] sm:$0xff]  ;;  %v12299_v17 = vld [vmem:[%s10469_s15 + $0xab8] sm:$0xff] }
 0x31c   : > { %5455 = vmatprep.subr.bf16.mxu0 %v8598_v57  ;;  %5681 = vmatprep.subr.bf16.mxu1 %v8600_v19  ;;  %v12302_v57 = vld [vmem:[%s10469_s15 + $0xaf8] sm:$0xff]  ;;  %v13579_v19 = vsub.s32 5, %v13803_v7 }
 0x31d   : > { %v12377_v58 = vld [vmem:[%s10469_s15 + $0xc78] sm:$0xff]  ;;  %v13816_v33 = vcombine.high %v12299_v17, %v12302_v57  ;;  %v13818_v44 = vcombine.low %v12299_v17, %v12302_v57  ;;  %v13820_v17 = vcombine.high %v12319_v25, %v12331_v13  ;;  %v13821_v57 = vld [vmem:[#allocation38_spill] sm:$0xff] }
 0x31e   : > { %5375 = vmatmul.mubr.bf16.vlgmr.msra.gmra.mrb[128].mxu0 %v13801_v60  ;;  %5601 = vmatmul.mubr.bf16.vlgmr.msra.gmra.mrb[128].mxu1 %v13801_v60  ;;  %v12334_v60 = vld [vmem:[%s10469_s15 + $0xbb0] sm:$0xff]  ;;  %v12392_v7 = vld [vmem:[%s10469_s15 + $0xcb8] sm:$0xff] }
 0x31f   : > { %5456 = vmatpush1.bf16.msra.mxu0 %v8597_v27  ;;  %5682 = vmatpush1.bf16.msra.mxu1 %v8599_v22  ;;  %v12313_v27 = vld [vmem:[%s10469_s15 + $0xb30] sm:$0xff] }
 0x320   : > { %5384 = vmatprep.mubr.bf16.mxu0 %v13802_v41  ;;  %5610 = vmatprep.mubr.bf16.mxu1 %v13802_v41  ;;  %v12316_v22 = vld [vmem:[%s10469_s15 + $0xb70] sm:$0xff]  ;;  %v12364_v41 = vrot.slane %v9979_v20, %v13579_v19 }
 0x321   : > { %5457 = vmatprep.subr.bf16.mxu0 %v8614_v18  ;;  %5683 = vmatprep.subr.bf16.mxu1 %v8616_v10  ;;  %v8664_v10 = vcombine.high %v12282_v46, %v12285_v31  ;;  %v12353_v18 = vld [vmem:[%s10469_s15 + $0xbf8] sm:$0xff]  ;;  %v12406_v19 = vld [vmem:[%s10469_s15 + $0xd30] sm:$0xff] }
 0x323   : > { %5458 = vmatpush1.bf16.msra.mxu0 %v8613_v47  ;;  %5684 = vmatpush1.bf16.msra.mxu1 %v8615_v9  ;;  %v12337_v47 = vld [vmem:[%s10469_s15 + $0xbf0] sm:$0xff]  ;;  %v12341_v9 = vrot.slane %v9979_v20, %v13578_v12 }
 0x324   : > { %5459 = vmatprep.subr.bf16.mxu0 %v8630_v59  ;;  %5685 = vmatprep.subr.bf16.mxu1 %v8632_v55  ;;  %v12368_v55 = vrot.slane %v9979_v20, %v13580_v38  ;;  %v12371_v59 = vld [vmem:[%s10469_s15 + $0xc70] sm:$0xff]  ;;  %v13811_v20 = vld [vmem:[#allocation34_spill] sm:$0xff] }
 0x325   : > { %v12386_v38 = vld [vmem:[%s10469_s15 + $0xcb0] sm:$0xff] }
 0x326   : > { %5385 = vmatmul.mubr.bf16.gmra.mrb[132].mxu0 %v13804_v34  ;;  %5611 = vmatmul.mubr.bf16.gmra.mrb[132].mxu1 %v13804_v34  ;;  %v12389_v12 = vld [vmem:[%s10469_s15 + $0xcf0] sm:$0xff]  ;;  %v12403_v34 = vld [vmem:[%s10469_s15 + $0xcf8] sm:$0xff] }
 0x327   : > { %5460 = vmatpush1.bf16.msra.mxu0 %v8629_v14  ;;  %5686 = vmatpush1.bf16.msra.mxu1 %v8631_v45  ;;  %v12418_v14 = vld [vmem:[%s10469_s15 + $0xd38] sm:$0xff]  ;;  %v12435_v45 = vld [vmem:[%s10469_s15 + $0xdf0] sm:$0xff] }
 0x328   : > { %5394 = vmatprep.mubr.bf16.mxu0 %v13805_v26  ;;  %5620 = vmatprep.mubr.bf16.mxu1 %v13805_v26  ;;  %v12477_v26 = vld [vmem:[%s10469_s15 + $0xeb0] sm:$0xff] }
 0x329   : > { %5461 = vmatprep.subr.bf16.mxu0 %v8646_v52  ;;  %5687 = vmatprep.subr.bf16.mxu1 %v8648_v62  ;;  %v13806_v52 = vcombine.low %v12251_v30, %v12254_v49  ;;  %v13807_v62 = vcombine.low %v12257_v39, %v12260_v37  ;;  %v12462_v30 = vld [vmem:[%s10469_s15 + $0xe38] sm:$0xff]  ;;  %v13808_v49 = vcombine.high %v12269_v43, %v12272_v2  ;;  %v4585_v39 = vpop.f32.mrb[64].mxu0 }
 0x32a   : > { %13809 = vst [vmem:[#allocation54_spill] sm:$0xff] %v12477_v26  ;;  %v13812_v37 = vcombine.low %v12269_v43, %v12272_v2  ;;  %v9445_v43 = vadd.f32 %v4585_v39, %v12328_v51  ;;  %v12542_v26 = vld [vmem:[%s10469_s15 + $0xf30] sm:$0xff] }
 0x32b   : > { %5462 = vmatpush1.bf16.msra.mxu0 %v13806_v52  ;;  %5688 = vmatpush1.bf16.msra.mxu1 %v13807_v62  ;;  %v12474_v62 = vld [vmem:[%s10469_s15 + $0xe78] sm:$0xff]  ;;  %v4811_v52 = vpop.f32.mrb[64].mxu1 }
 0x32c   : > { %5463 = vmatprep.subr.bf16.mxu0 %v13808_v49  ;;  %5689 = vmatprep.subr.bf16.mxu1 %v8664_v10  ;;  %v12499_v49 = vld [vmem:[%s10469_s15 + $0xeb8] sm:$0xff]  ;;  %v9477_v2 = vadd.f32 %v4811_v52, %v12341_v9  ;;  %v13817_v10 = vcombine.low %v12289_v6, %v12296_v28 }
 0x32e   : > { %5395 = vmatmul.mubr.bf16.gmra.mrb[136].mxu0 %v13811_v20  ;;  %5621 = vmatmul.mubr.bf16.gmra.mrb[136].mxu1 %v13811_v20  ;;  %v13813_v20 = vcombine.low %v12282_v46, %v12285_v31  ;;  %v4587_v46 = vpop.f32.mrb[65].mxu0  ;;  %v4813_v31 = vpop.f32.mrb[65].mxu1  ;;  %v6698_v4 = vmul.f32 %v9477_v2, %v11663_v48 }
 0x32f   : > { %5464 = vmatpush1.bf16.msra.mxu0 %v13812_v37  ;;  %5404 = vmatprep.mubr.bf16.mxu0 %v13814_v42  ;;  %v9446_v50 = vadd.f32 %v4587_v46, %v12364_v41  ;;  %v4589_v39 = vpop.f32.mrb[66].mxu0  ;;  %v4815_v52 = vpop.f32.mrb[66].mxu1  ;;  %v6696_v37 = vmul.f32 %v9445_v43, %v11663_v48 }
 0x330   : > { %5690 = vmatpush1.bf16.msra.mxu1 %v13813_v20  ;;  %5630 = vmatprep.mubr.bf16.mxu1 %v13814_v42  ;;  %v13815_v20 = vcombine.high %v12289_v6, %v12296_v28  ;;  %v9478_v42 = vadd.f32 %v4813_v31, %v12368_v55  ;;  %v9479_v29 = vadd.f32 %v4815_v52, %v12341_v9  ;;  %v4817_v46 = vpop.f32.mrb[67].mxu1  ;;  %v6954_v52 = vmax.f32 %v6698_v4, 0.0 }
 0x331   : > { %5691 = vmatprep.subr.bf16.mxu1 %v13816_v33  ;;  %v4591_v33 = vpop.f32.mrb[67].mxu0  ;;  %v9109_v56 = vpack.c.bf16 %v9446_v50, %v9445_v43  ;;  %v6697_v31 = vmul.f32 %v9446_v50, %v11663_v48  ;;  %v9480_v4 = vadd.f32 %v4817_v46, %v12368_v55 }
 0x332   : > { %5465 = vmatprep.subr.bf16.mxu0 %v13815_v20  ;;  %v9447_v20 = vadd.f32 %v4589_v39, %v12328_v51  ;;  %v9110_v36 = vpack.c.bf16 %v9478_v42, %v9477_v2  ;;  %v6699_v24 = vmul.f32 %v9478_v42, %v11663_v48  ;;  %v6952_v39 = vmax.f32 %v6696_v37, 0.0 }
 0x333   : > { %5466 = vmatpush1.bf16.msra.mxu0 %v13817_v10  ;;  %v6714_v50 = vmul.f32 %v9479_v29, %v11663_v48  ;;  %v13819_v2 = vcombine.high %v12313_v27, %v12316_v22  ;;  %6564 = vst [vmem:[%s11718_s16 + $0x10] sm:$0xff] %v9109_v56  ;;  %v6953_v6 = vmax.f32 %v6697_v31, 0.0  ;;  %v9448_v10 = vadd.f32 %v4591_v33, %v12364_v41 }
 0x334   : > { %5692 = vmatpush1.bf16.msra.mxu1 %v13818_v44  ;;  %v6712_v43 = vmul.f32 %v9447_v20, %v11663_v48  ;;  %6565 = vst [vmem:[%s11718_s16 + $0x18] sm:$0xff] %v9110_v36  ;;  %v6955_v28 = vmax.f32 %v6699_v24, 0.0  ;;  %v8808_v37 = vcombine.high %v12499_v49, %v12502_v21  ;;  %v13822_v31 = vcombine.low %v12313_v27, %v12316_v22 }
 0x335   : > { %5467 = vmatprep.subr.bf16.mxu0 %v13819_v2  ;;  %5693 = vmatprep.subr.bf16.mxu1 %v13820_v17  ;;  %v9237_v24 = vpack.c.bf16 %v6953_v6, %v6952_v39  ;;  %v9117_v33 = vpack.c.bf16 %v9448_v10, %v9447_v20  ;;  %v6713_v46 = vmul.f32 %v9448_v10, %v11663_v48  ;;  %v4821_v2 = vpop.f32.mrb[68].mxu1  ;;  %v6970_v17 = vmax.f32 %v6714_v50, 0.0 }
 0x336   : > { %v6968_v44 = vmax.f32 %v6712_v43, 0.0  ;;  %5405 = vmatmul.mubr.bf16.gmra.mrb[140].mxu0 %v13821_v57  ;;  %5631 = vmatmul.mubr.bf16.gmra.mrb[140].mxu1 %v13821_v57  ;;  %v9238_v42 = vpack.c.bf16 %v6955_v28, %v6954_v52  ;;  %v4595_v43 = vpop.f32.mrb[68].mxu0  ;;  %v9118_v57 = vpack.c.bf16 %v9480_v4, %v9479_v29  ;;  %v6715_v36 = vmul.f32 %v9480_v4, %v11663_v48  ;;  %v4823_v52 = vpop.f32.mrb[69].mxu1 }
 0x337   : > { %5468 = vmatpush1.bf16.msra.mxu0 %v13822_v31  ;;  %v13823_v56 = vcombine.low %v12319_v25, %v12331_v13  ;;  %5414 = vmatprep.mubr.bf16.mxu0 %v10818_v3  ;;  %v9449_v20 = vadd.f32 %v4595_v43, %v12328_v51  ;;  %v4597_v39 = vpop.f32.mrb[69].mxu0  ;;  %7974 = vst [vmem:[%s11754_s4 + $0x10] sm:$0xff] %v9237_v24  ;;  %6572 = vst [vmem:[%s11718_s16 + $0x50] sm:$0xff] %v9117_v33  ;;  %v6969_v27 = vmax.f32 %v6713_v46, 0.0  ;;  %v4825_v6 = vpop.f32.mrb[70].mxu1 }
 0x338   : > { %7975 = vst [vmem:[%s11754_s4 + $0x18] sm:$0xff] %v9238_v42  ;;  %5640 = vmatprep.mubr.bf16.mxu1 %v10818_v3  ;;  %v9481_v29 = vadd.f32 %v4821_v2, %v12341_v9  ;;  %v13824_v22 = vcombine.high %v12334_v60, %v12337_v47  ;;  %v9450_v25 = vadd.f32 %v4597_v39, %v12364_v41  ;;  %v4599_v50 = vpop.f32.mrb[70].mxu0  ;;  %6573 = vst [vmem:[%s11718_s16 + $0x58] sm:$0xff] %v9118_v57  ;;  %v4827_v42 = vpop.f32.mrb[71].mxu1  ;;  %v12603_v2 = vld [vmem:[%s10469_s15 + $0xf38] sm:$0xff] }
 0x339   : > { %5694 = vmatpush1.bf16.msra.mxu1 %v13823_v56  ;;  %v9482_v13 = vadd.f32 %v4823_v52, %v12368_v55  ;;  %v6971_v28 = vmax.f32 %v6715_v36, 0.0  ;;  %v6728_v10 = vmul.f32 %v9449_v20, %v11663_v48  ;;  %v13825_v3 = vcombine.high %v12350_v54, %v12353_v18  ;;  %v4601_v24 = vpop.f32.mrb[71].mxu0  ;;  %v12606_v57 = vld [vmem:[%s10469_s15 + $0xf78] sm:$0xff] }
 0x33a   : > { %5469 = vmatprep.subr.bf16.mxu0 %v13824_v22  ;;  %v9451_v4 = vadd.f32 %v4599_v50, %v12328_v51  ;;  %v9483_v56 = vadd.f32 %v4825_v6, %v12341_v9  ;;  %v9245_v33 = vpack.c.bf16 %v6969_v27, %v6968_v44  ;;  %v6730_v46 = vmul.f32 %v9481_v29, %v11663_v48 }
 0x33b   : > { %5695 = vmatprep.subr.bf16.mxu1 %v13825_v3  ;;  %v9125_v36 = vpack.c.bf16 %v9450_v25, %v9449_v20  ;;  %v6729_v31 = vmul.f32 %v9450_v25, %v11663_v48  ;;  %v13826_v43 = vcombine.low %v12334_v60, %v12337_v47  ;;  %v9246_v39 = vpack.c.bf16 %v6971_v28, %v6970_v17  ;;  %v12616_v60 = vld [vmem:[%s10469_s15 + $0xfb0] sm:$0xff] }
 0x33c   : > { %v6984_v52 = vmax.f32 %v6728_v10, 0.0  ;;  %v9126_v22 = vpack.c.bf16 %v9482_v13, %v9481_v29  ;;  %v6731_v44 = vmul.f32 %v9482_v13, %v11663_v48  ;;  %v13827_v20 = vcombine.low %v12350_v54, %v12353_v18  ;;  %v12619_v47 = vld [vmem:[%s10469_s15 + $0xff0] sm:$0xff]  ;;  %7982 = vst [vmem:[%s11754_s4 + $0x50] sm:$0xff] %v9245_v33 }
 0x33d   : > { %5470 = vmatpush1.bf16.msra.mxu0 %v13826_v43  ;;  %v13828_v27 = vcombine.high %v12356_v8, %v12371_v59  ;;  %v6986_v25 = vmax.f32 %v6730_v46, 0.0  ;;  %6580 = vst [vmem:[%s11718_s16 + $0x90] sm:$0xff] %v9125_v36  ;;  %v6985_v17 = vmax.f32 %v6729_v31, 0.0  ;;  %v6744_v29 = vmul.f32 %v9451_v4, %v11663_v48  ;;  %7983 = vst [vmem:[%s11754_s4 + $0x58] sm:$0xff] %v9246_v39  ;;  %v4605_v46 = vpop.f32.mrb[72].mxu0 }
 0x33e   : > { %5696 = vmatpush1.bf16.msra.mxu1 %v13827_v20  ;;  %v6746_v13 = vmul.f32 %v9483_v56, %v11663_v48  ;;  %v13829_v54 = vcombine.high %v12374_v16, %v12377_v58  ;;  %6581 = vst [vmem:[%s11718_s16 + $0x98] sm:$0xff] %v9126_v22  ;;  %v6987_v18 = vmax.f32 %v6731_v44, 0.0  ;;  %v9452_v50 = vadd.f32 %v4601_v24, %v12364_v41  ;;  %v4831_v24 = vpop.f32.mrb[72].mxu1 }
 0x33f   : > { %5471 = vmatprep.subr.bf16.mxu0 %v13828_v27  ;;  %v9484_v6 = vadd.f32 %v4827_v42, %v12368_v55  ;;  %5415 = vmatmul.mubr.bf16.gmra.mrb[144].mxu0 %v10814_v63  ;;  %v8823_v28 = vcombine.low %v12603_v2, %v12606_v57  ;;  %v9253_v10 = vpack.c.bf16 %v6985_v17, %v6984_v52  ;;  %v7000_v3 = vmax.f32 %v6744_v29, 0.0  ;;  %v4833_v52 = vpop.f32.mrb[73].mxu1 }
 0x340   : > { %5697 = vmatprep.subr.bf16.mxu1 %v13829_v54  ;;  %5641 = vmatmul.mubr.bf16.gmra.mrb[144].mxu1 %v10814_v63  ;;  %v13830_v33 = vcombine.low %v12356_v8, %v12371_v59  ;;  %v8824_v42 = vcombine.high %v12603_v2, %v12606_v57  ;;  %v8837_v63 = vcombine.low %v12616_v60, %v12619_v47  ;;  %v4607_v59 = vpop.f32.mrb[73].mxu0  ;;  %v7002_v22 = vmax.f32 %v6746_v13, 0.0 }
 0x341   : > { %5424 = vmatprep.mubr.bf16.mxu0 %v10850_v61  ;;  %v9254_v36 = vpack.c.bf16 %v6987_v18, %v6986_v25  ;;  %v9133_v31 = vpack.c.bf16 %v9452_v50, %v9451_v4  ;;  %v6745_v43 = vmul.f32 %v9452_v50, %v11663_v48  ;;  %v9134_v39 = vpack.c.bf16 %v9484_v6, %v9483_v56  ;;  %v4609_v27 = vpop.f32.mrb[74].mxu0 }
 0x342   : > { %5472 = vmatpush1.bf16.msra.mxu0 %v13830_v33  ;;  %v13831_v8 = vcombine.low %v12374_v16, %v12377_v58  ;;  %7990 = vst [vmem:[%s11754_s4 + $0x90] sm:$0xff] %v9253_v10  ;;  %v6747_v44 = vmul.f32 %v9484_v6, %v11663_v48  ;;  %5650 = vmatprep.mubr.bf16.mxu1 %v10850_v61  ;;  %v4835_v58 = vpop.f32.mrb[74].mxu1  ;;  %v4611_v13 = vpop.f32.mrb[75].mxu0 }
 0x343   : > { %v9453_v20 = vadd.f32 %v4605_v46, %v12328_v51  ;;  %v9485_v4 = vadd.f32 %v4831_v24, %v12341_v9  ;;  %v13832_v56 = vcombine.high %v12386_v38, %v12389_v12  ;;  %7991 = vst [vmem:[%s11754_s4 + $0x98] sm:$0xff] %v9254_v36  ;;  %6588 = vst [vmem:[%s11718_s16 + $0xd0] sm:$0xff] %v9133_v31  ;;  %v7001_v16 = vmax.f32 %v6745_v43, 0.0  ;;  %v4837_v54 = vpop.f32.mrb[75].mxu1 }
 0x344   : > { %5698 = vmatpush1.bf16.msra.mxu1 %v13831_v8  ;;  %6589 = vst [vmem:[%s11718_s16 + $0xd8] sm:$0xff] %v9134_v39  ;;  %v13833_v25 = vcombine.high %v12392_v7, %v12403_v34  ;;  %v9454_v61 = vadd.f32 %v4607_v59, %v12364_v41  ;;  %v9486_v17 = vadd.f32 %v4833_v52, %v12368_v55  ;;  %v7003_v18 = vmax.f32 %v6747_v44, 0.0  ;;  %v12676_v39 = vld [vmem:[%s10469_s15 + $0xfb8] sm:$0xff] }
 0x345   : > { %5473 = vmatprep.subr.bf16.mxu0 %v13832_v56  ;;  %v9455_v29 = vadd.f32 %v4609_v27, %v12328_v51  ;;  %v6760_v50 = vmul.f32 %v9453_v20, %v11663_v48  ;;  %v6762_v6 = vmul.f32 %v9485_v4, %v11663_v48  ;;  %v13834_v10 = vcombine.low %v12386_v38, %v12389_v12  ;;  %v12679_v8 = vld [vmem:[%s10469_s15 + $0xff8] sm:$0xff]  ;;  %s9363_s15 = sshll.u32 %s10283_s0, 10 }
 0x346   : > { %5699 = vmatprep.subr.bf16.mxu1 %v13833_v25  ;;  %v9487_v33 = vadd.f32 %v4835_v58, %v12341_v9  ;;  %v9261_v46 = vpack.c.bf16 %v7001_v16, %v7000_v3  ;;  %v9141_v24 = vpack.c.bf16 %v9454_v61, %v9453_v20  ;;  %v6761_v36 = vmul.f32 %v9454_v61, %v11663_v48  ;;  %v4615_v58 = vpop.f32.mrb[76].mxu0  ;;  %v4841_v16 = vpop.f32.mrb[76].mxu1  ;;  %s13357_s18 = scalar_lea.hbm %s13459_s6, %s9363_s15 }
 0x347   : > { %5474 = vmatpush1.bf16.msra.mxu0 %v13834_v10  ;;  %v9142_v31 = vpack.c.bf16 %v9486_v17, %v9485_v4  ;;  %v13835_v43 = vcombine.low %v12392_v7, %v12403_v34  ;;  %v9262_v12 = vpack.c.bf16 %v7003_v18, %v7002_v22  ;;  %v7016_v38 = vmax.f32 %v6760_v50, 0.0  ;;  %v4843_v18 = vpop.f32.mrb[77].mxu1 }
 0x348   : > { %v7018_v59 = vmax.f32 %v6762_v6, 0.0  ;;  %v6763_v52 = vmul.f32 %v9486_v17, %v11663_v48  ;;  %v13836_v3 = vcombine.high %v12406_v19, %v12409_v15  ;;  %v13837_v44 = vcombine.high %v12418_v14, %v12421_v40  ;;  %7998 = vst [vmem:[%s11754_s4 + $0xd0] sm:$0xff] %v9261_v46  ;;  %6596 = vst [vmem:[%s11718_s16 + $0x110] sm:$0xff] %v9141_v24 }
 0x349   : > { %5700 = vmatpush1.bf16.msra.mxu1 %v13835_v43  ;;  %v7017_v7 = vmax.f32 %v6761_v36, 0.0  ;;  %6597 = vst [vmem:[%s11718_s16 + $0x118] sm:$0xff] %v9142_v31  ;;  %v6776_v34 = vmul.f32 %v9455_v29, %v11663_v48  ;;  %v6778_v22 = vmul.f32 %v9487_v33, %v11663_v48  ;;  %v9456_v20 = vadd.f32 %v4611_v13, %v12364_v41  ;;  %v4845_v36 = vpop.f32.mrb[78].mxu1 }
 0x34a   : > { %5475 = vmatprep.subr.bf16.mxu0 %v13836_v3  ;;  %5701 = vmatprep.subr.bf16.mxu1 %v13837_v44  ;;  %7999 = vst [vmem:[%s11754_s4 + $0xd8] sm:$0xff] %v9262_v12  ;;  %v7019_v4 = vmax.f32 %v6763_v52, 0.0  ;;  %v9488_v56 = vadd.f32 %v4837_v54, %v12368_v55  ;;  %v13838_v27 = vcombine.low %v12406_v19, %v12409_v15  ;;  %v4617_v19 = vpop.f32.mrb[77].mxu0  ;;  %v4847_v12 = vpop.f32.mrb[79].mxu1 }
 0x34b   : > { %5425 = vmatmul.mubr.bf16.gmra.mrb[148].mxu0 %v10846_v53  ;;  %5651 = vmatmul.mubr.bf16.gmra.mrb[148].mxu1 %v10846_v53  ;;  %v8838_v25 = vcombine.high %v12616_v60, %v12619_v47  ;;  %v8839_v61 = vcombine.low %v12676_v39, %v12679_v8  ;;  %v9269_v53 = vpack.c.bf16 %v7017_v7, %v7016_v38  ;;  %v7032_v17 = vmax.f32 %v6776_v34, 0.0 }
 0x34c   : > { %5476 = vmatpush1.bf16.msra.mxu0 %v13838_v27  ;;  %5434 = vmatprep.mubr.bf16.mxu0 %v10882_v5  ;;  %v7034_v13 = vmax.f32 %v6778_v22, 0.0  ;;  %v9149_v54 = vpack.c.bf16 %v9456_v20, %v9455_v29  ;;  %v13839_v15 = vcombine.low %v12418_v14, %v12421_v40  ;;  %v9270_v50 = vpack.c.bf16 %v7019_v4, %v7018_v59  ;;  %v4619_v29 = vpop.f32.mrb[78].mxu0 }
 0x34d   : > { %5660 = vmatprep.mubr.bf16.mxu1 %v10882_v5  ;;  %v6777_v6 = vmul.f32 %v9456_v20, %v11663_v48  ;;  %v9150_v10 = vpack.c.bf16 %v9488_v56, %v9487_v33  ;;  %v6779_v46 = vmul.f32 %v9488_v56, %v11663_v48  ;;  %v13840_v24 = vcombine.high %v12424_v32, %v12435_v45  ;;  %v4621_v43 = vpop.f32.mrb[79].mxu0 }
 0x34e   : > { %5702 = vmatpush1.bf16.msra.mxu1 %v13839_v15  ;;  %8006 = vst [vmem:[%s11754_s4 + $0x110] sm:$0xff] %v9269_v53  ;;  %6604 = vst [vmem:[%s11718_s16 + $0x150] sm:$0xff] %v9149_v54  ;;  %v9457_v5 = vadd.f32 %v4615_v58, %v12328_v51  ;;  %v9489_v40 = vadd.f32 %v4841_v16, %v12341_v9  ;;  %v13841_v14 = vcombine.high %v12438_v11, %v12441_v35 }
 0x34f   : > { %5477 = vmatprep.subr.bf16.mxu0 %v13840_v24  ;;  %v9458_v33 = vadd.f32 %v4617_v19, %v12364_v41  ;;  %v9490_v31 = vadd.f32 %v4843_v18, %v12368_v55  ;;  %8007 = vst [vmem:[%s11754_s4 + $0x118] sm:$0xff] %v9270_v50  ;;  %v7033_v38 = vmax.f32 %v6777_v6, 0.0  ;;  %6605 = vst [vmem:[%s11718_s16 + $0x158] sm:$0xff] %v9150_v10  ;;  %v7035_v59 = vmax.f32 %v6779_v46, 0.0  ;;  %v4625_v6 = vpop.f32.mrb[80].mxu0  ;;  %v4851_v10 = vpop.f32.mrb[80].mxu1 }
 0x350   : > { %5703 = vmatprep.subr.bf16.mxu1 %v13841_v14  ;;  %v13842_v52 = vcombine.low %v12424_v32, %v12435_v45  ;;  %v9459_v3 = vadd.f32 %v4619_v29, %v12328_v51  ;;  %v9491_v44 = vadd.f32 %v4845_v36, %v12341_v9  ;;  %v6792_v7 = vmul.f32 %v9457_v5, %v11663_v48  ;;  %v13849_v36 = vld [vmem:[#allocation51_spill] sm:$0xff]  ;;  %v4627_v14 = vpop.f32.mrb[81].mxu0 }
 0x351   : > { %v6794_v34 = vmul.f32 %v9489_v40, %v11663_v48  ;;  %v9157_v22 = vpack.c.bf16 %v9458_v33, %v9457_v5  ;;  %v6793_v20 = vmul.f32 %v9458_v33, %v11663_v48  ;;  %v13843_v4 = vcombine.low %v12438_v11, %v12441_v35  ;;  %v13846_v11 = vld [vmem:[#allocation46_spill] sm:$0xff] }
 0x352   : > { %5478 = vmatpush1.bf16.msra.mxu0 %v13842_v52  ;;  %v9277_v32 = vpack.c.bf16 %v7033_v38, %v7032_v17  ;;  %v9278_v45 = vpack.c.bf16 %v7035_v59, %v7034_v13  ;;  %v9158_v56 = vpack.c.bf16 %v9490_v31, %v9489_v40  ;;  %v6795_v27 = vmul.f32 %v9490_v31, %v11663_v48  ;;  %v4629_v38 = vpop.f32.mrb[82].mxu0 }
 0x353   : > { %5704 = vmatpush1.bf16.msra.mxu1 %v13843_v4  ;;  %v13844_v58 = vcombine.high %v12456_v1, %v12459_v0  ;;  %v7048_v16 = vmax.f32 %v6792_v7, 0.0  ;;  %v7050_v53 = vmax.f32 %v6794_v34, 0.0  ;;  %6612 = vst [vmem:[%s11718_s16 + $0x190] sm:$0xff] %v9157_v22  ;;  %v7049_v54 = vmax.f32 %v6793_v20, 0.0  ;;  %5435 = vmatmul.mubr.bf16.gmra.mrb[152].mxu0 %v13846_v11 }
 0x354   : > { %v6808_v15 = vmul.f32 %v9459_v3, %v11663_v48  ;;  %v13845_v35 = vcombine.high %v12462_v30, %v12474_v62  ;;  %8014 = vst [vmem:[%s11754_s4 + $0x150] sm:$0xff] %v9277_v32  ;;  %8015 = vst [vmem:[%s11754_s4 + $0x158] sm:$0xff] %v9278_v45  ;;  %v7051_v17 = vmax.f32 %v6795_v27, 0.0  ;;  %v6810_v13 = vmul.f32 %v9491_v44, %v11663_v48 }
 0x355   : > { %5479 = vmatprep.subr.bf16.mxu0 %v13844_v58  ;;  %6613 = vst [vmem:[%s11718_s16 + $0x198] sm:$0xff] %v9158_v56  ;;  %v9460_v19 = vadd.f32 %v4621_v43, %v12364_v41  ;;  %v9492_v18 = vadd.f32 %v4847_v12, %v12368_v55  ;;  %v13847_v50 = vcombine.low %v12456_v1, %v12459_v0  ;;  %v4853_v0 = vpop.f32.mrb[81].mxu1  ;;  %v13850_v12 = vld [vmem:[#allocation54_spill] sm:$0xff] }
 0x356   : > { %5705 = vmatprep.subr.bf16.mxu1 %v13845_v35  ;;  %5661 = vmatmul.mubr.bf16.gmra.mrb[152].mxu1 %v13846_v11  ;;  %v9285_v46 = vpack.c.bf16 %v7049_v54, %v7048_v16  ;;  %v7064_v24 = vmax.f32 %v6808_v15, 0.0  ;;  %v13848_v29 = vcombine.low %v12462_v30, %v12474_v62  ;;  %v9461_v5 = vadd.f32 %v4625_v6, %v12328_v51  ;;  %v13851_v30 = vld [vmem:[#allocation55_spill] sm:$0xff]  ;;  %v4855_v59 = vpop.f32.mrb[82].mxu1 }
 0x357   : > { %5480 = vmatpush1.bf16.msra.mxu0 %v13847_v50  ;;  %5444 = vmatprep.mubr.bf16.mxu0 %v13849_v36  ;;  %v9493_v40 = vadd.f32 %v4851_v10, %v12341_v9  ;;  %v9286_v1 = vpack.c.bf16 %v7051_v17, %v7050_v53  ;;  %v7066_v33 = vmax.f32 %v6810_v13, 0.0  ;;  %v9165_v31 = vpack.c.bf16 %v9460_v19, %v9459_v3  ;;  %v4631_v3 = vpop.f32.mrb[83].mxu0  ;;  %v4857_v20 = vpop.f32.mrb[83].mxu1 }
 0x358   : > { %5706 = vmatpush1.bf16.msra.mxu1 %v13848_v29  ;;  %v6809_v43 = vmul.f32 %v9460_v19, %v11663_v48  ;;  %5670 = vmatprep.mubr.bf16.mxu1 %v13849_v36  ;;  %v13852_v62 = vcombine.high %v13850_v12, %v13851_v30  ;;  %8022 = vst [vmem:[%s11754_s4 + $0x190] sm:$0xff] %v9285_v46  ;;  %v4635_v46 = vpop.f32.mrb[84].mxu0 }
 0x359   : > { %v9166_v52 = vpack.c.bf16 %v9492_v18, %v9491_v44  ;;  %v6811_v7 = vmul.f32 %v9492_v18, %v11663_v48  ;;  %v6824_v34 = vmul.f32 %v9461_v5, %v11663_v48  ;;  %v6826_v22 = vmul.f32 %v9493_v40, %v11663_v48  ;;  %5707 = vmatprep.subr.bf16.mxu1 %v8808_v37  ;;  %v13856_v18 = vld [vmem:[#allocation49_spill] sm:$0xff] }
 0x35a   : > { %5481 = vmatprep.subr.bf16.mxu0 %v13852_v62  ;;  %8023 = vst [vmem:[%s11754_s4 + $0x198] sm:$0xff] %v9286_v1  ;;  %6620 = vst [vmem:[%s11718_s16 + $0x1d0] sm:$0xff] %v9165_v31  ;;  %v7065_v4 = vmax.f32 %v6809_v43, 0.0  ;;  %v9462_v32 = vadd.f32 %v4627_v14, %v12364_v41  ;;  %v9494_v45 = vadd.f32 %v4853_v0, %v12368_v55  ;;  %v13858_v14 = vld [vmem:[#allocation31_spill] sm:$0xff] }
 0x35b   : > { %v13853_v44 = vcombine.low %v13850_v12, %v13851_v30  ;;  %v9463_v56 = vadd.f32 %v4629_v38, %v12328_v51  ;;  %6621 = vst [vmem:[%s11718_s16 + $0x1d8] sm:$0xff] %v9166_v52  ;;  %v7067_v27 = vmax.f32 %v6811_v7, 0.0  ;;  %v7080_v58 = vmax.f32 %v6824_v34, 0.0  ;;  %5445 = vmatmul.mubr.bf16.gmra.mrb[156].mxu0 %v13856_v18 }
 0x35c   : > { %v7082_v37 = vmax.f32 %v6826_v22, 0.0  ;;  %v13854_v16 = vcombine.low %v12499_v49, %v12502_v21  ;;  %v9495_v53 = vadd.f32 %v4855_v59, %v12341_v9  ;;  %v13855_v54 = vcombine.high %v12542_v26, %v12545_v23  ;;  %5487 = vmatprep.mubr.bf16.mxu0 %v13858_v14 }
 0x35d   : > { %5482 = vmatpush1.bf16.msra.mxu0 %v13853_v44  ;;  %v9293_v15 = vpack.c.bf16 %v7065_v4, %v7064_v24  ;;  %v9173_v35 = vpack.c.bf16 %v9462_v32, %v9461_v5  ;;  %v6825_v11 = vmul.f32 %v9462_v32, %v11663_v48  ;;  %v9174_v17 = vpack.c.bf16 %v9494_v45, %v9493_v40  ;;  %v4861_v24 = vpop.f32.mrb[84].mxu1 }
 0x35e   : > { %5708 = vmatpush1.bf16.msra.mxu1 %v13854_v16  ;;  %5483 = vmatprep.subr.bf16.mxu0 %v13855_v54  ;;  %v9294_v13 = vpack.c.bf16 %v7067_v27, %v7066_v33  ;;  %v6827_v21 = vmul.f32 %v9494_v45, %v11663_v48  ;;  %v6840_v49 = vmul.f32 %v9463_v56, %v11663_v48  ;;  %v4863_v0 = vpop.f32.mrb[85].mxu1  ;;  %v13860_v16 = vld [vmem:[#allocation35_spill] sm:$0xff] }
 0x35f   : > { %5709 = vmatprep.subr.bf16.mxu1 %v8824_v42  ;;  %v6842_v19 = vmul.f32 %v9495_v53, %v11663_v48  ;;  %8030 = vst [vmem:[%s11754_s4 + $0x1d0] sm:$0xff] %v9293_v15  ;;  %6628 = vst [vmem:[%s11718_s16 + $0x210] sm:$0xff] %v9173_v35  ;;  %v7081_v50 = vmax.f32 %v6825_v11, 0.0  ;;  %v9464_v6 = vadd.f32 %v4631_v3, %v12364_v41  ;;  %5671 = vmatmul.mubr.bf16.gmra.mrb[156].mxu1 %v13856_v18  ;;  %v4865_v30 = vpop.f32.mrb[86].mxu1 }
 0x360   : > { %6629 = vst [vmem:[%s11718_s16 + $0x218] sm:$0xff] %v9174_v17  ;;  %v9496_v10 = vadd.f32 %v4857_v20, %v12368_v55  ;;  %v13857_v42 = vcombine.low %v12542_v26, %v12545_v23  ;;  %v8840_v29 = vcombine.high %v12676_v39, %v12679_v8  ;;  %8031 = vst [vmem:[%s11754_s4 + $0x1d8] sm:$0xff] %v9294_v13  ;;  %v7083_v36 = vmax.f32 %v6827_v21, 0.0  ;;  %v4637_v26 = vpop.f32.mrb[85].mxu0  ;;  %v4867_v59 = vpop.f32.mrb[87].mxu1 }
 0x361   : > { %v7096_v5 = vmax.f32 %v6840_v49, 0.0  ;;  %v7098_v40 = vmax.f32 %v6842_v19, 0.0  ;;  %v9465_v23 = vadd.f32 %v4635_v46, %v12328_v51  ;;  %v9301_v1 = vpack.c.bf16 %v7081_v50, %v7080_v58  ;;  %5713 = vmatprep.mubr.bf16.mxu1 %v13858_v14  ;;  %v4639_v12 = vpop.f32.mrb[86].mxu0  ;;  %v13859_v58 = vld [vmem:[#allocation29_spill] sm:$0xff]  ;;  %v4871_v54 = vpop.f32.mrb[88].mxu1 }
 0x362   : > { %5484 = vmatpush1.bf16.msra.mxu0 %v13857_v42  ;;  %5710 = vmatpush1.bf16.msra.mxu1 %v8823_v28  ;;  %v9181_v33 = vpack.c.bf16 %v9464_v6, %v9463_v56  ;;  %v6841_v31 = vmul.f32 %v9464_v6, %v11663_v48  ;;  %v9182_v43 = vpack.c.bf16 %v9496_v10, %v9495_v53  ;;  %v4641_v38 = vpop.f32.mrb[87].mxu0  ;;  %v4873_v21 = vpop.f32.mrb[89].mxu1 }
 0x363   : > { %v9302_v2 = vpack.c.bf16 %v7083_v36, %v7082_v37  ;;  %v6843_v57 = vmul.f32 %v9496_v10, %v11663_v48  ;;  %v6856_v28 = vmul.f32 %v9465_v23, %v11663_v48  ;;  %v9497_v62 = vadd.f32 %v4861_v24, %v12341_v9  ;;  %5485 = vmatprep.subr.bf16.mxu0 %v8838_v25  ;;  %v4645_v53 = vpop.f32.mrb[88].mxu0  ;;  %v4875_v10 = vpop.f32.mrb[90].mxu1 }
 0x364   : > { %8038 = vst [vmem:[%s11754_s4 + $0x210] sm:$0xff] %v9301_v1  ;;  %6636 = vst [vmem:[%s11718_s16 + $0x250] sm:$0xff] %v9181_v33  ;;  %v7097_v52 = vmax.f32 %v6841_v31, 0.0  ;;  %5711 = vmatprep.subr.bf16.mxu1 %v8840_v29  ;;  %v9466_v7 = vadd.f32 %v4637_v26, %v12364_v41  ;;  %v9498_v34 = vadd.f32 %v4863_v0, %v12368_v55  ;;  %v4647_v13 = vpop.f32.mrb[89].mxu0 }
 0x365   : > { %6637 = vst [vmem:[%s11718_s16 + $0x258] sm:$0xff] %v9182_v43  ;;  %v9467_v22 = vadd.f32 %v4639_v12, %v12328_v51  ;;  %8039 = vst [vmem:[%s11754_s4 + $0x218] sm:$0xff] %v9302_v2  ;;  %v7099_v25 = vmax.f32 %v6843_v57, 0.0  ;;  %v7112_v3 = vmax.f32 %v6856_v28, 0.0  ;;  %v6858_v20 = vmul.f32 %v9497_v62, %v11663_v48  ;;  %v4649_v6 = vpop.f32.mrb[90].mxu0 }
 0x366   : > { %5486 = vmatpush1.bf16.msra.mxu0 %v8837_v63  ;;  %5712 = vmatpush1.bf16.msra.mxu1 %v8839_v61  ;;  %v9499_v4 = vadd.f32 %v4865_v30, %v12341_v9  ;;  %v9309_v32 = vpack.c.bf16 %v7097_v52, %v7096_v5  ;;  %v9189_v45 = vpack.c.bf16 %v9466_v7, %v9465_v23  ;;  %v4651_v36 = vpop.f32.mrb[91].mxu0  ;;  %v4877_v5 = vpop.f32.mrb[91].mxu1 }
 0x367   : > { %v6857_v60 = vmul.f32 %v9466_v7, %v11663_v48  ;;  %v9190_v47 = vpack.c.bf16 %v9498_v34, %v9497_v62  ;;  %v9310_v63 = vpack.c.bf16 %v7099_v25, %v7098_v40  ;;  %v7114_v44 = vmax.f32 %v6858_v20, 0.0  ;;  %v13862_v25 = vld [vmem:[#allocation39_spill] sm:$0xff]  ;;  %v4881_v20 = vpop.f32.mrb[92].mxu1 }
 0x368   : > { %v6859_v56 = vmul.f32 %v9498_v34, %v11663_v48  ;;  %v6872_v27 = vmul.f32 %v9467_v22, %v11663_v48  ;;  %8046 = vst [vmem:[%s11754_s4 + $0x250] sm:$0xff] %v9309_v32  ;;  %6644 = vst [vmem:[%s11718_s16 + $0x290] sm:$0xff] %v9189_v45  ;;  %v6874_v8 = vmul.f32 %v9499_v4, %v11663_v48 }
 0x369   : > { %5488 = vmatmul.mubr.bf16.vlgmr.msra.gmra.mrb[128].mxu0 %v13859_v58  ;;  %v7113_v39 = vmax.f32 %v6857_v60, 0.0  ;;  %6645 = vst [vmem:[%s11718_s16 + $0x298] sm:$0xff] %v9190_v47  ;;  %v9468_v61 = vadd.f32 %v4641_v38, %v12364_v41  ;;  %v9500_v37 = vadd.f32 %v4867_v59, %v12368_v55  ;;  %5714 = vmatmul.mubr.bf16.vlgmr.msra.gmra.mrb[128].mxu1 %v13859_v58  ;;  %8047 = vst [vmem:[%s11754_s4 + $0x258] sm:$0xff] %v9310_v63  ;;  %v13861_v59 = vld [vmem:[#allocation33_spill] sm:$0xff]  ;;  %v4883_v63 = vpop.f32.mrb[93].mxu1 }
 0x36a   : > { %5497 = vmatprep.mubr.bf16.mxu0 %v13860_v16  ;;  %v7115_v15 = vmax.f32 %v6859_v56, 0.0  ;;  %v7128_v35 = vmax.f32 %v6872_v27, 0.0  ;;  %5723 = vmatprep.mubr.bf16.mxu1 %v13860_v16  ;;  %v9469_v11 = vadd.f32 %v4645_v53, %v12328_v51  ;;  %v9501_v17 = vadd.f32 %v4871_v54, %v12341_v9 }
 0x36b   : > { %v9317_v49 = vpack.c.bf16 %v7113_v39, %v7112_v3  ;;  %v7130_v19 = vmax.f32 %v6874_v8, 0.0  ;;  %v9197_v18 = vpack.c.bf16 %v9468_v61, %v9467_v22  ;;  %v6873_v50 = vmul.f32 %v9468_v61, %v11663_v48  ;;  %v4655_v3 = vpop.f32.mrb[92].mxu0  ;;  %v4885_v8 = vpop.f32.mrb[94].mxu1 }
 0x36c   : > { %v9318_v42 = vpack.c.bf16 %v7115_v15, %v7114_v44  ;;  %v9198_v46 = vpack.c.bf16 %v9500_v37, %v9499_v4  ;;  %v6875_v24 = vmul.f32 %v9500_v37, %v11663_v48  ;;  %v6888_v29 = vmul.f32 %v9469_v11, %v11663_v48  ;;  %v4657_v47 = vpop.f32.mrb[93].mxu0  ;;  %v4887_v15 = vpop.f32.mrb[95].mxu1 }
 0x36d   : > { %8054 = vst [vmem:[%s11754_s4 + $0x290] sm:$0xff] %v9317_v49  ;;  %6652 = vst [vmem:[%s11718_s16 + $0x2d0] sm:$0xff] %v9197_v18  ;;  %v7129_v40 = vmax.f32 %v6873_v50, 0.0  ;;  %v6890_v14 = vmul.f32 %v9501_v17, %v11663_v48  ;;  %v9470_v23 = vadd.f32 %v4647_v13, %v12364_v41  ;;  %v9502_v26 = vadd.f32 %v4873_v21, %v12368_v55  ;;  %v4659_v39 = vpop.f32.mrb[94].mxu0 }
 0x36e   : > { %8055 = vst [vmem:[%s11754_s4 + $0x298] sm:$0xff] %v9318_v42  ;;  %6653 = vst [vmem:[%s11718_s16 + $0x2d8] sm:$0xff] %v9198_v46  ;;  %v7131_v0 = vmax.f32 %v6875_v24, 0.0  ;;  %v7144_v1 = vmax.f32 %v6888_v29, 0.0  ;;  %v9471_v33 = vadd.f32 %v4649_v6, %v12328_v51  ;;  %v9503_v31 = vadd.f32 %v4875_v10, %v12341_v9  ;;  %v4661_v54 = vpop.f32.mrb[95].mxu0 }
 0x36f   : > { %v9325_v43 = vpack.c.bf16 %v7129_v40, %v7128_v35  ;;  %v7146_v12 = vmax.f32 %v6890_v14, 0.0  ;;  %v9205_v30 = vpack.c.bf16 %v9470_v23, %v9469_v11  ;;  %v6889_v2 = vmul.f32 %v9470_v23, %v11663_v48  ;;  %v13864_v23 = vld [vmem:[#allocation42_spill] sm:$0xff] }
 0x370   : > { %v9326_v57 = vpack.c.bf16 %v7131_v0, %v7130_v19  ;;  %v9206_v28 = vpack.c.bf16 %v9502_v26, %v9501_v17  ;;  %v6891_v62 = vmul.f32 %v9502_v26, %v11663_v48  ;;  %v6904_v38 = vmul.f32 %v9471_v33, %v11663_v48 }
 0x371   : > { %5498 = vmatmul.mubr.bf16.gmra.mrb[132].mxu0 %v13861_v59  ;;  %8062 = vst [vmem:[%s11754_s4 + $0x2d0] sm:$0xff] %v9325_v43  ;;  %6660 = vst [vmem:[%s11718_s16 + $0x310] sm:$0xff] %v9205_v30  ;;  %v7145_v52 = vmax.f32 %v6889_v2, 0.0  ;;  %v6906_v7 = vmul.f32 %v9503_v31, %v11663_v48  ;;  %v9472_v34 = vadd.f32 %v4651_v36, %v12364_v41  ;;  %5724 = vmatmul.mubr.bf16.gmra.mrb[132].mxu1 %v13861_v59  ;;  %v13867_v59 = vld [vmem:[#allocation43_spill] sm:$0xff] }
 0x372   : > { %v9504_v22 = vadd.f32 %v4877_v5, %v12368_v55  ;;  %5507 = vmatprep.mubr.bf16.mxu0 %v13862_v25  ;;  %8063 = vst [vmem:[%s11754_s4 + $0x2d8] sm:$0xff] %v9326_v57  ;;  %6661 = vst [vmem:[%s11718_s16 + $0x318] sm:$0xff] %v9206_v28  ;;  %v7147_v4 = vmax.f32 %v6891_v62, 0.0  ;;  %v7160_v32 = vmax.f32 %v6904_v38, 0.0  ;;  %5733 = vmatprep.mubr.bf16.mxu1 %v13862_v25  ;;  %v13863_v5 = vld [vmem:[#allocation37_spill] sm:$0xff]  ;;  %v13866_v38 = vld [vmem:[#allocation44_spill] sm:$0xff] }
 0x373   : > { %v9473_v45 = vadd.f32 %v4655_v3, %v12328_v51  ;;  %v9505_v60 = vadd.f32 %v4881_v20, %v12341_v9  ;;  %v9333_v44 = vpack.c.bf16 %v7145_v52, %v7144_v1  ;;  %v7162_v56 = vmax.f32 %v6906_v7, 0.0  ;;  %v13865_v62 = vld [vmem:[#allocation41_spill] sm:$0xff]  ;;  %v13868_v52 = vld [vmem:[#allocation47_spill] sm:$0xff]  ;;  %v13873_v3 = vld [vmem:[#allocation52_spill] sm:$0xff] }
 0x374   : > { %v9213_v27 = vpack.c.bf16 %v9472_v34, %v9471_v33  ;;  %v6905_v58 = vmul.f32 %v9472_v34, %v11663_v48  ;;  %v9334_v61 = vpack.c.bf16 %v7147_v4, %v7146_v12  ;;  %v9214_v37 = vpack.c.bf16 %v9504_v22, %v9503_v31  ;;  %v13869_v7 = vld [vmem:[#allocation45_spill] sm:$0xff]  ;;  %v13870_v34 = vld [vmem:[#allocation50_spill] sm:$0xff]  ;;  %v13874_v4 = vld [vmem:[#allocation23_spill] sm:$0xff] }
 0x375   : > { %v6907_v16 = vmul.f32 %v9504_v22, %v11663_v48  ;;  %v6920_v53 = vmul.f32 %v9473_v45, %v11663_v48  ;;  %8070 = vst [vmem:[%s11754_s4 + $0x310] sm:$0xff] %v9333_v44  ;;  %v6922_v11 = vmul.f32 %v9505_v60, %v11663_v48  ;;  %v9474_v17 = vadd.f32 %v4657_v47, %v12364_v41  ;;  %v13871_v22 = vld [vmem:[#allocation48_spill] sm:$0xff]  ;;  %v13872_v25 = vld [vmem:[#allocation53_spill] sm:$0xff] }
 0x376   : > { %6668 = vst [vmem:[%s11718_s16 + $0x350] sm:$0xff] %v9213_v27  ;;  %v7161_v35 = vmax.f32 %v6905_v58, 0.0  ;;  %v9506_v13 = vadd.f32 %v4883_v63, %v12368_v55  ;;  %8071 = vst [vmem:[%s11754_s4 + $0x318] sm:$0xff] %v9334_v61  ;;  %v9475_v19 = vadd.f32 %v4659_v39, %v12328_v51  ;;  %v9507_v18 = vadd.f32 %v4885_v8, %v12341_v9  ;;  %v12936_v20 = vld [vmem:[%s11304_s8 + $0x8] sm:$0xff] }
 0x377   : > { %6669 = vst [vmem:[%s11718_s16 + $0x358] sm:$0xff] %v9214_v37  ;;  %v7163_v21 = vmax.f32 %v6907_v16, 0.0  ;;  %v7176_v49 = vmax.f32 %v6920_v53, 0.0  ;;  %v7178_v6 = vmax.f32 %v6922_v11, 0.0  ;;  %v9221_v10 = vpack.c.bf16 %v9474_v17, %v9473_v45  ;;  %v13875_v45 = vld [vmem:[#allocation24_spill] sm:$0xff]  ;;  %v13876_v47 = vld [vmem:[#allocation25_spill] sm:$0xff] }
 0x378   : > { %v9341_v50 = vpack.c.bf16 %v7161_v35, %v7160_v32  ;;  %v6921_v42 = vmul.f32 %v9474_v17, %v11663_v48  ;;  %v9222_v24 = vpack.c.bf16 %v9506_v13, %v9505_v60  ;;  %v6923_v29 = vmul.f32 %v9506_v13, %v11663_v48 }
 0x379   : > { %v9342_v46 = vpack.c.bf16 %v7163_v21, %v7162_v56  ;;  %v6936_v36 = vmul.f32 %v9475_v19, %v11663_v48  ;;  %5508 = vmatmul.mubr.bf16.gmra.mrb[136].mxu0 %v13863_v5  ;;  %6676 = vst [vmem:[%s11718_s16 + $0x390] sm:$0xff] %v9221_v10  ;;  %v6938_v9 = vmul.f32 %v9507_v18, %v11663_v48  ;;  %v13877_v56 = vld [vmem:[#allocation26_spill] sm:$0xff] }
 0x37a   : > { %8078 = vst [vmem:[%s11754_s4 + $0x350] sm:$0xff] %v9341_v50  ;;  %v7177_v51 = vmax.f32 %v6921_v42, 0.0  ;;  %v9476_v40 = vadd.f32 %v4661_v54, %v12364_v41  ;;  %v9508_v14 = vadd.f32 %v4887_v15, %v12368_v55  ;;  %5734 = vmatmul.mubr.bf16.gmra.mrb[136].mxu1 %v13863_v5  ;;  %5517 = vmatprep.mubr.bf16.mxu0 %v13864_v23  ;;  %6677 = vst [vmem:[%s11718_s16 + $0x398] sm:$0xff] %v9222_v24 }
 0x37b   : > { %8079 = vst [vmem:[%s11754_s4 + $0x358] sm:$0xff] %v9342_v46  ;;  %v7179_v26 = vmax.f32 %v6923_v29, 0.0  ;;  %5743 = vmatprep.mubr.bf16.mxu1 %v13864_v23  ;;  %v7192_v1 = vmax.f32 %v6936_v36, 0.0  ;;  %v7194_v55 = vmax.f32 %v6938_v9, 0.0  ;;  %v12940_v32 = vrot.slane %v12936_v20, %v13874_v4 }
 0x37c   : > { %v9349_v0 = vpack.c.bf16 %v7177_v51, %v7176_v49  ;;  %v9229_v33 = vpack.c.bf16 %v9476_v40, %v9475_v19  ;;  %v6937_v41 = vmul.f32 %v9476_v40, %v11663_v48  ;;  %v9230_v43 = vpack.c.bf16 %v9508_v14, %v9507_v18 }
 0x37d   : > { %v9350_v31 = vpack.c.bf16 %v7179_v26, %v7178_v6  ;;  %v6939_v12 = vmul.f32 %v9508_v14, %v11663_v48  ;;  %v12944_v60 = vrot.slane %v12936_v20, %v13875_v45  ;;  %v12948_v63 = vrot.slane %v12936_v20, %v13876_v47 }
 0x37e   : > { %8086 = vst [vmem:[%s11754_s4 + $0x390] sm:$0xff] %v9349_v0  ;;  %6684 = vst [vmem:[%s11718_s16 + $0x3d0] sm:$0xff] %v9229_v33  ;;  %v7193_v30 = vmax.f32 %v6937_v41, 0.0  ;;  %v12952_v27 = vrot.slane %v12936_v20, %v13877_v56 }
 0x37f   : > { %8087 = vst [vmem:[%s11754_s4 + $0x398] sm:$0xff] %v9350_v31  ;;  %6685 = vst [vmem:[%s11718_s16 + $0x3d8] sm:$0xff] %v9230_v43  ;;  %v7195_v2 = vmax.f32 %v6939_v12, 0.0 }
 0x380   : > { %v9357_v57 = vpack.c.bf16 %v7193_v30, %v7192_v1 }
 0x381   : > { %v9358_v28 = vpack.c.bf16 %v7195_v2, %v7194_v55  ;;  %5518 = vmatmul.mubr.bf16.gmra.mrb[140].mxu0 %v13865_v62 }
 0x382   : > { %8094 = vst [vmem:[%s11754_s4 + $0x3d0] sm:$0xff] %v9357_v57  ;;  %5744 = vmatmul.mubr.bf16.gmra.mrb[140].mxu1 %v13865_v62  ;;  %5527 = vmatprep.mubr.bf16.mxu0 %v13866_v38 }
 0x383   : > { %8095 = vst [vmem:[%s11754_s4 + $0x3d8] sm:$0xff] %v9358_v28  ;;  %5753 = vmatprep.mubr.bf16.mxu1 %v13866_v38 }
 0x389   : > { %5528 = vmatmul.mubr.bf16.gmra.mrb[144].mxu0 %v13867_v59 }
 0x38a   : > { %5754 = vmatmul.mubr.bf16.gmra.mrb[144].mxu1 %v13867_v59  ;;  %5537 = vmatprep.mubr.bf16.mxu0 %v13868_v52 }
 0x38b   : > { %5763 = vmatprep.mubr.bf16.mxu1 %v13868_v52 }
 0x391   : > { %5538 = vmatmul.mubr.bf16.gmra.mrb[148].mxu0 %v13869_v7 }
 0x392   : > { %5764 = vmatmul.mubr.bf16.gmra.mrb[148].mxu1 %v13869_v7  ;;  %5547 = vmatprep.mubr.bf16.mxu0 %v13870_v34 }
 0x393   : > { %5773 = vmatprep.mubr.bf16.mxu1 %v13870_v34 }
 0x399   : > { %5548 = vmatmul.mubr.bf16.gmra.mrb[152].mxu0 %v13871_v22 }
 0x39a   : > { %5774 = vmatmul.mubr.bf16.gmra.mrb[152].mxu1 %v13871_v22  ;;  %5557 = vmatprep.mubr.bf16.mxu0 %v13872_v25 }
 0x39b   : > { %5783 = vmatprep.mubr.bf16.mxu1 %v13872_v25 }
 0x3a1   : > { %5558 = vmatmul.mubr.bf16.gmra.mrb[156].mxu0 %v13873_v3 }
 0x3a2   : > { %5784 = vmatmul.mubr.bf16.gmra.mrb[156].mxu1 %v13873_v3 }
 0x3a9   : > { %v5037_v44 = vpop.f32.mrb[96].mxu0 }
 0x3aa   : > { %v9509_v58 = vadd.f32 %v5037_v44, %v12940_v32  ;;  %v5039_v39 = vpop.f32.mrb[97].mxu0 }
 0x3ab   : > { %v9510_v61 = vadd.f32 %v5039_v39, %v12944_v60  ;;  %v5041_v37 = vpop.f32.mrb[98].mxu0 }
 0x3ac   : > { %v5263_v8 = vpop.f32.mrb[96].mxu1  ;;  %v6700_v16 = vmul.f32 %v9509_v58, %v11663_v48  ;;  %v9511_v15 = vadd.f32 %v5041_v37, %v12940_v32  ;;  %v5043_v35 = vpop.f32.mrb[99].mxu0 }
 0x3ad   : > { %v9541_v53 = vadd.f32 %v5263_v8, %v12948_v63  ;;  %v5265_v54 = vpop.f32.mrb[97].mxu1  ;;  %v9111_v11 = vpack.c.bf16 %v9510_v61, %v9509_v58  ;;  %v6701_v17 = vmul.f32 %v9510_v61, %v11663_v48  ;;  %v9512_v49 = vadd.f32 %v5043_v35, %v12944_v60 }
 0x3ae   : > { %v9542_v13 = vadd.f32 %v5265_v54, %v12952_v27  ;;  %v5267_v21 = vpop.f32.mrb[98].mxu1  ;;  %v6956_v19 = vmax.f32 %v6700_v16, 0.0  ;;  %v6716_v50 = vmul.f32 %v9511_v15, %v11663_v48 }
 0x3af   : > { %v6702_v18 = vmul.f32 %v9541_v53, %v11663_v48  ;;  %v9543_v6 = vadd.f32 %v5267_v21, %v12948_v63  ;;  %v5269_v10 = vpop.f32.mrb[99].mxu1  ;;  %6566 = vst [vmem:[%s11718_s16 + $0x20] sm:$0xff] %v9111_v11  ;;  %v6957_v42 = vmax.f32 %v6701_v17, 0.0  ;;  %v9119_v29 = vpack.c.bf16 %v9512_v49, %v9511_v15 }
 0x3b0   : > { %v9112_v46 = vpack.c.bf16 %v9542_v13, %v9541_v53  ;;  %v6703_v24 = vmul.f32 %v9542_v13, %v11663_v48  ;;  %v6972_v5 = vmax.f32 %v6716_v50, 0.0  ;;  %v6717_v9 = vmul.f32 %v9512_v49, %v11663_v48 }
 0x3b1   : > { %v6958_v36 = vmax.f32 %v6702_v18, 0.0  ;;  %v6718_v51 = vmul.f32 %v9543_v6, %v11663_v48  ;;  %v9239_v40 = vpack.c.bf16 %v6957_v42, %v6956_v19  ;;  %6574 = vst [vmem:[%s11718_s16 + $0x60] sm:$0xff] %v9119_v29  ;;  %v9544_v23 = vadd.f32 %v5269_v10, %v12952_v27 }
 0x3b2   : > { %6567 = vst [vmem:[%s11718_s16 + $0x28] sm:$0xff] %v9112_v46  ;;  %v6959_v14 = vmax.f32 %v6703_v24, 0.0  ;;  %v6973_v1 = vmax.f32 %v6717_v9, 0.0 }
 0x3b3   : > { %v5047_v26 = vpop.f32.mrb[100].mxu0  ;;  %v6974_v0 = vmax.f32 %v6718_v51, 0.0  ;;  %7976 = vst [vmem:[%s11754_s4 + $0x20] sm:$0xff] %v9239_v40  ;;  %v9120_v55 = vpack.c.bf16 %v9544_v23, %v9543_v6  ;;  %v6719_v43 = vmul.f32 %v9544_v23, %v11663_v48 }
 0x3b4   : > { %v9513_v33 = vadd.f32 %v5047_v26, %v12940_v32  ;;  %v5049_v41 = vpop.f32.mrb[101].mxu0  ;;  %v9240_v31 = vpack.c.bf16 %v6959_v14, %v6958_v36  ;;  %v9247_v57 = vpack.c.bf16 %v6973_v1, %v6972_v5 }
 0x3b5   : > { %v9514_v30 = vadd.f32 %v5049_v41, %v12944_v60  ;;  %v5051_v2 = vpop.f32.mrb[102].mxu0  ;;  %6575 = vst [vmem:[%s11718_s16 + $0x68] sm:$0xff] %v9120_v55  ;;  %v6975_v7 = vmax.f32 %v6719_v43, 0.0 }
 0x3b6   : > { %v5273_v12 = vpop.f32.mrb[100].mxu1  ;;  %v6732_v28 = vmul.f32 %v9513_v33, %v11663_v48  ;;  %v9515_v59 = vadd.f32 %v5051_v2, %v12940_v32  ;;  %v5053_v52 = vpop.f32.mrb[103].mxu0  ;;  %7977 = vst [vmem:[%s11754_s4 + $0x28] sm:$0xff] %v9240_v31  ;;  %7984 = vst [vmem:[%s11754_s4 + $0x60] sm:$0xff] %v9247_v57 }
 0x3b7   : > { %v9545_v62 = vadd.f32 %v5273_v12, %v12948_v63  ;;  %v5275_v38 = vpop.f32.mrb[101].mxu1  ;;  %v9127_v34 = vpack.c.bf16 %v9514_v30, %v9513_v33  ;;  %v6733_v22 = vmul.f32 %v9514_v30, %v11663_v48  ;;  %v9248_v58 = vpack.c.bf16 %v6975_v7, %v6974_v0 }
 0x3b8   : > { %v9546_v25 = vadd.f32 %v5275_v38, %v12952_v27  ;;  %v5277_v3 = vpop.f32.mrb[102].mxu1  ;;  %v6988_v4 = vmax.f32 %v6732_v28, 0.0  ;;  %v6748_v47 = vmul.f32 %v9515_v59, %v11663_v48  ;;  %v9516_v53 = vadd.f32 %v5053_v52, %v12944_v60 }
 0x3b9   : > { %v6734_v45 = vmul.f32 %v9545_v62, %v11663_v48  ;;  %v9547_v44 = vadd.f32 %v5277_v3, %v12948_v63  ;;  %v5279_v56 = vpop.f32.mrb[103].mxu1  ;;  %6582 = vst [vmem:[%s11718_s16 + $0xa0] sm:$0xff] %v9127_v34  ;;  %v6989_v39 = vmax.f32 %v6733_v22, 0.0  ;;  %7985 = vst [vmem:[%s11754_s4 + $0x68] sm:$0xff] %v9248_v58 }
 0x3ba   : > { %v9128_v8 = vpack.c.bf16 %v9546_v25, %v9545_v62  ;;  %v6735_v61 = vmul.f32 %v9546_v25, %v11663_v48  ;;  %v9548_v35 = vadd.f32 %v5279_v56, %v12952_v27  ;;  %v7004_v11 = vmax.f32 %v6748_v47, 0.0 }
 0x3bb   : > { %v6990_v37 = vmax.f32 %v6734_v45, 0.0  ;;  %v6750_v16 = vmul.f32 %v9547_v44, %v11663_v48  ;;  %v9255_v54 = vpack.c.bf16 %v6989_v39, %v6988_v4  ;;  %v9135_v13 = vpack.c.bf16 %v9516_v53, %v9515_v59 }
 0x3bc   : > { %6583 = vst [vmem:[%s11718_s16 + $0xa8] sm:$0xff] %v9128_v8  ;;  %v6991_v15 = vmax.f32 %v6735_v61, 0.0  ;;  %v6749_v21 = vmul.f32 %v9516_v53, %v11663_v48  ;;  %v5057_v49 = vpop.f32.mrb[104].mxu0  ;;  %v9136_v18 = vpack.c.bf16 %v9548_v35, %v9547_v44  ;;  %v6751_v50 = vmul.f32 %v9548_v35, %v11663_v48 }
 0x3bd   : > { %v7006_v17 = vmax.f32 %v6750_v16, 0.0  ;;  %7992 = vst [vmem:[%s11754_s4 + $0xa0] sm:$0xff] %v9255_v54  ;;  %v9517_v6 = vadd.f32 %v5057_v49, %v12940_v32  ;;  %v5059_v42 = vpop.f32.mrb[105].mxu0  ;;  %6590 = vst [vmem:[%s11718_s16 + $0xe0] sm:$0xff] %v9135_v13 }
 0x3be   : > { %v9256_v19 = vpack.c.bf16 %v6991_v15, %v6990_v37  ;;  %v7005_v46 = vmax.f32 %v6749_v21, 0.0  ;;  %v9518_v29 = vadd.f32 %v5059_v42, %v12944_v60  ;;  %v5061_v5 = vpop.f32.mrb[106].mxu0  ;;  %6591 = vst [vmem:[%s11718_s16 + $0xe8] sm:$0xff] %v9136_v18  ;;  %v7007_v51 = vmax.f32 %v6751_v50, 0.0 }
 0x3bf   : > { %v6764_v9 = vmul.f32 %v9517_v6, %v11663_v48  ;;  %v9519_v14 = vadd.f32 %v5061_v5, %v12940_v32  ;;  %v5063_v26 = vpop.f32.mrb[107].mxu0 }
 0x3c0   : > { %v5283_v10 = vpop.f32.mrb[104].mxu1  ;;  %7993 = vst [vmem:[%s11754_s4 + $0xa8] sm:$0xff] %v9256_v19  ;;  %v9263_v0 = vpack.c.bf16 %v7005_v46, %v7004_v11  ;;  %v9143_v33 = vpack.c.bf16 %v9518_v29, %v9517_v6  ;;  %v6765_v41 = vmul.f32 %v9518_v29, %v11663_v48  ;;  %v9264_v55 = vpack.c.bf16 %v7007_v51, %v7006_v17 }
 0x3c1   : > { %v9549_v24 = vadd.f32 %v5283_v10, %v12948_v63  ;;  %v5285_v36 = vpop.f32.mrb[105].mxu1  ;;  %v7020_v43 = vmax.f32 %v6764_v9, 0.0  ;;  %v6780_v28 = vmul.f32 %v9519_v14, %v11663_v48  ;;  %v9520_v59 = vadd.f32 %v5063_v26, %v12944_v60 }
 0x3c2   : > { %v9550_v40 = vadd.f32 %v5285_v36, %v12952_v27  ;;  %v5287_v23 = vpop.f32.mrb[106].mxu1  ;;  %8000 = vst [vmem:[%s11754_s4 + $0xe0] sm:$0xff] %v9263_v0  ;;  %6598 = vst [vmem:[%s11718_s16 + $0x120] sm:$0xff] %v9143_v33  ;;  %v7021_v57 = vmax.f32 %v6765_v41, 0.0 }
 0x3c3   : > { %v6766_v1 = vmul.f32 %v9549_v24, %v11663_v48  ;;  %v5289_v31 = vpop.f32.mrb[107].mxu1  ;;  %v9551_v62 = vadd.f32 %v5287_v23, %v12948_v63  ;;  %8001 = vst [vmem:[%s11754_s4 + $0xe8] sm:$0xff] %v9264_v55  ;;  %v7036_v34 = vmax.f32 %v6780_v28, 0.0  ;;  %v9151_v4 = vpack.c.bf16 %v9520_v59, %v9519_v14 }
 0x3c4   : > { %v9144_v12 = vpack.c.bf16 %v9550_v40, %v9549_v24  ;;  %v6767_v30 = vmul.f32 %v9550_v40, %v11663_v48  ;;  %v9552_v52 = vadd.f32 %v5289_v31, %v12952_v27  ;;  %v9271_v7 = vpack.c.bf16 %v7021_v57, %v7020_v43 }
 0x3c5   : > { %v7022_v2 = vmax.f32 %v6766_v1, 0.0  ;;  %v6782_v22 = vmul.f32 %v9551_v62, %v11663_v48  ;;  %v5067_v25 = vpop.f32.mrb[108].mxu0  ;;  %v6781_v45 = vmul.f32 %v9520_v59, %v11663_v48  ;;  %6606 = vst [vmem:[%s11718_s16 + $0x160] sm:$0xff] %v9151_v4 }
 0x3c6   : > { %6599 = vst [vmem:[%s11718_s16 + $0x128] sm:$0xff] %v9144_v12  ;;  %v7023_v38 = vmax.f32 %v6767_v30, 0.0  ;;  %v9152_v47 = vpack.c.bf16 %v9552_v52, %v9551_v62  ;;  %v5069_v56 = vpop.f32.mrb[109].mxu0  ;;  %8008 = vst [vmem:[%s11754_s4 + $0x120] sm:$0xff] %v9271_v7  ;;  %v6783_v39 = vmul.f32 %v9552_v52, %v11663_v48  ;;  %v9521_v8 = vadd.f32 %v5067_v25, %v12940_v32 }
 0x3c7   : > { %v7038_v58 = vmax.f32 %v6782_v22, 0.0  ;;  %v5071_v16 = vpop.f32.mrb[110].mxu0  ;;  %v7037_v53 = vmax.f32 %v6781_v45, 0.0  ;;  %v9522_v54 = vadd.f32 %v5069_v56, %v12944_v60 }
 0x3c8   : > { %v9272_v3 = vpack.c.bf16 %v7023_v38, %v7022_v2  ;;  %v5293_v44 = vpop.f32.mrb[108].mxu1  ;;  %6607 = vst [vmem:[%s11718_s16 + $0x168] sm:$0xff] %v9152_v47  ;;  %v9523_v35 = vadd.f32 %v5071_v16, %v12940_v32  ;;  %v5073_v17 = vpop.f32.mrb[111].mxu0  ;;  %v7039_v13 = vmax.f32 %v6783_v39, 0.0  ;;  %v6796_v21 = vmul.f32 %v9521_v8, %v11663_v48 }
 0x3c9   : > { %v9553_v61 = vadd.f32 %v5293_v44, %v12948_v63  ;;  %v5295_v37 = vpop.f32.mrb[109].mxu1  ;;  %v9279_v50 = vpack.c.bf16 %v7037_v53, %v7036_v34  ;;  %v9159_v6 = vpack.c.bf16 %v9522_v54, %v9521_v8  ;;  %v6797_v10 = vmul.f32 %v9522_v54, %v11663_v48 }
 0x3ca   : > { %8009 = vst [vmem:[%s11754_s4 + $0x128] sm:$0xff] %v9272_v3  ;;  %v9554_v15 = vadd.f32 %v5295_v37, %v12952_v27  ;;  %v5297_v11 = vpop.f32.mrb[110].mxu1  ;;  %v9280_v46 = vpack.c.bf16 %v7039_v13, %v7038_v58  ;;  %v7052_v24 = vmax.f32 %v6796_v21, 0.0  ;;  %v6812_v51 = vmul.f32 %v9523_v35, %v11663_v48 }
 0x3cb   : > { %v6798_v49 = vmul.f32 %v9553_v61, %v11663_v48  ;;  %v9555_v19 = vadd.f32 %v5297_v11, %v12948_v63  ;;  %v5299_v18 = vpop.f32.mrb[111].mxu1  ;;  %8016 = vst [vmem:[%s11754_s4 + $0x160] sm:$0xff] %v9279_v50  ;;  %6614 = vst [vmem:[%s11718_s16 + $0x1a0] sm:$0xff] %v9159_v6  ;;  %v7053_v5 = vmax.f32 %v6797_v10, 0.0  ;;  %v9524_v40 = vadd.f32 %v5073_v17, %v12944_v60 }
 0x3cc   : > { %v9160_v42 = vpack.c.bf16 %v9554_v15, %v9553_v61  ;;  %v6799_v36 = vmul.f32 %v9554_v15, %v11663_v48  ;;  %8017 = vst [vmem:[%s11754_s4 + $0x168] sm:$0xff] %v9280_v46  ;;  %v9556_v23 = vadd.f32 %v5299_v18, %v12952_v27  ;;  %v7068_v1 = vmax.f32 %v6812_v51, 0.0 }
 0x3cd   : > { %v7054_v29 = vmax.f32 %v6798_v49, 0.0  ;;  %v6814_v9 = vmul.f32 %v9555_v19, %v11663_v48  ;;  %v5077_v26 = vpop.f32.mrb[112].mxu0  ;;  %v9287_v0 = vpack.c.bf16 %v7053_v5, %v7052_v24  ;;  %v9167_v41 = vpack.c.bf16 %v9524_v40, %v9523_v35 }
 0x3ce   : > { %6615 = vst [vmem:[%s11718_s16 + $0x1a8] sm:$0xff] %v9160_v42  ;;  %v7055_v14 = vmax.f32 %v6799_v36, 0.0  ;;  %v5079_v55 = vpop.f32.mrb[113].mxu0  ;;  %v6813_v12 = vmul.f32 %v9524_v40, %v11663_v48  ;;  %v9168_v30 = vpack.c.bf16 %v9556_v23, %v9555_v19  ;;  %v6815_v2 = vmul.f32 %v9556_v23, %v11663_v48 }
 0x3cf   : > { %v7070_v33 = vmax.f32 %v6814_v9, 0.0  ;;  %v5081_v28 = vpop.f32.mrb[114].mxu0  ;;  %8024 = vst [vmem:[%s11754_s4 + $0x1a0] sm:$0xff] %v9287_v0  ;;  %6622 = vst [vmem:[%s11718_s16 + $0x1e0] sm:$0xff] %v9167_v41  ;;  %v9525_v62 = vadd.f32 %v5077_v26, %v12940_v32  ;;  %v9526_v59 = vadd.f32 %v5079_v55, %v12944_v60 }
 0x3d0   : > { %v5303_v31 = vpop.f32.mrb[112].mxu1  ;;  %v9288_v43 = vpack.c.bf16 %v7055_v14, %v7054_v29  ;;  %v5083_v34 = vpop.f32.mrb[115].mxu0  ;;  %v7069_v22 = vmax.f32 %v6813_v12, 0.0  ;;  %6623 = vst [vmem:[%s11718_s16 + $0x1e8] sm:$0xff] %v9168_v30  ;;  %v7071_v25 = vmax.f32 %v6815_v2, 0.0  ;;  %v9527_v3 = vadd.f32 %v5081_v28, %v12940_v32 }
 0x3d1   : > { %v5305_v57 = vpop.f32.mrb[113].mxu1  ;;  %v9557_v38 = vadd.f32 %v5303_v31, %v12948_v63  ;;  %v6828_v47 = vmul.f32 %v9525_v62, %v11663_v48  ;;  %v9175_v56 = vpack.c.bf16 %v9526_v59, %v9525_v62  ;;  %v6829_v58 = vmul.f32 %v9526_v59, %v11663_v48 }
 0x3d2   : > { %v9558_v52 = vadd.f32 %v5305_v57, %v12952_v27  ;;  %v5307_v7 = vpop.f32.mrb[114].mxu1  ;;  %8025 = vst [vmem:[%s11754_s4 + $0x1a8] sm:$0xff] %v9288_v43  ;;  %v9295_v39 = vpack.c.bf16 %v7069_v22, %v7068_v1  ;;  %v9296_v8 = vpack.c.bf16 %v7071_v25, %v7070_v33  ;;  %v6844_v15 = vmul.f32 %v9527_v3, %v11663_v48 }
 0x3d3   : > { %v9559_v4 = vadd.f32 %v5307_v7, %v12948_v63  ;;  %v5309_v45 = vpop.f32.mrb[115].mxu1  ;;  %v6830_v44 = vmul.f32 %v9557_v38, %v11663_v48  ;;  %v7084_v16 = vmax.f32 %v6828_v47, 0.0  ;;  %6630 = vst [vmem:[%s11718_s16 + $0x220] sm:$0xff] %v9175_v56  ;;  %v7085_v54 = vmax.f32 %v6829_v58, 0.0 }
 0x3d4   : > { %v9176_v61 = vpack.c.bf16 %v9558_v52, %v9557_v38  ;;  %v6831_v37 = vmul.f32 %v9558_v52, %v11663_v48  ;;  %8032 = vst [vmem:[%s11754_s4 + $0x1e0] sm:$0xff] %v9295_v39  ;;  %8033 = vst [vmem:[%s11754_s4 + $0x1e8] sm:$0xff] %v9296_v8  ;;  %v9528_v17 = vadd.f32 %v5083_v34, %v12944_v60  ;;  %v7100_v19 = vmax.f32 %v6844_v15, 0.0 }
 0x3d5   : > { %v7086_v53 = vmax.f32 %v6830_v44, 0.0  ;;  %v6846_v11 = vmul.f32 %v9559_v4, %v11663_v48  ;;  %v9560_v13 = vadd.f32 %v5309_v45, %v12952_v27  ;;  %v5087_v21 = vpop.f32.mrb[116].mxu0  ;;  %v9303_v49 = vpack.c.bf16 %v7085_v54, %v7084_v16 }
 0x3d6   : > { %6631 = vst [vmem:[%s11718_s16 + $0x228] sm:$0xff] %v9176_v61  ;;  %v7087_v35 = vmax.f32 %v6831_v37, 0.0  ;;  %v9529_v18 = vadd.f32 %v5087_v21, %v12940_v32  ;;  %v5089_v6 = vpop.f32.mrb[117].mxu0  ;;  %v9183_v46 = vpack.c.bf16 %v9528_v17, %v9527_v3  ;;  %v6845_v24 = vmul.f32 %v9528_v17, %v11663_v48 }
 0x3d7   : > { %v7102_v42 = vmax.f32 %v6846_v11, 0.0  ;;  %v5091_v36 = vpop.f32.mrb[118].mxu0  ;;  %8040 = vst [vmem:[%s11754_s4 + $0x220] sm:$0xff] %v9303_v49  ;;  %v9184_v5 = vpack.c.bf16 %v9560_v13, %v9559_v4  ;;  %v6847_v51 = vmul.f32 %v9560_v13, %v11663_v48  ;;  %v9530_v0 = vadd.f32 %v5089_v6, %v12944_v60 }
 0x3d8   : > { %v5313_v50 = vpop.f32.mrb[116].mxu1  ;;  %v9304_v10 = vpack.c.bf16 %v7087_v35, %v7086_v53  ;;  %v6860_v9 = vmul.f32 %v9529_v18, %v11663_v48  ;;  %v5093_v23 = vpop.f32.mrb[119].mxu0  ;;  %6638 = vst [vmem:[%s11718_s16 + $0x260] sm:$0xff] %v9183_v46  ;;  %v7101_v26 = vmax.f32 %v6845_v24, 0.0  ;;  %v9531_v33 = vadd.f32 %v5091_v36, %v12940_v32 }
 0x3d9   : > { %v5315_v29 = vpop.f32.mrb[117].mxu1  ;;  %v9561_v40 = vadd.f32 %v5313_v50, %v12948_v63  ;;  %6639 = vst [vmem:[%s11718_s16 + $0x268] sm:$0xff] %v9184_v5  ;;  %v7103_v31 = vmax.f32 %v6847_v51, 0.0  ;;  %v9191_v2 = vpack.c.bf16 %v9530_v0, %v9529_v18  ;;  %v6861_v57 = vmul.f32 %v9530_v0, %v11663_v48 }
 0x3da   : > { %v5317_v14 = vpop.f32.mrb[118].mxu1  ;;  %8041 = vst [vmem:[%s11754_s4 + $0x228] sm:$0xff] %v9304_v10  ;;  %v9562_v1 = vadd.f32 %v5315_v29, %v12952_v27  ;;  %v7116_v55 = vmax.f32 %v6860_v9, 0.0  ;;  %v9311_v30 = vpack.c.bf16 %v7101_v26, %v7100_v19  ;;  %v6876_v52 = vmul.f32 %v9531_v33, %v11663_v48 }
 0x3db   : > { %v5319_v41 = vpop.f32.mrb[119].mxu1  ;;  %v6862_v43 = vmul.f32 %v9561_v40, %v11663_v48  ;;  %v9563_v12 = vadd.f32 %v5317_v14, %v12948_v63  ;;  %v9312_v62 = vpack.c.bf16 %v7103_v31, %v7102_v42  ;;  %6646 = vst [vmem:[%s11718_s16 + $0x2a0] sm:$0xff] %v9191_v2  ;;  %v7117_v7 = vmax.f32 %v6861_v57, 0.0 }
 0x3dc   : > { %v9192_v28 = vpack.c.bf16 %v9562_v1, %v9561_v40  ;;  %v6863_v59 = vmul.f32 %v9562_v1, %v11663_v48  ;;  %8048 = vst [vmem:[%s11754_s4 + $0x260] sm:$0xff] %v9311_v30  ;;  %v9532_v22 = vadd.f32 %v5093_v23, %v12944_v60  ;;  %v9564_v25 = vadd.f32 %v5319_v41, %v12952_v27 }
 0x3dd   : > { %v7118_v38 = vmax.f32 %v6862_v43, 0.0  ;;  %v6878_v34 = vmul.f32 %v9563_v12, %v11663_v48  ;;  %v5097_v3 = vpop.f32.mrb[120].mxu0  ;;  %8049 = vst [vmem:[%s11754_s4 + $0x268] sm:$0xff] %v9312_v62  ;;  %v7132_v45 = vmax.f32 %v6876_v52, 0.0  ;;  %v9319_v58 = vpack.c.bf16 %v7117_v7, %v7116_v55 }
 0x3de   : > { %6647 = vst [vmem:[%s11718_s16 + $0x2a8] sm:$0xff] %v9192_v28  ;;  %v7119_v4 = vmax.f32 %v6863_v59, 0.0  ;;  %v9533_v47 = vadd.f32 %v5097_v3, %v12940_v32  ;;  %v5099_v56 = vpop.f32.mrb[121].mxu0  ;;  %v9199_v8 = vpack.c.bf16 %v9532_v22, %v9531_v33  ;;  %v6877_v61 = vmul.f32 %v9532_v22, %v11663_v48 }
 0x3df   : > { %v7134_v39 = vmax.f32 %v6878_v34, 0.0  ;;  %v5101_v16 = vpop.f32.mrb[122].mxu0  ;;  %v9200_v54 = vpack.c.bf16 %v9564_v25, %v9563_v12  ;;  %v6879_v15 = vmul.f32 %v9564_v25, %v11663_v48  ;;  %8056 = vst [vmem:[%s11754_s4 + $0x2a0] sm:$0xff] %v9319_v58  ;;  %v9534_v49 = vadd.f32 %v5099_v56, %v12944_v60 }
 0x3e0   : > { %v5323_v44 = vpop.f32.mrb[120].mxu1  ;;  %v9320_v53 = vpack.c.bf16 %v7119_v4, %v7118_v38  ;;  %v6892_v35 = vmul.f32 %v9533_v47, %v11663_v48  ;;  %v5103_v17 = vpop.f32.mrb[123].mxu0  ;;  %6654 = vst [vmem:[%s11718_s16 + $0x2e0] sm:$0xff] %v9199_v8  ;;  %v7133_v13 = vmax.f32 %v6877_v61, 0.0  ;;  %v9535_v10 = vadd.f32 %v5101_v16, %v12940_v32 }
 0x3e1   : > { %v5325_v37 = vpop.f32.mrb[121].mxu1  ;;  %v9565_v21 = vadd.f32 %v5323_v44, %v12948_v63  ;;  %6655 = vst [vmem:[%s11718_s16 + $0x2e8] sm:$0xff] %v9200_v54  ;;  %v7135_v50 = vmax.f32 %v6879_v15, 0.0  ;;  %v9207_v29 = vpack.c.bf16 %v9534_v49, %v9533_v47  ;;  %v6893_v36 = vmul.f32 %v9534_v49, %v11663_v48 }
 0x3e2   : > { %v5327_v11 = vpop.f32.mrb[122].mxu1  ;;  %v9566_v19 = vadd.f32 %v5325_v37, %v12952_v27  ;;  %8057 = vst [vmem:[%s11754_s4 + $0x2a8] sm:$0xff] %v9320_v53  ;;  %v7148_v6 = vmax.f32 %v6892_v35, 0.0  ;;  %v9327_v46 = vpack.c.bf16 %v7133_v13, %v7132_v45  ;;  %v6908_v40 = vmul.f32 %v9535_v10, %v11663_v48 }
 0x3e3   : > { %v5329_v18 = vpop.f32.mrb[123].mxu1  ;;  %v9567_v42 = vadd.f32 %v5327_v11, %v12948_v63  ;;  %v6894_v24 = vmul.f32 %v9565_v21, %v11663_v48  ;;  %v9328_v5 = vpack.c.bf16 %v7135_v50, %v7134_v39  ;;  %6662 = vst [vmem:[%s11718_s16 + $0x320] sm:$0xff] %v9207_v29  ;;  %v7149_v23 = vmax.f32 %v6893_v36, 0.0 }
 0x3e4   : > { %v9208_v51 = vpack.c.bf16 %v9566_v19, %v9565_v21  ;;  %v6895_v9 = vmul.f32 %v9566_v19, %v11663_v48  ;;  %8064 = vst [vmem:[%s11754_s4 + $0x2e0] sm:$0xff] %v9327_v46  ;;  %v9536_v0 = vadd.f32 %v5103_v17, %v12944_v60  ;;  %v7164_v41 = vmax.f32 %v6908_v40, 0.0 }
 0x3e5   : > { %v7150_v14 = vmax.f32 %v6894_v24, 0.0  ;;  %v6910_v26 = vmul.f32 %v9567_v42, %v11663_v48  ;;  %v5107_v1 = vpop.f32.mrb[124].mxu0  ;;  %8065 = vst [vmem:[%s11754_s4 + $0x2e8] sm:$0xff] %v9328_v5  ;;  %v9568_v31 = vadd.f32 %v5329_v18, %v12952_v27  ;;  %v9335_v30 = vpack.c.bf16 %v7149_v23, %v7148_v6  ;;  %v13878_v5 = vld [vmem:[#allocation22_spill] sm:$0xff] }
 0x3e6   : > { %6663 = vst [vmem:[%s11718_s16 + $0x328] sm:$0xff] %v9208_v51  ;;  %v7151_v33 = vmax.f32 %v6895_v9, 0.0  ;;  %v9537_v55 = vadd.f32 %v5107_v1, %v12940_v32  ;;  %v5109_v12 = vpop.f32.mrb[125].mxu0  ;;  %v9215_v57 = vpack.c.bf16 %v9536_v0, %v9535_v10  ;;  %v6909_v28 = vmul.f32 %v9536_v0, %v11663_v48 }
 0x3e7   : > { %v7166_v2 = vmax.f32 %v6910_v26, 0.0  ;;  %v5111_v38 = vpop.f32.mrb[126].mxu0  ;;  %v9216_v52 = vpack.c.bf16 %v9568_v31, %v9567_v42  ;;  %v6911_v7 = vmul.f32 %v9568_v31, %v11663_v48  ;;  %8072 = vst [vmem:[%s11754_s4 + $0x320] sm:$0xff] %v9335_v30  ;;  %v9538_v45 = vadd.f32 %v5109_v12, %v12944_v60 }
 0x3e8   : > { %v5333_v43 = vpop.f32.mrb[124].mxu1  ;;  %v9336_v59 = vpack.c.bf16 %v7151_v33, %v7150_v14  ;;  %v6924_v34 = vmul.f32 %v9537_v55, %v11663_v48  ;;  %v5113_v25 = vpop.f32.mrb[127].mxu0  ;;  %6670 = vst [vmem:[%s11718_s16 + $0x360] sm:$0xff] %v9215_v57  ;;  %v7165_v3 = vmax.f32 %v6909_v28, 0.0  ;;  %v9539_v39 = vadd.f32 %v5111_v38, %v12940_v32 }
 0x3e9   : > { %v5335_v62 = vpop.f32.mrb[125].mxu1  ;;  %v9569_v4 = vadd.f32 %v5333_v43, %v12948_v63  ;;  %6671 = vst [vmem:[%s11718_s16 + $0x368] sm:$0xff] %v9216_v52  ;;  %v7167_v56 = vmax.f32 %v6911_v7, 0.0  ;;  %v9223_v16 = vpack.c.bf16 %v9538_v45, %v9537_v55  ;;  %v6925_v53 = vmul.f32 %v9538_v45, %v11663_v48 }
 0x3ea   : > { %v5337_v22 = vpop.f32.mrb[126].mxu1  ;;  %v9570_v47 = vadd.f32 %v5335_v62, %v12952_v27  ;;  %8073 = vst [vmem:[%s11754_s4 + $0x328] sm:$0xff] %v9336_v59  ;;  %v7180_v58 = vmax.f32 %v6924_v34, 0.0  ;;  %v9343_v61 = vpack.c.bf16 %v7165_v3, %v7164_v41  ;;  %v6940_v11 = vmul.f32 %v9539_v39, %v11663_v48 }
 0x3eb   : > { %v5339_v44 = vpop.f32.mrb[127].mxu1  ;;  %v9571_v8 = vadd.f32 %v5337_v22, %v12948_v63  ;;  %v6926_v37 = vmul.f32 %v9569_v4, %v11663_v48  ;;  %v9344_v54 = vpack.c.bf16 %v7167_v56, %v7166_v2  ;;  %6678 = vst [vmem:[%s11718_s16 + $0x3a0] sm:$0xff] %v9223_v16  ;;  %v7181_v32 = vmax.f32 %v6925_v53, 0.0 }
 0x3ec   : > { %v9224_v15 = vpack.c.bf16 %v9570_v47, %v9569_v4  ;;  %v6927_v35 = vmul.f32 %v9570_v47, %v11663_v48  ;;  %8080 = vst [vmem:[%s11754_s4 + $0x360] sm:$0xff] %v9343_v61  ;;  %v9540_v13 = vadd.f32 %v5113_v25, %v12944_v60  ;;  %v9572_v49 = vadd.f32 %v5339_v44, %v12952_v27 }
 0x3ed   : > { %v7182_v17 = vmax.f32 %v6926_v37, 0.0  ;;  %v6942_v63 = vmul.f32 %v9571_v8, %v11663_v48  ;;  %8081 = vst [vmem:[%s11754_s4 + $0x368] sm:$0xff] %v9344_v54  ;;  %v9351_v19 = vpack.c.bf16 %v7181_v32, %v7180_v58  ;;  %v7196_v18 = vmax.f32 %v6940_v11, 0.0 }
 0x3ee   : > { %6679 = vst [vmem:[%s11718_s16 + $0x3a8] sm:$0xff] %v9224_v15  ;;  %v7183_v21 = vmax.f32 %v6927_v35, 0.0  ;;  %v9231_v50 = vpack.c.bf16 %v9540_v13, %v9539_v39  ;;  %v6941_v6 = vmul.f32 %v9540_v13, %v11663_v48  ;;  %v9232_v46 = vpack.c.bf16 %v9572_v49, %v9571_v8 }
 0x3ef   : > { %v7198_v42 = vmax.f32 %v6942_v63, 0.0  ;;  %v6943_v24 = vmul.f32 %v9572_v49, %v11663_v48  ;;  %8088 = vst [vmem:[%s11754_s4 + $0x3a0] sm:$0xff] %v9351_v19  ;;  %v13879_v51 = vsub.s32 4, %v13878_v5  ;;  %v13880_v40 = vsub.s32 6, %v13878_v5 }
 0x3f0   : > { %v9352_v10 = vpack.c.bf16 %v7183_v21, %v7182_v17  ;;  %6686 = vst [vmem:[%s11718_s16 + $0x3e0] sm:$0xff] %v9231_v50  ;;  %v7197_v60 = vmax.f32 %v6941_v6, 0.0  ;;  %6687 = vst [vmem:[%s11718_s16 + $0x3e8] sm:$0xff] %v9232_v46  ;;  %v13881_v23 = vsub.s32 5, %v13878_v5  ;;  %v13882_v0 = vsub.s32 7, %v13878_v5 }
 0x3f1   : > { %v7199_v29 = vmax.f32 %v6943_v24, 0.0  ;;  %v13149_v9 = vrot.slane %v12936_v20, %v13879_v51  ;;  %v13154_v14 = vrot.slane %v12936_v20, %v13880_v40 }
 0x3f2   : > { %8089 = vst [vmem:[%s11754_s4 + $0x3a8] sm:$0xff] %v9352_v10  ;;  %v9359_v36 = vpack.c.bf16 %v7197_v60, %v7196_v18  ;;  %v13159_v26 = vrot.slane %v12936_v20, %v13881_v23  ;;  %v13164_v1 = vrot.slane %v12936_v20, %v13882_v0 }
 0x3f3   : > { %v9360_v27 = vpack.c.bf16 %v7199_v29, %v7198_v42 }
 0x3f4   : > { %8096 = vst [vmem:[%s11754_s4 + $0x3e0] sm:$0xff] %v9359_v36 }
 0x3f5   : > { %8097 = vst [vmem:[%s11754_s4 + $0x3e8] sm:$0xff] %v9360_v27 }
 0x43c   : > { %v5489_v33 = vpop.f32.mrb[128].mxu0  ;;  %v5715_v31 = vpop.f32.mrb[128].mxu1 }
 0x43d   : > { %v9573_v41 = vadd.f32 %v5489_v33, %v13149_v9  ;;  %v5491_v55 = vpop.f32.mrb[129].mxu0  ;;  %v9605_v43 = vadd.f32 %v5715_v31, %v13154_v14  ;;  %v5717_v30 = vpop.f32.mrb[129].mxu1 }
 0x43e   : > { %v9574_v12 = vadd.f32 %v5491_v55, %v13159_v26  ;;  %v5493_v2 = vpop.f32.mrb[130].mxu0  ;;  %v9606_v28 = vadd.f32 %v5717_v30, %v13164_v1  ;;  %v5719_v20 = vpop.f32.mrb[130].mxu1 }
 0x43f   : > { %v6704_v57 = vmul.f32 %v9573_v41, %v11663_v48  ;;  %v9575_v62 = vadd.f32 %v5493_v2, %v13149_v9  ;;  %v5495_v38 = vpop.f32.mrb[131].mxu0  ;;  %v6706_v59 = vmul.f32 %v9605_v43, %v11663_v48  ;;  %v9607_v34 = vadd.f32 %v5719_v20, %v13154_v14  ;;  %v5721_v22 = vpop.f32.mrb[131].mxu1 }
 0x440   : > { %v9113_v52 = vpack.c.bf16 %v9574_v12, %v9573_v41  ;;  %v6705_v7 = vmul.f32 %v9574_v12, %v11663_v48  ;;  %v9114_v3 = vpack.c.bf16 %v9606_v28, %v9605_v43  ;;  %v6707_v4 = vmul.f32 %v9606_v28, %v11663_v48 }
 0x441   : > { %v6960_v25 = vmax.f32 %v6704_v57, 0.0  ;;  %v6720_v45 = vmul.f32 %v9575_v62, %v11663_v48  ;;  %v6962_v47 = vmax.f32 %v6706_v59, 0.0  ;;  %v6722_v56 = vmul.f32 %v9607_v34, %v11663_v48 }
 0x442   : > { %6568 = vst [vmem:[%s11718_s16 + $0x30] sm:$0xff] %v9113_v52  ;;  %v6961_v44 = vmax.f32 %v6705_v7, 0.0  ;;  %v9576_v58 = vadd.f32 %v5495_v38, %v13159_v26  ;;  %6569 = vst [vmem:[%s11718_s16 + $0x38] sm:$0xff] %v9114_v3  ;;  %v6963_v39 = vmax.f32 %v6707_v4, 0.0  ;;  %v9608_v61 = vadd.f32 %v5721_v22, %v13164_v1 }
 0x443   : > { %v6976_v8 = vmax.f32 %v6720_v45, 0.0  ;;  %v6978_v16 = vmax.f32 %v6722_v56, 0.0 }
 0x444   : > { %v9241_v37 = vpack.c.bf16 %v6961_v44, %v6960_v25  ;;  %v9121_v53 = vpack.c.bf16 %v9576_v58, %v9575_v62  ;;  %v6721_v54 = vmul.f32 %v9576_v58, %v11663_v48  ;;  %v5499_v15 = vpop.f32.mrb[132].mxu0  ;;  %v9242_v35 = vpack.c.bf16 %v6963_v39, %v6962_v47  ;;  %v5725_v63 = vpop.f32.mrb[132].mxu1 }
 0x445   : > { %v9122_v11 = vpack.c.bf16 %v9608_v61, %v9607_v34  ;;  %v6723_v17 = vmul.f32 %v9608_v61, %v11663_v48  ;;  %v9577_v32 = vadd.f32 %v5499_v15, %v13149_v9  ;;  %v5501_v13 = vpop.f32.mrb[133].mxu0  ;;  %v9609_v49 = vadd.f32 %v5725_v63, %v13154_v14  ;;  %v5727_v18 = vpop.f32.mrb[133].mxu1 }
 0x446   : > { %7978 = vst [vmem:[%s11754_s4 + $0x30] sm:$0xff] %v9241_v37  ;;  %6576 = vst [vmem:[%s11718_s16 + $0x70] sm:$0xff] %v9121_v53  ;;  %v6977_v21 = vmax.f32 %v6721_v54, 0.0  ;;  %v9578_v19 = vadd.f32 %v5501_v13, %v13159_v26  ;;  %v5503_v50 = vpop.f32.mrb[134].mxu0  ;;  %v9610_v42 = vadd.f32 %v5727_v18, %v13164_v1  ;;  %v5729_v24 = vpop.f32.mrb[134].mxu1 }
 0x447   : > { %7979 = vst [vmem:[%s11754_s4 + $0x38] sm:$0xff] %v9242_v35  ;;  %6577 = vst [vmem:[%s11718_s16 + $0x78] sm:$0xff] %v9122_v11  ;;  %v6979_v6 = vmax.f32 %v6723_v17, 0.0  ;;  %v6736_v10 = vmul.f32 %v9577_v32, %v11663_v48  ;;  %v9579_v46 = vadd.f32 %v5503_v50, %v13149_v9  ;;  %v5505_v60 = vpop.f32.mrb[135].mxu0  ;;  %v6738_v36 = vmul.f32 %v9609_v49, %v11663_v48  ;;  %v5731_v51 = vpop.f32.mrb[135].mxu1 }
 0x448   : > { %v9249_v29 = vpack.c.bf16 %v6977_v21, %v6976_v8  ;;  %v9129_v27 = vpack.c.bf16 %v9578_v19, %v9577_v32  ;;  %v6737_v5 = vmul.f32 %v9578_v19, %v11663_v48  ;;  %v9130_v0 = vpack.c.bf16 %v9610_v42, %v9609_v49 }
 0x449   : > { %v9250_v40 = vpack.c.bf16 %v6979_v6, %v6978_v16  ;;  %v6992_v23 = vmax.f32 %v6736_v10, 0.0  ;;  %v6739_v33 = vmul.f32 %v9610_v42, %v11663_v48  ;;  %v6994_v41 = vmax.f32 %v6738_v36, 0.0 }
 0x44a   : > { %7986 = vst [vmem:[%s11754_s4 + $0x70] sm:$0xff] %v9249_v29  ;;  %6584 = vst [vmem:[%s11718_s16 + $0xb0] sm:$0xff] %v9129_v27  ;;  %v6993_v31 = vmax.f32 %v6737_v5, 0.0  ;;  %v6752_v55 = vmul.f32 %v9579_v46, %v11663_v48  ;;  %v9611_v43 = vadd.f32 %v5729_v24, %v13154_v14  ;;  %v9580_v30 = vadd.f32 %v5505_v60, %v13159_v26 }
 0x44b   : > { %7987 = vst [vmem:[%s11754_s4 + $0x78] sm:$0xff] %v9250_v40  ;;  %6585 = vst [vmem:[%s11718_s16 + $0xb8] sm:$0xff] %v9130_v0  ;;  %v6995_v12 = vmax.f32 %v6739_v33, 0.0  ;;  %v9612_v2 = vadd.f32 %v5731_v51, %v13164_v1 }
 0x44c   : > { %v9257_v57 = vpack.c.bf16 %v6993_v31, %v6992_v23  ;;  %v7008_v28 = vmax.f32 %v6752_v55, 0.0  ;;  %v6754_v62 = vmul.f32 %v9611_v43, %v11663_v48  ;;  %v5509_v20 = vpop.f32.mrb[136].mxu0  ;;  %v9137_v59 = vpack.c.bf16 %v9580_v30, %v9579_v46 }
 0x44d   : > { %v9258_v38 = vpack.c.bf16 %v6995_v12, %v6994_v41  ;;  %v6753_v52 = vmul.f32 %v9580_v30, %v11663_v48  ;;  %v9138_v7 = vpack.c.bf16 %v9612_v2, %v9611_v43  ;;  %v5735_v34 = vpop.f32.mrb[136].mxu1  ;;  %v5511_v22 = vpop.f32.mrb[137].mxu0  ;;  %v6755_v3 = vmul.f32 %v9612_v2, %v11663_v48 }
 0x44e   : > { %7994 = vst [vmem:[%s11754_s4 + $0xb0] sm:$0xff] %v9257_v57  ;;  %v7010_v25 = vmax.f32 %v6754_v62, 0.0  ;;  %v9581_v4 = vadd.f32 %v5509_v20, %v13149_v9  ;;  %v9613_v45 = vadd.f32 %v5735_v34, %v13154_v14  ;;  %v5737_v47 = vpop.f32.mrb[137].mxu1  ;;  %v5513_v44 = vpop.f32.mrb[138].mxu0  ;;  %6592 = vst [vmem:[%s11718_s16 + $0xf0] sm:$0xff] %v9137_v59  ;;  %v9582_v58 = vadd.f32 %v5511_v22, %v13159_v26 }
 0x44f   : > { %7995 = vst [vmem:[%s11754_s4 + $0xb8] sm:$0xff] %v9258_v38  ;;  %v7009_v56 = vmax.f32 %v6753_v52, 0.0  ;;  %6593 = vst [vmem:[%s11718_s16 + $0xf8] sm:$0xff] %v9138_v7  ;;  %v9614_v39 = vadd.f32 %v5737_v47, %v13164_v1  ;;  %v9583_v8 = vadd.f32 %v5513_v44, %v13149_v9  ;;  %v5739_v61 = vpop.f32.mrb[138].mxu1  ;;  %v5515_v37 = vpop.f32.mrb[139].mxu0  ;;  %v7011_v16 = vmax.f32 %v6755_v3, 0.0 }
 0x450   : > { %v6768_v53 = vmul.f32 %v9581_v4, %v11663_v48  ;;  %v6770_v54 = vmul.f32 %v9613_v45, %v11663_v48  ;;  %v9615_v15 = vadd.f32 %v5739_v61, %v13154_v14  ;;  %v5741_v35 = vpop.f32.mrb[139].mxu1  ;;  %v9145_v17 = vpack.c.bf16 %v9582_v58, %v9581_v4 }
 0x451   : > { %v9265_v11 = vpack.c.bf16 %v7009_v56, %v7008_v28  ;;  %v6769_v32 = vmul.f32 %v9582_v58, %v11663_v48  ;;  %v9146_v63 = vpack.c.bf16 %v9614_v39, %v9613_v45  ;;  %v9266_v13 = vpack.c.bf16 %v7011_v16, %v7010_v25 }
 0x452   : > { %v7024_v21 = vmax.f32 %v6768_v53, 0.0  ;;  %v7026_v49 = vmax.f32 %v6770_v54, 0.0  ;;  %v6771_v19 = vmul.f32 %v9614_v39, %v11663_v48  ;;  %6600 = vst [vmem:[%s11718_s16 + $0x130] sm:$0xff] %v9145_v17  ;;  %v6784_v50 = vmul.f32 %v9583_v8, %v11663_v48 }
 0x453   : > { %8002 = vst [vmem:[%s11754_s4 + $0xf0] sm:$0xff] %v9265_v11  ;;  %v7025_v18 = vmax.f32 %v6769_v32, 0.0  ;;  %6601 = vst [vmem:[%s11718_s16 + $0x138] sm:$0xff] %v9146_v63  ;;  %v6786_v6 = vmul.f32 %v9615_v15, %v11663_v48  ;;  %v9584_v10 = vadd.f32 %v5515_v37, %v13159_v26  ;;  %v9616_v46 = vadd.f32 %v5741_v35, %v13164_v1 }
 0x454   : > { %8003 = vst [vmem:[%s11754_s4 + $0xf8] sm:$0xff] %v9266_v13  ;;  %v7027_v42 = vmax.f32 %v6771_v19, 0.0  ;;  %v5519_v24 = vpop.f32.mrb[140].mxu0  ;;  %v7040_v29 = vmax.f32 %v6784_v50, 0.0 }
 0x455   : > { %v9273_v60 = vpack.c.bf16 %v7025_v18, %v7024_v21  ;;  %v7042_v36 = vmax.f32 %v6786_v6, 0.0  ;;  %v9153_v27 = vpack.c.bf16 %v9584_v10, %v9583_v8  ;;  %v5745_v5 = vpop.f32.mrb[140].mxu1  ;;  %v5521_v51 = vpop.f32.mrb[141].mxu0  ;;  %v6785_v23 = vmul.f32 %v9584_v10, %v11663_v48 }
 0x456   : > { %v9274_v40 = vpack.c.bf16 %v7027_v42, %v7026_v49  ;;  %v9154_v0 = vpack.c.bf16 %v9616_v46, %v9615_v15  ;;  %v6787_v33 = vmul.f32 %v9616_v46, %v11663_v48  ;;  %v5747_v41 = vpop.f32.mrb[141].mxu1  ;;  %v5523_v31 = vpop.f32.mrb[142].mxu0  ;;  %v9585_v55 = vadd.f32 %v5519_v24, %v13149_v9 }
 0x457   : > { %8010 = vst [vmem:[%s11754_s4 + $0x130] sm:$0xff] %v9273_v60  ;;  %6608 = vst [vmem:[%s11718_s16 + $0x170] sm:$0xff] %v9153_v27  ;;  %v9617_v43 = vadd.f32 %v5745_v5, %v13154_v14  ;;  %v9586_v12 = vadd.f32 %v5521_v51, %v13159_v26  ;;  %v9618_v30 = vadd.f32 %v5747_v41, %v13164_v1  ;;  %v5749_v2 = vpop.f32.mrb[142].mxu1  ;;  %v5525_v57 = vpop.f32.mrb[143].mxu0  ;;  %v7041_v28 = vmax.f32 %v6785_v23, 0.0 }
 0x458   : > { %8011 = vst [vmem:[%s11754_s4 + $0x138] sm:$0xff] %v9274_v40  ;;  %6609 = vst [vmem:[%s11718_s16 + $0x178] sm:$0xff] %v9154_v0  ;;  %v7043_v62 = vmax.f32 %v6787_v33, 0.0  ;;  %v9587_v20 = vadd.f32 %v5523_v31, %v13149_v9  ;;  %v9619_v38 = vadd.f32 %v5749_v2, %v13154_v14  ;;  %v5751_v59 = vpop.f32.mrb[143].mxu1  ;;  %v6800_v52 = vmul.f32 %v9585_v55, %v11663_v48 }
 0x459   : > { %v6802_v7 = vmul.f32 %v9617_v43, %v11663_v48  ;;  %v9161_v34 = vpack.c.bf16 %v9586_v12, %v9585_v55  ;;  %v6801_v22 = vmul.f32 %v9586_v12, %v11663_v48  ;;  %v9281_v25 = vpack.c.bf16 %v7041_v28, %v7040_v29 }
 0x45a   : > { %v9282_v3 = vpack.c.bf16 %v7043_v62, %v7042_v36  ;;  %v9162_v4 = vpack.c.bf16 %v9618_v30, %v9617_v43  ;;  %v6803_v45 = vmul.f32 %v9618_v30, %v11663_v48  ;;  %v7056_v47 = vmax.f32 %v6800_v52, 0.0 }
 0x45b   : > { %v7058_v44 = vmax.f32 %v6802_v7, 0.0  ;;  %6616 = vst [vmem:[%s11718_s16 + $0x1b0] sm:$0xff] %v9161_v34  ;;  %v7057_v56 = vmax.f32 %v6801_v22, 0.0  ;;  %v6816_v58 = vmul.f32 %v9587_v20, %v11663_v48  ;;  %8018 = vst [vmem:[%s11754_s4 + $0x170] sm:$0xff] %v9281_v25  ;;  %v6818_v8 = vmul.f32 %v9619_v38, %v11663_v48 }
 0x45c   : > { %8019 = vst [vmem:[%s11754_s4 + $0x178] sm:$0xff] %v9282_v3  ;;  %6617 = vst [vmem:[%s11718_s16 + $0x1b8] sm:$0xff] %v9162_v4  ;;  %v7059_v39 = vmax.f32 %v6803_v45, 0.0  ;;  %v9588_v61 = vadd.f32 %v5525_v57, %v13159_v26  ;;  %v9620_v37 = vadd.f32 %v5751_v59, %v13164_v1  ;;  %v5529_v16 = vpop.f32.mrb[144].mxu0 }
 0x45d   : > { %v9289_v53 = vpack.c.bf16 %v7057_v56, %v7056_v47  ;;  %v7072_v54 = vmax.f32 %v6816_v58, 0.0  ;;  %v9589_v15 = vadd.f32 %v5529_v16, %v13149_v9  ;;  %v5755_v35 = vpop.f32.mrb[144].mxu1  ;;  %v5531_v11 = vpop.f32.mrb[145].mxu0  ;;  %v7074_v32 = vmax.f32 %v6818_v8, 0.0 }
 0x45e   : > { %v9290_v17 = vpack.c.bf16 %v7059_v39, %v7058_v44  ;;  %v9169_v63 = vpack.c.bf16 %v9588_v61, %v9587_v20  ;;  %v6817_v13 = vmul.f32 %v9588_v61, %v11663_v48  ;;  %v5757_v21 = vpop.f32.mrb[145].mxu1  ;;  %v5533_v49 = vpop.f32.mrb[146].mxu0  ;;  %v9170_v19 = vpack.c.bf16 %v9620_v37, %v9619_v38 }
 0x45f   : > { %8026 = vst [vmem:[%s11754_s4 + $0x1b0] sm:$0xff] %v9289_v53  ;;  %v6819_v18 = vmul.f32 %v9620_v37, %v11663_v48  ;;  %v6832_v50 = vmul.f32 %v9589_v15, %v11663_v48  ;;  %v9621_v6 = vadd.f32 %v5755_v35, %v13154_v14  ;;  %v5759_v10 = vpop.f32.mrb[146].mxu1  ;;  %v5535_v42 = vpop.f32.mrb[147].mxu0  ;;  %v9590_v24 = vadd.f32 %v5531_v11, %v13159_v26 }
 0x460   : > { %8027 = vst [vmem:[%s11754_s4 + $0x1b8] sm:$0xff] %v9290_v17  ;;  %6624 = vst [vmem:[%s11718_s16 + $0x1f0] sm:$0xff] %v9169_v63  ;;  %v7073_v46 = vmax.f32 %v6817_v13, 0.0  ;;  %v9622_v60 = vadd.f32 %v5757_v21, %v13164_v1  ;;  %v9591_v29 = vadd.f32 %v5533_v49, %v13149_v9  ;;  %v5761_v36 = vpop.f32.mrb[147].mxu1  ;;  %v9623_v40 = vadd.f32 %v5759_v10, %v13154_v14 }
 0x461   : > { %6625 = vst [vmem:[%s11718_s16 + $0x1f8] sm:$0xff] %v9170_v19  ;;  %v7075_v27 = vmax.f32 %v6819_v18, 0.0  ;;  %v7088_v5 = vmax.f32 %v6832_v50, 0.0  ;;  %v6834_v51 = vmul.f32 %v9621_v6, %v11663_v48  ;;  %v9177_v0 = vpack.c.bf16 %v9590_v24, %v9589_v15 }
 0x462   : > { %v9297_v23 = vpack.c.bf16 %v7073_v46, %v7072_v54  ;;  %v6833_v33 = vmul.f32 %v9590_v24, %v11663_v48  ;;  %v9178_v41 = vpack.c.bf16 %v9622_v60, %v9621_v6  ;;  %v6835_v43 = vmul.f32 %v9622_v60, %v11663_v48 }
 0x463   : > { %v9298_v31 = vpack.c.bf16 %v7075_v27, %v7074_v32  ;;  %v7090_v55 = vmax.f32 %v6834_v51, 0.0  ;;  %v6848_v12 = vmul.f32 %v9591_v29, %v11663_v48  ;;  %6632 = vst [vmem:[%s11718_s16 + $0x230] sm:$0xff] %v9177_v0  ;;  %v6850_v2 = vmul.f32 %v9623_v40, %v11663_v48 }
 0x464   : > { %8034 = vst [vmem:[%s11754_s4 + $0x1f0] sm:$0xff] %v9297_v23  ;;  %v7089_v30 = vmax.f32 %v6833_v33, 0.0  ;;  %6633 = vst [vmem:[%s11718_s16 + $0x238] sm:$0xff] %v9178_v41  ;;  %v9592_v57 = vadd.f32 %v5535_v42, %v13159_v26  ;;  %v9624_v28 = vadd.f32 %v5761_v36, %v13164_v1  ;;  %v5539_v62 = vpop.f32.mrb[148].mxu0  ;;  %v7091_v20 = vmax.f32 %v6835_v43, 0.0 }
 0x465   : > { %8035 = vst [vmem:[%s11754_s4 + $0x1f8] sm:$0xff] %v9298_v31  ;;  %v7104_v38 = vmax.f32 %v6848_v12, 0.0  ;;  %v9593_v59 = vadd.f32 %v5539_v62, %v13149_v9  ;;  %v5765_v52 = vpop.f32.mrb[148].mxu1  ;;  %v5541_v7 = vpop.f32.mrb[149].mxu0  ;;  %v7106_v22 = vmax.f32 %v6850_v2, 0.0 }
 0x466   : > { %v9305_v34 = vpack.c.bf16 %v7089_v30, %v7088_v5  ;;  %v9185_v25 = vpack.c.bf16 %v9592_v57, %v9591_v29  ;;  %v6849_v3 = vmul.f32 %v9592_v57, %v11663_v48  ;;  %v5767_v4 = vpop.f32.mrb[149].mxu1  ;;  %v5543_v45 = vpop.f32.mrb[150].mxu0  ;;  %v9306_v47 = vpack.c.bf16 %v7091_v20, %v7090_v55 }
 0x467   : > { %v9186_v44 = vpack.c.bf16 %v9624_v28, %v9623_v40  ;;  %v6851_v56 = vmul.f32 %v9624_v28, %v11663_v48  ;;  %v6864_v58 = vmul.f32 %v9593_v59, %v11663_v48  ;;  %v5769_v39 = vpop.f32.mrb[150].mxu1  ;;  %v5545_v8 = vpop.f32.mrb[151].mxu0  ;;  %v9625_v37 = vadd.f32 %v5765_v52, %v13154_v14 }
 0x468   : > { %8042 = vst [vmem:[%s11754_s4 + $0x230] sm:$0xff] %v9305_v34  ;;  %6640 = vst [vmem:[%s11718_s16 + $0x270] sm:$0xff] %v9185_v25  ;;  %v7105_v61 = vmax.f32 %v6849_v3, 0.0  ;;  %v9594_v16 = vadd.f32 %v5541_v7, %v13159_v26  ;;  %v9626_v53 = vadd.f32 %v5767_v4, %v13164_v1  ;;  %v5771_v54 = vpop.f32.mrb[151].mxu1  ;;  %v9595_v11 = vadd.f32 %v5543_v45, %v13149_v9 }
 0x469   : > { %8043 = vst [vmem:[%s11754_s4 + $0x238] sm:$0xff] %v9306_v47  ;;  %6641 = vst [vmem:[%s11718_s16 + $0x278] sm:$0xff] %v9186_v44  ;;  %v7107_v15 = vmax.f32 %v6851_v56, 0.0  ;;  %v7120_v35 = vmax.f32 %v6864_v58, 0.0  ;;  %v9627_v17 = vadd.f32 %v5769_v39, %v13154_v14  ;;  %v6866_v63 = vmul.f32 %v9625_v37, %v11663_v48 }
 0x46a   : > { %v9313_v32 = vpack.c.bf16 %v7105_v61, %v7104_v38  ;;  %v9193_v13 = vpack.c.bf16 %v9594_v16, %v9593_v59  ;;  %v6865_v21 = vmul.f32 %v9594_v16, %v11663_v48  ;;  %v9194_v19 = vpack.c.bf16 %v9626_v53, %v9625_v37 }
 0x46b   : > { %v9314_v49 = vpack.c.bf16 %v7107_v15, %v7106_v22  ;;  %v6867_v18 = vmul.f32 %v9626_v53, %v11663_v48  ;;  %v6880_v50 = vmul.f32 %v9595_v11, %v11663_v48  ;;  %v7122_v6 = vmax.f32 %v6866_v63, 0.0 }
 0x46c   : > { %8050 = vst [vmem:[%s11754_s4 + $0x270] sm:$0xff] %v9313_v32  ;;  %6648 = vst [vmem:[%s11718_s16 + $0x2b0] sm:$0xff] %v9193_v13  ;;  %v7121_v10 = vmax.f32 %v6865_v21, 0.0  ;;  %v6882_v42 = vmul.f32 %v9627_v17, %v11663_v48  ;;  %v9596_v46 = vadd.f32 %v5545_v8, %v13159_v26  ;;  %v5549_v24 = vpop.f32.mrb[152].mxu0  ;;  %v9628_v36 = vadd.f32 %v5771_v54, %v13164_v1 }
 0x46d   : > { %8051 = vst [vmem:[%s11754_s4 + $0x278] sm:$0xff] %v9314_v49  ;;  %6649 = vst [vmem:[%s11718_s16 + $0x2b8] sm:$0xff] %v9194_v19  ;;  %v7123_v60 = vmax.f32 %v6867_v18, 0.0  ;;  %v7136_v29 = vmax.f32 %v6880_v50, 0.0  ;;  %v9597_v27 = vadd.f32 %v5549_v24, %v13149_v9  ;;  %v5775_v5 = vpop.f32.mrb[152].mxu1  ;;  %v5551_v51 = vpop.f32.mrb[153].mxu0 }
 0x46e   : > { %v9321_v40 = vpack.c.bf16 %v7121_v10, %v7120_v35  ;;  %v7138_v23 = vmax.f32 %v6882_v42, 0.0  ;;  %v9201_v0 = vpack.c.bf16 %v9596_v46, %v9595_v11  ;;  %v6881_v33 = vmul.f32 %v9596_v46, %v11663_v48  ;;  %v5777_v41 = vpop.f32.mrb[153].mxu1  ;;  %v5553_v31 = vpop.f32.mrb[154].mxu0 }
 0x46f   : > { %v9322_v55 = vpack.c.bf16 %v7123_v60, %v7122_v6  ;;  %v9202_v43 = vpack.c.bf16 %v9628_v36, %v9627_v17  ;;  %v6883_v12 = vmul.f32 %v9628_v36, %v11663_v48  ;;  %v6896_v30 = vmul.f32 %v9597_v27, %v11663_v48  ;;  %v5779_v2 = vpop.f32.mrb[154].mxu1  ;;  %v5555_v57 = vpop.f32.mrb[155].mxu0 }
 0x470   : > { %8058 = vst [vmem:[%s11754_s4 + $0x2b0] sm:$0xff] %v9321_v40  ;;  %6656 = vst [vmem:[%s11718_s16 + $0x2f0] sm:$0xff] %v9201_v0  ;;  %v7137_v28 = vmax.f32 %v6881_v33, 0.0  ;;  %v9629_v62 = vadd.f32 %v5775_v5, %v13154_v14  ;;  %v9598_v20 = vadd.f32 %v5551_v51, %v13159_v26  ;;  %v9630_v38 = vadd.f32 %v5777_v41, %v13164_v1  ;;  %v5781_v59 = vpop.f32.mrb[155].mxu1 }
 0x471   : > { %8059 = vst [vmem:[%s11754_s4 + $0x2b8] sm:$0xff] %v9322_v55  ;;  %6657 = vst [vmem:[%s11718_s16 + $0x2f8] sm:$0xff] %v9202_v43  ;;  %v7139_v52 = vmax.f32 %v6883_v12, 0.0  ;;  %v7152_v7 = vmax.f32 %v6896_v30, 0.0  ;;  %v9599_v34 = vadd.f32 %v5553_v31, %v13149_v9  ;;  %v9631_v22 = vadd.f32 %v5779_v2, %v13154_v14 }
 0x472   : > { %v9329_v25 = vpack.c.bf16 %v7137_v28, %v7136_v29  ;;  %v6898_v3 = vmul.f32 %v9629_v62, %v11663_v48  ;;  %v9209_v4 = vpack.c.bf16 %v9598_v20, %v9597_v27  ;;  %v6897_v45 = vmul.f32 %v9598_v20, %v11663_v48 }
 0x473   : > { %v9330_v47 = vpack.c.bf16 %v7139_v52, %v7138_v23  ;;  %v9210_v44 = vpack.c.bf16 %v9630_v38, %v9629_v62  ;;  %v6899_v56 = vmul.f32 %v9630_v38, %v11663_v48  ;;  %v6912_v58 = vmul.f32 %v9599_v34, %v11663_v48 }
 0x474   : > { %8066 = vst [vmem:[%s11754_s4 + $0x2f0] sm:$0xff] %v9329_v25  ;;  %v7154_v39 = vmax.f32 %v6898_v3, 0.0  ;;  %6664 = vst [vmem:[%s11718_s16 + $0x330] sm:$0xff] %v9209_v4  ;;  %v7153_v8 = vmax.f32 %v6897_v45, 0.0  ;;  %v6914_v61 = vmul.f32 %v9631_v22, %v11663_v48  ;;  %v9600_v37 = vadd.f32 %v5555_v57, %v13159_v26  ;;  %v5559_v16 = vpop.f32.mrb[156].mxu0 }
 0x475   : > { %8067 = vst [vmem:[%s11754_s4 + $0x2f8] sm:$0xff] %v9330_v47  ;;  %6665 = vst [vmem:[%s11718_s16 + $0x338] sm:$0xff] %v9210_v44  ;;  %v7155_v53 = vmax.f32 %v6899_v56, 0.0  ;;  %v7168_v54 = vmax.f32 %v6912_v58, 0.0  ;;  %v9632_v15 = vadd.f32 %v5781_v59, %v13164_v1  ;;  %v9601_v35 = vadd.f32 %v5559_v16, %v13149_v9  ;;  %v5785_v11 = vpop.f32.mrb[156].mxu1  ;;  %v5561_v17 = vpop.f32.mrb[157].mxu0 }
 0x476   : > { %v9337_v32 = vpack.c.bf16 %v7153_v8, %v7152_v7  ;;  %v7170_v63 = vmax.f32 %v6914_v61, 0.0  ;;  %v9217_v13 = vpack.c.bf16 %v9600_v37, %v9599_v34  ;;  %v6913_v21 = vmul.f32 %v9600_v37, %v11663_v48  ;;  %v5787_v49 = vpop.f32.mrb[157].mxu1  ;;  %v5563_v19 = vpop.f32.mrb[158].mxu0 }
 0x477   : > { %v9338_v18 = vpack.c.bf16 %v7155_v53, %v7154_v39  ;;  %v9218_v50 = vpack.c.bf16 %v9632_v15, %v9631_v22  ;;  %v6915_v6 = vmul.f32 %v9632_v15, %v11663_v48  ;;  %v6928_v10 = vmul.f32 %v9601_v35, %v11663_v48  ;;  %v5789_v42 = vpop.f32.mrb[158].mxu1  ;;  %v5565_v46 = vpop.f32.mrb[159].mxu0 }
 0x478   : > { %8074 = vst [vmem:[%s11754_s4 + $0x330] sm:$0xff] %v9337_v32  ;;  %6672 = vst [vmem:[%s11718_s16 + $0x370] sm:$0xff] %v9217_v13  ;;  %v7169_v24 = vmax.f32 %v6913_v21, 0.0  ;;  %v9633_v60 = vadd.f32 %v5785_v11, %v13154_v14  ;;  %v9602_v29 = vadd.f32 %v5561_v17, %v13159_v26  ;;  %v9634_v36 = vadd.f32 %v5787_v49, %v13164_v1  ;;  %v5791_v27 = vpop.f32.mrb[159].mxu1 }
 0x479   : > { %8075 = vst [vmem:[%s11754_s4 + $0x338] sm:$0xff] %v9338_v18  ;;  %6673 = vst [vmem:[%s11718_s16 + $0x378] sm:$0xff] %v9218_v50  ;;  %v7171_v5 = vmax.f32 %v6915_v6, 0.0  ;;  %v7184_v51 = vmax.f32 %v6928_v10, 0.0  ;;  %v9603_v40 = vadd.f32 %v5563_v19, %v13149_v9  ;;  %v9635_v23 = vadd.f32 %v5789_v42, %v13154_v14 }
 0x47a   : > { %v9345_v0 = vpack.c.bf16 %v7169_v24, %v7168_v54  ;;  %v6930_v33 = vmul.f32 %v9633_v60, %v11663_v48  ;;  %v9225_v41 = vpack.c.bf16 %v9602_v29, %v9601_v35  ;;  %v6929_v31 = vmul.f32 %v9602_v29, %v11663_v48 }
 0x47b   : > { %v9346_v55 = vpack.c.bf16 %v7171_v5, %v7170_v63  ;;  %v9226_v43 = vpack.c.bf16 %v9634_v36, %v9633_v60  ;;  %v6931_v12 = vmul.f32 %v9634_v36, %v11663_v48  ;;  %v6944_v30 = vmul.f32 %v9603_v40, %v11663_v48 }
 0x47c   : > { %8082 = vst [vmem:[%s11754_s4 + $0x370] sm:$0xff] %v9345_v0  ;;  %v7186_v9 = vmax.f32 %v6930_v33, 0.0  ;;  %6680 = vst [vmem:[%s11718_s16 + $0x3b0] sm:$0xff] %v9225_v41  ;;  %v7185_v14 = vmax.f32 %v6929_v31, 0.0  ;;  %v6946_v2 = vmul.f32 %v9635_v23, %v11663_v48  ;;  %v9604_v57 = vadd.f32 %v5565_v46, %v13159_v26 }
 0x47d   : > { %8083 = vst [vmem:[%s11754_s4 + $0x378] sm:$0xff] %v9346_v55  ;;  %6681 = vst [vmem:[%s11718_s16 + $0x3b8] sm:$0xff] %v9226_v43  ;;  %v7187_v28 = vmax.f32 %v6931_v12, 0.0  ;;  %v9636_v62 = vadd.f32 %v5791_v27, %v13164_v1  ;;  %v7200_v38 = vmax.f32 %v6944_v30, 0.0 }
 0x47e   : > { %v9353_v20 = vpack.c.bf16 %v7185_v14, %v7184_v51  ;;  %v9233_v59 = vpack.c.bf16 %v9604_v57, %v9603_v40  ;;  %v6945_v26 = vmul.f32 %v9604_v57, %v11663_v48  ;;  %v7202_v1 = vmax.f32 %v6946_v2, 0.0 }
 0x47f   : > { %v9354_v52 = vpack.c.bf16 %v7187_v28, %v7186_v9  ;;  %v9234_v7 = vpack.c.bf16 %v9636_v62, %v9635_v23  ;;  %v6947_v34 = vmul.f32 %v9636_v62, %v11663_v48 }
 0x480   : > { %8090 = vst [vmem:[%s11754_s4 + $0x3b0] sm:$0xff] %v9353_v20  ;;  %6688 = vst [vmem:[%s11718_s16 + $0x3f0] sm:$0xff] %v9233_v59  ;;  %v7201_v22 = vmax.f32 %v6945_v26, 0.0 }
 0x481   : > { %8091 = vst [vmem:[%s11754_s4 + $0x3b8] sm:$0xff] %v9354_v52  ;;  %6689 = vst [vmem:[%s11718_s16 + $0x3f8] sm:$0xff] %v9234_v7  ;;  %v7203_v25 = vmax.f32 %v6947_v34, 0.0 }
 0x482   : > { %v9361_v3 = vpack.c.bf16 %v7201_v22, %v7200_v38 }
 0x483   : > { %10109 = shalt.err (!%p10106_p4)
}
 0x484   : > { %s10110_s12 = scalar_lea.hbm %s13357_s18, 16384  ;;  %s10114_s11 = scalar_lea.hbm %s13459_s6, 32768 }
 0x485   : > { %p10111_p1 = scmp.ne.s32.totalorder %s13357_s18, %s10110_s12  ;;  %p10115_p11 = scmp.lt.u32.totalorder %s13357_s18, %s13459_s6 }
 0x486   : > { %p10116_p13 = scmp.lt.u32.totalorder %s10114_s11, %s10110_s12  ;;  %p10118_p7 = scmp.lt.u32.totalorder %s10110_s12, %s13357_s18 }
 0x487   : > { %p10112_p0 = pnand %p10111_p1, %p13883_p9 }
 0x488   : > { %p10117_p6 = por %p10116_p13, %p10115_p11 }
 0x489   : > { %p10113_p5 = pneg %p10112_p0 }
 0x48a   : > { %p10119_p8 = por %p10118_p7, %p10117_p6 }
 0x48c   : > { %p10120_p3 = pnand %p10119_p8, %p10113_p5 }
 0x48e   : > { %10123 = shalt.err (!%p10120_p3)
}
 0x48f   : > { %s10215_s24 = smov 1024   ;;  %s10216_s16 = smov 2048   ;;  %v9362_v48 = vpack.c.bf16 %v7203_v25, %v7202_v1  ;;  %8098 = vst [vmem:[%s11754_s4 + $0x3f0] sm:$0xff] %v9361_v3 }
 0x490   : > { %s10217_s2 = smov 64   ;;  %s13400_s19 = scalar_lea.hbm %s13460_s7, %s9363_s15 }
 0x491   : > { %9905 = dma.vmem_to_hbm [thread:$0]  (%p13883_p9), %s13360_s13, 16384, %s13357_s18, %s8101_s22, %s10215_s24, %s10216_s16, %s10217_s2  }
 0x492   : > { %8099 = vst [vmem:[%s11754_s4 + $0x3f8] sm:$0xff] %v9362_v48  ;;  %s8106_s10 = scalar_lea.sflag [#allocation12], %s10466_s17  ;;  %s10124_s30 = scalar_lea.vmem %s13404_s21, 16384 }
 0x493   : > { %p10125_p12 = scmp.ne.s32.totalorder %s13404_s21, %s10124_s30  ;;  %s10218_s0 = smov [#allocation11]  }
 0x494   : > { %s10128_s13 = sshll.u32 %s10218_s0, 4  ;;  %s10129_s13 = int_to_ptr.vmem [resolvable:$false] %s10128_s13 }
 0x495   : > { %p10126_p10 = pnand %p10125_p12, %p13883_p9  ;;  %s10130_s18 = scalar_lea.vmem %s10129_s13, 32768 }
 0x496   : > { %p10131_p4 = scmp.lt.s32.totalorder %s13404_s21, %s10129_s13  ;;  %p10132_p1 = scmp.lt.s32.totalorder %s10130_s18, %s10124_s30 }
 0x497   : > { %p10127_p2 = pneg %p10126_p10 }
 0x498   : > { %p10133_p0 = por %p10132_p1, %p10131_p4 }
 0x49a   : > { %p10134_p5 = pnand %p10133_p0, %p10127_p2 }
 0x49c   : > { %10137 = shalt.err (!%p10134_p5)
}
 0x49d   : > { %s10138_s4 = scalar_lea.hbm %s13400_s19, 16384  ;;  %s10142_s12 = scalar_lea.hbm %s13460_s7, 32768 }
 0x49e   : > { %p10139_p11 = scmp.ne.s32.totalorder %s13400_s19, %s10138_s4  ;;  %p10143_p7 = scmp.lt.u32.totalorder %s13400_s19, %s13460_s7 }
 0x49f   : > { %p10144_p8 = scmp.lt.u32.totalorder %s10142_s12, %s10138_s4  ;;  %p10146_p12 = scmp.lt.u32.totalorder %s10138_s4, %s13400_s19 }
 0x4a0   : > { %p10140_p13 = pnand %p10139_p11, %p13883_p9 }
 0x4a1   : > { %p10145_p3 = por %p10144_p8, %p10143_p7 }
 0x4a2   : > { %p10141_p6 = pneg %p10140_p13 }
 0x4a3   : > { %p10147_p10 = por %p10146_p12, %p10145_p3 }
 0x4a5   : > { %p10148_p2 = pnand %p10147_p10, %p10141_p6 }
 0x4a7   : > { %10151 = shalt.err (!%p10148_p2)
}
 0x4a8   : > { %9906 = dma.vmem_to_hbm [thread:$0]  (%p13883_p9), %s13404_s21, 16384, %s13400_s19, %s8106_s10, %s10215_s24, %s10216_s16, %s10217_s2  }
 0x4a9 PF: > { %s13884_s11 = sld [smem:[#allocation18_spill]]  ;;  %s13885_s8 = sld [smem:[#allocation21_spill]] }
 0x4aa   : > { %p13887_p1 = scmp.ge.s32.totalorder %s10202_s29, 2 }
 0x4af   : > { %s8150_s25 = sand.u32 1, %s13884_s11   ;;  %p13886_p4 = scmp.ne.s32.totalorder %s13885_s8, 0 }
 0x4b0   : > { %s8151_s26 = scalar_lea.sflag [#allocation5], %s8150_s25 }
 0x4b1   : > { %p9924_p0 = pnand %p13887_p1, %p13886_p4 }
 0x4b3   : > { %10181 = dma.done.wait (!%p9924_p0), %s8151_s26, 16384  }
 0x4b4   : > { %10183 = vsyncadd (!%p9924_p0), %s8151_s26, 4294950912  ;;  %s8160_s14 = scalar_lea.sflag [#allocation12], %s8150_s25 }
 0x4b5   : > { %10185 = dma.done.wait (!%p9924_p0), %s8160_s14, 16384  }
 0x4b6   : > { %10187 = vsyncadd (!%p9924_p0), %s8160_s14, 4294950912  ;;  %s13888_s29 = sld [smem:[#allocation19_spill]]  ;;  %s13889_s17 = sld [smem:[#allocation20_spill]] }
 0x4b7   : > { %s13890_s26 = smov %s10194_s27  ;;  %s13891_s27 = smov %s10198_s28 }
 0x4bc   : > { %p24_p9 = scmp.ge.s32.totalorder %s13888_s29, 4   ;;  %s13892_s28 = smov %s13889_s17 }
 0x4be   :  { %26 = sbr.rel (!%p24_p9) target bundleno = 11 (0xb), region = 124 }
 0x4c5   :  { %8165 = vsyncpa [#allocation4], 1 }
 0x4c6   :  { %8167 = vsyncpa [#allocation4 + $0x1], 1 }
 0x4c7   :  { %8168 = vsyncpa [#allocation7], 1 }
 0x4c8   :  { %8169 = vsyncpa [#allocation5], 1 }
 0x4c9   :  { %8171 = vsyncpa [#allocation5 + $0x1], 1 }
 0x4ca   :  { %8172 = vsyncpa [#allocation12], 1 }
 0x4cb   :  { %8174 = vsyncpa [#allocation12 + $0x1], 1 }

</bundles_post_ra>
